<compile_context>
chip_gen: v5e
topology: v5e:2x2
jax: 0.10.0
libtpu: 0.0.40
codegen_flags: <defaults>
</compile_context>

<pallas_src>
import functools

import jax
import jax.numpy as jnp
import numpy as np
from jax.experimental import pallas as pl
from jax.experimental.pallas import tpu as pltpu

_TB_MAX = 128  # samples per grid step (matmul M dim); multiple of 8


def _round_up(x, m):
    return (x + m - 1) // m * m


# ----------------------------------------------------------------------------
# Kernel: one grid step processes TB samples; forward = 4 chained MXU matmuls.
# ----------------------------------------------------------------------------
def _fused_batched_kernel(g_ref, w1_ref, b1_ref, w2_ref, b2_ref,
                          w3_ref, b3_ref, wh_ref, bh_ref, o_ref):
    f32 = jnp.float32

    def leaky(v):                          # nn.LeakyReLU default slope 0.01
        return jnp.where(v >= 0.0, v, 0.01 * v)

    def dense(x, w_ref, b_ref):
        return jnp.dot(x, w_ref[...], preferred_element_type=f32) + b_ref[...]

    g = g_ref[...]                                   # (TB, 256)
    x1 = leaky(dense(g, w1_ref, b1_ref))             # (TB, 2048)  K=256
    x2 = leaky(dense(x1, w2_ref, b2_ref))            # (TB, 512)   K=2048
    x3 = leaky(dense(x2, w3_ref, b3_ref))            # (TB, 128)   K=512
    o_ref[...] = dense(x3, wh_ref, bh_ref).astype(o_ref.dtype)   # (TB, NOUT_PAD)


# ----------------------------------------------------------------------------
# Wrapper: single pallas_call for the entire Decoder_precoder forward pass.
# ----------------------------------------------------------------------------
@functools.partial(jax.jit, static_argnames=("n_out",))
def decoder_precoder_forward(feedback, p, *, n_out):
    B = feedback.shape[0]
    g = feedback.reshape(B, 256).astype(jnp.float32)     # (16,16) flattened

    TB = min(_TB_MAX, _round_up(B, 8))
    B_pad = _round_up(B, TB)
    if B_pad != B:
        g = jnp.pad(g, ((0, B_pad - B), (0, 0)))          # zero rows, sliced off

    nout_pad = p["wh"].shape[1]                            # lane-dense head width
    grid = (B_pad // TB,)
    const2 = lambda b: (0, 0)                              # weights: fetched once

    out = pl.pallas_call(
        _fused_batched_kernel,
        out_shape=jax.ShapeDtypeStruct((B_pad, nout_pad), jnp.float32),
        grid=grid,
        in_specs=[
            pl.BlockSpec((TB, 256), lambda b: (b, 0)),     # per-block input
            pl.BlockSpec(p["w1"].shape, const2),           # (256, 2048)
            pl.BlockSpec(p["b1"].shape, const2),           # (1, 2048)
            pl.BlockSpec(p["w2"].shape, const2),           # (2048, 512)
            pl.BlockSpec(p["b2"].shape, const2),           # (1, 512)
            pl.BlockSpec(p["w3"].shape, const2),           # (512, 128)
            pl.BlockSpec(p["b3"].shape, const2),           # (1, 128)
            pl.BlockSpec(p["wh"].shape, const2),           # (128, NOUT_PAD)
            pl.BlockSpec(p["bh"].shape, const2),           # (1, NOUT_PAD)
        ],
        out_specs=pl.BlockSpec((TB, nout_pad), lambda b: (b, 0)),
        compiler_params=pltpu.CompilerParams(
            # batch axis is independent -> lets the v7x megacore split it;
            # no-op on single-TC v5e/v6e.
            dimension_semantics=("parallel",),
            vmem_limit_bytes=32 * 1024 * 1024),
    )(g, p["w1"], p["b1"], p["w2"], p["b2"], p["w3"], p["b3"],
      p["wh"], p["bh"])

    out = out[:B, :2 * n_out]
    return out[:, :n_out], out[:, n_out:]


# ----------------------------------------------------------------------------
# Deterministic synthetic parameters (PyTorch layouts) + exact folded matrices.
# ----------------------------------------------------------------------------
def init_params(key, antenna, rf_chain):
    n_out = antenna * rf_chain
    ks = jax.random.split(key, 12)

    def w(k, shape, scale=0.1):
        return scale * jax.random.normal(k, shape, jnp.float32)

    # PyTorch-native layouts: Linear (out, in); Conv2d (out, in, kh, kw)
    raw = {
        "w_init": w(ks[0], (8, 16)),      "b_init": w(ks[1], (8,), 0.01),
        "w1": w(ks[2], (32, 2, 5, 5)),    "b1": w(ks[3], (32,), 0.01),
        "w2": w(ks[4], (8, 32, 3, 3)),    "b2": w(ks[5], (8,), 0.01),
        "w3": w(ks[6], (2, 8, 1, 1)),     "b3": w(ks[7], (2,), 0.01),
        "wr": w(ks[8], (n_out, 128)),     "br": w(ks[9], (n_out,), 0.01),
        "wi": w(ks[10], (n_out, 128)),    "bi": w(ks[11], (n_out,), 0.01),
    }

    r64 = {k: np.asarray(v, np.float64) for k, v in raw.items()}

    def conv_np(x, wgt, b, pad):            # x: (N,Ci,H,W)  wgt: (Co,Ci,kh,kw)
        N, Ci, H, W = x.shape
        Co, _, kh, kw = wgt.shape
        xp = np.pad(x, ((0, 0), (0, 0), (pad, pad), (pad, pad)))
        out = np.broadcast_to(b.reshape(1, Co, 1, 1),
                              (N, Co, H, W)).astype(np.float64)
        for ky in range(kh):
            for kx in range(kw):
                out = out + np.einsum("bcyx,oc->boyx",
                                      xp[:, :, ky:ky + H, kx:kx + W],
                                      wgt[:, :, ky, kx], optimize=True)
        return out

    # L1: Linear(16->8) + torch reshape(2,8,8) + Conv2d(2->32,5x5,p2) is one
    # affine map of the flattened (256,) input. Fold via Jacobian-by-basis.
    def stage1(fb):                          # fb: (N,16,16)
        h = fb @ r64["w_init"].T + r64["b_init"]            # (N,16,8)
        x0 = h.reshape(-1, 2, 8, 8)
        return conv_np(x0, r64["w1"], r64["b1"], 2)         # (N,32,8,8)

    bias1 = stage1(np.zeros((1, 16, 16)))                           # (1,32,8,8)
    jac1 = stage1(np.eye(256).reshape(256, 16, 16)) - bias1         # (256,32,8,8)
    w1f = jac1.reshape(256, 2048)
    b1f = bias1.reshape(1, 2048)

    # L2: Conv2d(32->8,3x3,p1) embedded as a dense (2048 -> 512) matrix.
    jac2 = conv_np(np.eye(2048).reshape(2048, 32, 8, 8),
                   r64["w2"], np.zeros(8), 1)                       # (2048,8,8,8)
    w2f = jac2.reshape(2048, 512)
    b2f = np.repeat(r64["b2"], 64).reshape(1, 512)

    # L3: Conv2d(8->2,1x1): per-pixel channel mix -> kron(w3^T, I_64).
    w3f = np.kron(r64["w3"][:, :, 0, 0].T, np.eye(64))              # (512,128)
    b3f = np.repeat(r64["b3"], 64).reshape(1, 128)

    # L4: merged real|imag heads on the NCHW-flattened activation, zero-padded
    # to a lane-dense (multiple of 128) output width.
    nout2 = 2 * n_out
    nout_pad = _round_up(nout2, 128)
    whf = np.zeros((128, nout_pad))
    whf[:, :n_out] = r64["wr"].T
    whf[:, n_out:nout2] = r64["wi"].T
    bhf = np.zeros((1, nout_pad))
    bhf[0, :n_out] = r64["br"]
    bhf[0, n_out:nout2] = r64["bi"]

    p = {k: jnp.asarray(v, jnp.float32) for k, v in {
        "w1": w1f, "b1": b1f, "w2": w2f, "b2": b2f,
        "w3": w3f, "b3": b3f, "wh": whf, "bh": bhf}.items()}
    return raw, p


# ----------------------------------------------------------------------------
# Pure-JAX reference (mirrors the PyTorch forward exactly, torch layouts).
# ----------------------------------------------------------------------------
def reference_forward(feedback, raw):
    B = feedback.shape[0]
    lrelu = lambda v: jnp.where(v >= 0, v, 0.01 * v)
    h = feedback @ raw["w_init"].T + raw["b_init"]        # (B, 16, 8)
    x = h.reshape(B, 2, 8, 8)

    def conv(x, wgt, b, pad):
        y = jax.lax.conv_general_dilated(
            x, wgt, window_strides=(1, 1), padding=[(pad, pad), (pad, pad)],
            dimension_numbers=("NCHW", "OIHW", "NCHW"))
        return y + b.reshape(1, -1, 1, 1)

    x = lrelu(conv(x, raw["w1"], raw["b1"], 2))
    x = lrelu(conv(x, raw["w2"], raw["b2"], 1))
    x = lrelu(conv(x, raw["w3"], raw["b3"], 0))
    xf = x.reshape(B, -1)
    return xf @ raw["wr"].T + raw["br"], xf @ raw["wi"].T + raw["bi"]


if __name__ == "__main__":
    antenna, rf_chain, feedback_bit = 8, 4, 64   # feedback_bit unused in forward
    n_out = antenna * rf_chain
    B = 2

    key = jax.random.PRNGKey(0)
    k_param, k_in, k_in2 = jax.random.split(key, 3)
    raw, params = init_params(k_param, antenna, rf_chain)
    feedback = jax.random.normal(k_in, (B, 16, 16), jnp.float32)

    analog_real, analog_imag = decoder_precoder_forward(feedback, params,
                                                        n_out=n_out)
    jax.block_until_ready((analog_real, analog_imag))

    assert analog_real.shape == (B, n_out)
    assert analog_imag.shape == (B, n_out)

    ar_ref, ai_ref = reference_forward(feedback, raw)
    # Margin covers TPU default-precision matmul (bf16-pass) differences between
    # the folded Pallas matmuls and the XLA conv reference.
    np.testing.assert_allclose(np.asarray(analog_real), np.asarray(ar_ref),
                               rtol=5e-3, atol=5e-3)
    np.testing.assert_allclose(np.asarray(analog_imag), np.asarray(ai_ref),
                               rtol=5e-3, atol=5e-3)

    # Exercise the batched multi-step grid path (TB=128, grid>1, padded batch).
    B2 = 200
    feedback2 = jax.random.normal(k_in2, (B2, 16, 16), jnp.float32)
    ar2, ai2 = decoder_precoder_forward(feedback2, params, n_out=n_out)
    jax.block_until_ready((ar2, ai2))
    ar2_ref, ai2_ref = reference_forward(feedback2, raw)
    np.testing.assert_allclose(np.asarray(ar2), np.asarray(ar2_ref),
                               rtol=5e-3, atol=5e-3)
    np.testing.assert_allclose(np.asarray(ai2), np.asarray(ai2_ref),
                               rtol=5e-3, atol=5e-3)

    print("KERNEL_OK")
</pallas_src>

<mosaic_0001>
module attributes {stable_mosaic.version = 11 : i64} {
  func.func @_fused_batched_kernel(%arg0: i32, %arg1: memref<8x256xf32, #tpu.memory_space<vmem>>, %arg2: memref<256x2048xf32, #tpu.memory_space<vmem>>, %arg3: memref<1x2048xf32, #tpu.memory_space<vmem>>, %arg4: memref<2048x512xf32, #tpu.memory_space<vmem>>, %arg5: memref<1x512xf32, #tpu.memory_space<vmem>>, %arg6: memref<512x128xf32, #tpu.memory_space<vmem>>, %arg7: memref<1x128xf32, #tpu.memory_space<vmem>>, %arg8: memref<128x128xf32, #tpu.memory_space<vmem>>, %arg9: memref<1x128xf32, #tpu.memory_space<vmem>>, %arg10: memref<8x128xf32, #tpu.memory_space<vmem>>) attributes {dimension_semantics = [#tpu.dimension_semantics<parallel>], iteration_bounds = array<i64: 1>, scalar_prefetch = 0 : i64, scratch_operands = 0 : i64, tpu.core_type = #tpu.core_type<tc>, window_params = [{transform_indices = @transform_0, window_bounds = array<i64: 8, 256>}, {pipeline_mode = #tpu.pipeline_mode<synchronous>, transform_indices = @transform_1, window_bounds = array<i64: 256, 2048>}, {pipeline_mode = #tpu.pipeline_mode<synchronous>, transform_indices = @transform_2, window_bounds = array<i64: 1, 2048>}, {pipeline_mode = #tpu.pipeline_mode<synchronous>, transform_indices = @transform_3, window_bounds = array<i64: 2048, 512>}, {pipeline_mode = #tpu.pipeline_mode<synchronous>, transform_indices = @transform_4, window_bounds = array<i64: 1, 512>}, {pipeline_mode = #tpu.pipeline_mode<synchronous>, transform_indices = @transform_5, window_bounds = array<i64: 512, 128>}, {pipeline_mode = #tpu.pipeline_mode<synchronous>, transform_indices = @transform_6, window_bounds = array<i64: 1, 128>}, {pipeline_mode = #tpu.pipeline_mode<synchronous>, transform_indices = @transform_7, window_bounds = array<i64: 128, 128>}, {pipeline_mode = #tpu.pipeline_mode<synchronous>, transform_indices = @transform_8, window_bounds = array<i64: 1, 128>}, {transform_indices = @transform_9, window_bounds = array<i64: 8, 128>}]} {
    %c0 = arith.constant 0 : index
    %c0_0 = arith.constant 0 : index
    %0 = vector.load %arg1[%c0, %c0_0] : memref<8x256xf32, #tpu.memory_space<vmem>>, vector<8x256xf32>
    %c0_1 = arith.constant 0 : index
    %c0_2 = arith.constant 0 : index
    %1 = vector.load %arg2[%c0_1, %c0_2] : memref<256x2048xf32, #tpu.memory_space<vmem>>, vector<256x2048xf32>
    %cst = arith.constant dense<0.000000e+00> : vector<8x2048xf32>
    %2 = tpu.matmul %0, %1, %cst {dimension_numbers = #tpu.dot_dimension_numbers<[1], [0], [0], [1], [0, 0, 1, 1], [], []>} : vector<8x256xf32>, vector<256x2048xf32>, vector<8x2048xf32> -> vector<8x2048xf32>
    %c0_3 = arith.constant 0 : index
    %c0_4 = arith.constant 0 : index
    %3 = vector.load %arg3[%c0_3, %c0_4] : memref<1x2048xf32, #tpu.memory_space<vmem>>, vector<1x2048xf32>
    %4 = vector.broadcast %3 : vector<1x2048xf32> to vector<8x2048xf32>
    %5 = arith.addf %2, %4 : vector<8x2048xf32>
    %cst_5 = arith.constant 0.000000e+00 : f32
    %6 = vector.broadcast %cst_5 : f32 to vector<8x2048xf32>
    %7 = arith.cmpf oge, %5, %6 : vector<8x2048xf32>
    %cst_6 = arith.constant 0.00999999977 : f32
    %8 = vector.broadcast %cst_6 : f32 to vector<8x2048xf32>
    %9 = arith.mulf %8, %5 : vector<8x2048xf32>
    %10 = arith.select %7, %5, %9 : vector<8x2048xi1>, vector<8x2048xf32>
    %c0_7 = arith.constant 0 : index
    %c0_8 = arith.constant 0 : index
    %11 = vector.load %arg4[%c0_7, %c0_8] : memref<2048x512xf32, #tpu.memory_space<vmem>>, vector<2048x512xf32>
    %cst_9 = arith.constant dense<0.000000e+00> : vector<8x512xf32>
    %12 = tpu.matmul %10, %11, %cst_9 {dimension_numbers = #tpu.dot_dimension_numbers<[1], [0], [0], [1], [0, 0, 1, 1], [], []>} : vector<8x2048xf32>, vector<2048x512xf32>, vector<8x512xf32> -> vector<8x512xf32>
    %c0_10 = arith.constant 0 : index
    %c0_11 = arith.constant 0 : index
    %13 = vector.load %arg5[%c0_10, %c0_11] : memref<1x512xf32, #tpu.memory_space<vmem>>, vector<1x512xf32>
    %14 = vector.broadcast %13 : vector<1x512xf32> to vector<8x512xf32>
    %15 = arith.addf %12, %14 : vector<8x512xf32>
    %cst_12 = arith.constant 0.000000e+00 : f32
    %16 = vector.broadcast %cst_12 : f32 to vector<8x512xf32>
    %17 = arith.cmpf oge, %15, %16 : vector<8x512xf32>
    %cst_13 = arith.constant 0.00999999977 : f32
    %18 = vector.broadcast %cst_13 : f32 to vector<8x512xf32>
    %19 = arith.mulf %18, %15 : vector<8x512xf32>
    %20 = arith.select %17, %15, %19 : vector<8x512xi1>, vector<8x512xf32>
    %c0_14 = arith.constant 0 : index
    %c0_15 = arith.constant 0 : index
    %21 = vector.load %arg6[%c0_14, %c0_15] : memref<512x128xf32, #tpu.memory_space<vmem>>, vector<512x128xf32>
    %cst_16 = arith.constant dense<0.000000e+00> : vector<8x128xf32>
    %22 = tpu.matmul %20, %21, %cst_16 {dimension_numbers = #tpu.dot_dimension_numbers<[1], [0], [0], [1], [0, 0, 1, 1], [], []>} : vector<8x512xf32>, vector<512x128xf32>, vector<8x128xf32> -> vector<8x128xf32>
    %c0_17 = arith.constant 0 : index
    %c0_18 = arith.constant 0 : index
    %23 = vector.load %arg7[%c0_17, %c0_18] : memref<1x128xf32, #tpu.memory_space<vmem>>, vector<1x128xf32>
    %24 = vector.broadcast %23 : vector<1x128xf32> to vector<8x128xf32>
    %25 = arith.addf %22, %24 : vector<8x128xf32>
    %cst_19 = arith.constant 0.000000e+00 : f32
    %26 = vector.broadcast %cst_19 : f32 to vector<8x128xf32>
    %27 = arith.cmpf oge, %25, %26 : vector<8x128xf32>
    %cst_20 = arith.constant 0.00999999977 : f32
    %28 = vector.broadcast %cst_20 : f32 to vector<8x128xf32>
    %29 = arith.mulf %28, %25 : vector<8x128xf32>
    %30 = arith.select %27, %25, %29 : vector<8x128xi1>, vector<8x128xf32>
    %c0_21 = arith.constant 0 : index
    %c0_22 = arith.constant 0 : index
    %31 = vector.load %arg8[%c0_21, %c0_22] : memref<128x128xf32, #tpu.memory_space<vmem>>, vector<128x128xf32>
    %cst_23 = arith.constant dense<0.000000e+00> : vector<8x128xf32>
    %32 = tpu.matmul %30, %31, %cst_23 {dimension_numbers = #tpu.dot_dimension_numbers<[1], [0], [0], [1], [0, 0, 1, 1], [], []>} : vector<8x128xf32>, vector<128x128xf32>, vector<8x128xf32> -> vector<8x128xf32>
    %c0_24 = arith.constant 0 : index
    %c0_25 = arith.constant 0 : index
    %33 = vector.load %arg9[%c0_24, %c0_25] : memref<1x128xf32, #tpu.memory_space<vmem>>, vector<1x128xf32>
    %34 = vector.broadcast %33 : vector<1x128xf32> to vector<8x128xf32>
    %35 = arith.addf %32, %34 : vector<8x128xf32>
    %c0_26 = arith.constant 0 : index
    %c0_27 = arith.constant 0 : index
    %36 = vector.load %arg10[%c0_26, %c0_27] : memref<8x128xf32, #tpu.memory_space<vmem>>, vector<8x128xf32>
    tpu.vector_store %arg10[%c0_26, %c0_27], %35 {strides = array<i32>} : memref<8x128xf32, #tpu.memory_space<vmem>>, vector<8x128xf32>,
    return
  }
  func.func @transform_0(%arg0: i32) -> (i32, i32) {
    %c0_i32 = arith.constant 0 : i32
    %c0_i32_0 = arith.constant 0 : i32
    return %arg0, %c0_i32 : i32, i32
  }
  func.func @transform_1(%arg0: i32) -> (i32, i32) {
    %c0_i32 = arith.constant 0 : i32
    %c0_i32_0 = arith.constant 0 : i32
    %c0_i32_1 = arith.constant 0 : i32
    return %c0_i32, %c0_i32_0 : i32, i32
  }
  func.func @transform_2(%arg0: i32) -> (i32, i32) {
    %c0_i32 = arith.constant 0 : i32
    %c0_i32_0 = arith.constant 0 : i32
    %c0_i32_1 = arith.constant 0 : i32
    return %c0_i32, %c0_i32_0 : i32, i32
  }
  func.func @transform_3(%arg0: i32) -> (i32, i32) {
    %c0_i32 = arith.constant 0 : i32
    %c0_i32_0 = arith.constant 0 : i32
    %c0_i32_1 = arith.constant 0 : i32
    return %c0_i32, %c0_i32_0 : i32, i32
  }
  func.func @transform_4(%arg0: i32) -> (i32, i32) {
    %c0_i32 = arith.constant 0 : i32
    %c0_i32_0 = arith.constant 0 : i32
    %c0_i32_1 = arith.constant 0 : i32
    return %c0_i32, %c0_i32_0 : i32, i32
  }
  func.func @transform_5(%arg0: i32) -> (i32, i32) {
    %c0_i32 = arith.constant 0 : i32
    %c0_i32_0 = arith.constant 0 : i32
    %c0_i32_1 = arith.constant 0 : i32
    return %c0_i32, %c0_i32_0 : i32, i32
  }
  func.func @transform_6(%arg0: i32) -> (i32, i32) {
    %c0_i32 = arith.constant 0 : i32
    %c0_i32_0 = arith.constant 0 : i32
    %c0_i32_1 = arith.constant 0 : i32
    return %c0_i32, %c0_i32_0 : i32, i32
  }
  func.func @transform_7(%arg0: i32) -> (i32, i32) {
    %c0_i32 = arith.constant 0 : i32
    %c0_i32_0 = arith.constant 0 : i32
    %c0_i32_1 = arith.constant 0 : i32
    return %c0_i32, %c0_i32_0 : i32, i32
  }
  func.func @transform_8(%arg0: i32) -> (i32, i32) {
    %c0_i32 = arith.constant 0 : i32
    %c0_i32_0 = arith.constant 0 : i32
    %c0_i32_1 = arith.constant 0 : i32
    return %c0_i32, %c0_i32_0 : i32, i32
  }
  func.func @transform_9(%arg0: i32) -> (i32, i32) {
    %c0_i32 = arith.constant 0 : i32
    %c0_i32_0 = arith.constant 0 : i32
    return %arg0, %c0_i32 : i32, i32
  }
}

</mosaic_0001>

<bundles_post_ra>
// kernel: decoder_precoder_forward.1
= control target key start
LH: loop header
LB: loop body
LE: loop exit
PB: predicated region body
PF: predicated region fallthrough
CT: control target
= control target key end

     0   :  { %14 = vsyncpa [#allocation3], 0  ;;  %s4505_s0 = inlined_call_operand.vmem [shape: f32[8,256], index: 0, kind: input, shape index: {}]   ;;  %s4506_s1 = inlined_call_operand.hbm [shape: f32[256,2048], index: 1, kind: input, shape index: {}]   ;;  %s4507_s2 = inlined_call_operand.hbm [shape: f32[1,2048], index: 2, kind: input, shape index: {}]   ;;  %s4508_s3 = inlined_call_operand.hbm [shape: f32[2048,512], index: 3, kind: input, shape index: {}]   ;;  %s4509_s4 = inlined_call_operand.hbm [shape: f32[1,512], index: 4, kind: input, shape index: {}]   ;;  %s4510_s5 = inlined_call_operand.hbm [shape: f32[512,128], index: 5, kind: input, shape index: {}]   ;;  %s4511_s6 = inlined_call_operand.hbm [shape: f32[1,128], index: 6, kind: input, shape index: {}]   ;;  %s4512_s7 = inlined_call_operand.hbm [shape: f32[128,128], index: 7, kind: input, shape index: {}]   ;;  %s4513_s8 = inlined_call_operand.hbm [shape: f32[1,128], index: 8, kind: input, shape index: {}]   ;;  %s4514_s9 = inlined_call_operand.vmem [shape: f32[8,128], index: 9, kind: output, shape index: {}]  }
   0x1   :  { %15 = vsyncpa [#allocation5], 0 }
   0x2   :  { %16 = vsyncpa [#allocation8], 0 }
   0x3   :  { %17 = vsyncpa [#allocation11], 0  ;;  %s39_s11 = sshll.u32 %s4507_s2, 4  ;;  %s40_s11 = int_to_ptr.hbm [resolvable:$true] %s39_s11 }
   0x4   :  { %18 = vsyncpa [#allocation14], 0  ;;  %s4133_s12 = smov [#allocation4]   ;;  %s63_s16 = sshll.u32 %s4509_s4, 4  ;;  %s64_s16 = int_to_ptr.hbm [resolvable:$true] %s63_s16 }
   0x5   :  { %s41_s13 = sshll.u32 %s4133_s12, 4  ;;  %s4134_s17 = smov [#allocation7]   ;;  %s42_s13 = int_to_ptr.vmem [resolvable:$true] %s41_s13 }
   0x6   :  { %44 = dma.hbm_to_vmem [thread:$0]  %s40_s11, 256, %s42_s13, [#allocation5]  }
   0x7   :  { %s65_s18 = sshll.u32 %s4134_s17, 4  ;;  %s87_s21 = sshll.u32 %s4511_s6, 4  ;;  %s66_s18 = int_to_ptr.vmem [resolvable:$true] %s65_s18  ;;  %s88_s21 = int_to_ptr.hbm [resolvable:$true] %s87_s21 }
   0x8   :  { %68 = dma.hbm_to_vmem [thread:$0]  %s64_s16, 64, %s66_s18, [#allocation8]  }
   0x9   :  { %s25_s23 = sshll.u32 %s4506_s1, 4  ;;  %s4135_s24 = smov [#allocation10]   ;;  %s26_s23 = int_to_ptr.hbm [resolvable:$true] %s25_s23 }
   0xa   :  { %s89_s25 = sshll.u32 %s4135_s24, 4  ;;  %s4136_s4 = smov [#allocation2]   ;;  %s90_s25 = int_to_ptr.vmem [resolvable:$true] %s89_s25 }
   0xb   :  { %92 = dma.hbm_to_vmem [thread:$0]  %s88_s21, 16, %s90_s25, [#allocation11]  }
   0xc   :  { %s27_s26 = sshll.u32 %s4136_s4, 4  ;;  %s4137_s27 = smov 2048   ;;  %s28_s26 = int_to_ptr.vmem [resolvable:$true] %s27_s26 }
   0xd   :  { %s4138_s28 = smov 128   ;;  %s49_s30 = sshll.u32 %s4508_s3, 4  ;;  %s50_s30 = int_to_ptr.hbm [resolvable:$true] %s49_s30 }
   0xe   :  { %33 = dma.hbm_to_vmem [thread:$0]  %s26_s23, 65536, %s28_s26, [#allocation3], %s4137_s27, %s4137_s27, %s4138_s28  }
   0xf   :  { %s4139_s10 = smov [#allocation6]   ;;  %s73_s13 = sshll.u32 %s4510_s5, 4  ;;  %s74_s13 = int_to_ptr.hbm [resolvable:$true] %s73_s13 }
  0x10   :  { %s51_s11 = sshll.u32 %s4139_s10, 4  ;;  %s4140_s14 = smov 512   ;;  %s52_s11 = int_to_ptr.vmem [resolvable:$true] %s51_s11 }
  0x11   :  { %s4141_s15 = smov 32   ;;  %s4142_s16 = smov [#allocation9]  }
  0x12   :  { %57 = dma.hbm_to_vmem [thread:$0]  %s50_s30, 131072, %s52_s11, [#allocation5], %s4140_s14, %s4140_s14, %s4141_s15  }
  0x13   :  { %s75_s17 = sshll.u32 %s4142_s16, 4  ;;  %s97_s20 = sshll.u32 %s4512_s7, 4  ;;  %s76_s17 = int_to_ptr.vmem [resolvable:$true] %s75_s17  ;;  %s98_s20 = int_to_ptr.hbm [resolvable:$true] %s97_s20 }
  0x14   :  { %s4143_s3 = smov 8   ;;  %s4144_s21 = smov [#allocation12]  }
  0x15   :  { %81 = dma.hbm_to_vmem [thread:$0]  %s74_s13, 8192, %s76_s17, [#allocation8], %s4138_s28, %s4138_s28, %s4143_s3  }
  0x16   :  { %s99_s2 = sshll.u32 %s4144_s21, 4  ;;  %s111_s5 = sshll.u32 %s4513_s8, 4  ;;  %s100_s2 = int_to_ptr.vmem [resolvable:$true] %s99_s2  ;;  %s112_s5 = int_to_ptr.hbm [resolvable:$true] %s111_s5 }
  0x17   :  { %105 = dma.hbm_to_vmem [thread:$0]  %s98_s20, 2048, %s100_s2, [#allocation11], %s4138_s28, %s4138_s28, %s4143_s3  }
  0x18   :  { %s4145_s24 = smov [#allocation13]  }
  0x19   :  { %s113_s25 = sshll.u32 %s4145_s24, 4  ;;  %s114_s25 = int_to_ptr.vmem [resolvable:$true] %s113_s25 }
  0x1a   :  { %116 = dma.hbm_to_vmem [thread:$0]  %s112_s5, 16, %s114_s25, [#allocation14]  }
  0x1b   :  { %4123 = dma.done.wait [#allocation3], 65536  }
  0x1c   :  { %4124 = vsyncadd [#allocation3], 4294901760 }
  0x1d   :  { %4125 = dma.done.wait [#allocation5], 131328  }
  0x1e   :  { %4126 = vsyncadd [#allocation5], 4294835968 }
  0x1f   :  { %4127 = dma.done.wait [#allocation8], 8256  }
  0x20   :  { %4128 = vsyncadd [#allocation8], 4294959040 }
  0x21   :  { %4129 = dma.done.wait [#allocation11], 2064  }
  0x22   :  { %4130 = vsyncadd [#allocation11], 4294965232 }
  0x23   :  { %4131 = dma.done.wait [#allocation14], 16  }
  0x24   :  { %4132 = vsyncadd [#allocation14], 4294967280  ;;  %v391_v0 = vld [vmem:[#allocation2 + $0x780] sm:$0xff]  ;;  %v392_v2 = vld [vmem:[#allocation2 + $0x788] sm:$0xff] }
  0x25   :  { %v647_v1 = vld [vmem:[#allocation2 + $0xf80] sm:$0xff]  ;;  %699 = vmatpush.msra.mxu0 %v391_v0  ;;  %v648_v3 = vld [vmem:[#allocation2 + $0xf88] sm:$0xff]  ;;  %739 = vmatpush.msra.mxu2 %v392_v2  ;;  %v393_v0 = vld [vmem:[#allocation2 + $0x790] sm:$0xff] }
  0x26   :  { %719 = vmatpush.msra.mxu1 %v647_v1  ;;  %v375_v4 = vld [vmem:[#allocation2 + $0x700] sm:$0xff]  ;;  %759 = vmatpush.msra.mxu3 %v648_v3  ;;  %v376_v6 = vld [vmem:[#allocation2 + $0x708] sm:$0xff]  ;;  %v649_v1 = vld [vmem:[#allocation2 + $0xf90] sm:$0xff] }
  0x27   :  { %v631_v5 = vld [vmem:[#allocation2 + $0xf00] sm:$0xff]  ;;  %v632_v7 = vld [vmem:[#allocation2 + $0xf08] sm:$0xff]  ;;  %700 = vmatpush.msra.mxu0 %v375_v4  ;;  %740 = vmatpush.msra.mxu2 %v376_v6  ;;  %v394_v2 = vld [vmem:[#allocation2 + $0x798] sm:$0xff] }
  0x28   :  { %v359_v8 = vld [vmem:[#allocation2 + $0x680] sm:$0xff]  ;;  %720 = vmatpush.msra.mxu1 %v631_v5  ;;  %v360_v10 = vld [vmem:[#allocation2 + $0x688] sm:$0xff]  ;;  %760 = vmatpush.msra.mxu3 %v632_v7  ;;  %v650_v3 = vld [vmem:[#allocation2 + $0xf98] sm:$0xff] }
  0x29   :  { %v615_v9 = vld [vmem:[#allocation2 + $0xe80] sm:$0xff]  ;;  %v616_v11 = vld [vmem:[#allocation2 + $0xe88] sm:$0xff]  ;;  %701 = vmatpush.msra.mxu0 %v359_v8  ;;  %741 = vmatpush.msra.mxu2 %v360_v10  ;;  %v377_v4 = vld [vmem:[#allocation2 + $0x710] sm:$0xff] }
  0x2a   :  { %v343_v12 = vld [vmem:[#allocation2 + $0x600] sm:$0xff]  ;;  %721 = vmatpush.msra.mxu1 %v615_v9  ;;  %v344_v14 = vld [vmem:[#allocation2 + $0x608] sm:$0xff]  ;;  %761 = vmatpush.msra.mxu3 %v616_v11  ;;  %v633_v5 = vld [vmem:[#allocation2 + $0xf10] sm:$0xff] }
  0x2b   :  { %v599_v13 = vld [vmem:[#allocation2 + $0xe00] sm:$0xff]  ;;  %v600_v15 = vld [vmem:[#allocation2 + $0xe08] sm:$0xff]  ;;  %702 = vmatpush.msra.mxu0 %v343_v12  ;;  %742 = vmatpush.msra.mxu2 %v344_v14  ;;  %v378_v6 = vld [vmem:[#allocation2 + $0x718] sm:$0xff] }
  0x2c   :  { %v327_v16 = vld [vmem:[#allocation2 + $0x580] sm:$0xff]  ;;  %722 = vmatpush.msra.mxu1 %v599_v13  ;;  %v328_v18 = vld [vmem:[#allocation2 + $0x588] sm:$0xff]  ;;  %762 = vmatpush.msra.mxu3 %v600_v15  ;;  %v634_v7 = vld [vmem:[#allocation2 + $0xf18] sm:$0xff] }
  0x2d   :  { %v583_v17 = vld [vmem:[#allocation2 + $0xd80] sm:$0xff]  ;;  %v584_v19 = vld [vmem:[#allocation2 + $0xd88] sm:$0xff]  ;;  %703 = vmatpush.msra.mxu0 %v327_v16  ;;  %743 = vmatpush.msra.mxu2 %v328_v18  ;;  %v361_v8 = vld [vmem:[#allocation2 + $0x690] sm:$0xff] }
  0x2e   :  { %v311_v20 = vld [vmem:[#allocation2 + $0x500] sm:$0xff]  ;;  %723 = vmatpush.msra.mxu1 %v583_v17  ;;  %v312_v22 = vld [vmem:[#allocation2 + $0x508] sm:$0xff]  ;;  %763 = vmatpush.msra.mxu3 %v584_v19  ;;  %v617_v9 = vld [vmem:[#allocation2 + $0xe90] sm:$0xff] }
  0x2f   :  { %v567_v21 = vld [vmem:[#allocation2 + $0xd00] sm:$0xff]  ;;  %v568_v23 = vld [vmem:[#allocation2 + $0xd08] sm:$0xff]  ;;  %704 = vmatpush.msra.mxu0 %v311_v20  ;;  %744 = vmatpush.msra.mxu2 %v312_v22  ;;  %v362_v10 = vld [vmem:[#allocation2 + $0x698] sm:$0xff] }
  0x30   :  { %v295_v24 = vld [vmem:[#allocation2 + $0x480] sm:$0xff]  ;;  %724 = vmatpush.msra.mxu1 %v567_v21  ;;  %v296_v26 = vld [vmem:[#allocation2 + $0x488] sm:$0xff]  ;;  %764 = vmatpush.msra.mxu3 %v568_v23  ;;  %v618_v11 = vld [vmem:[#allocation2 + $0xe98] sm:$0xff] }
  0x31   :  { %v551_v25 = vld [vmem:[#allocation2 + $0xc80] sm:$0xff]  ;;  %v552_v27 = vld [vmem:[#allocation2 + $0xc88] sm:$0xff]  ;;  %705 = vmatpush.msra.mxu0 %v295_v24  ;;  %745 = vmatpush.msra.mxu2 %v296_v26  ;;  %v345_v12 = vld [vmem:[#allocation2 + $0x610] sm:$0xff] }
  0x32   :  { %v279_v28 = vld [vmem:[#allocation2 + $0x400] sm:$0xff]  ;;  %725 = vmatpush.msra.mxu1 %v551_v25  ;;  %v280_v30 = vld [vmem:[#allocation2 + $0x408] sm:$0xff]  ;;  %765 = vmatpush.msra.mxu3 %v552_v27  ;;  %v601_v13 = vld [vmem:[#allocation2 + $0xe10] sm:$0xff] }
  0x33   :  { %v535_v29 = vld [vmem:[#allocation2 + $0xc00] sm:$0xff]  ;;  %v536_v31 = vld [vmem:[#allocation2 + $0xc08] sm:$0xff]  ;;  %706 = vmatpush.msra.mxu0 %v279_v28  ;;  %746 = vmatpush.msra.mxu2 %v280_v30  ;;  %v346_v14 = vld [vmem:[#allocation2 + $0x618] sm:$0xff] }
  0x34   :  { %v263_v32 = vld [vmem:[#allocation2 + $0x380] sm:$0xff]  ;;  %726 = vmatpush.msra.mxu1 %v535_v29  ;;  %v264_v34 = vld [vmem:[#allocation2 + $0x388] sm:$0xff]  ;;  %766 = vmatpush.msra.mxu3 %v536_v31  ;;  %v602_v15 = vld [vmem:[#allocation2 + $0xe18] sm:$0xff] }
  0x35   :  { %v519_v33 = vld [vmem:[#allocation2 + $0xb80] sm:$0xff]  ;;  %v520_v35 = vld [vmem:[#allocation2 + $0xb88] sm:$0xff]  ;;  %707 = vmatpush.msra.mxu0 %v263_v32  ;;  %747 = vmatpush.msra.mxu2 %v264_v34  ;;  %v329_v16 = vld [vmem:[#allocation2 + $0x590] sm:$0xff] }
  0x36   :  { %v247_v36 = vld [vmem:[#allocation2 + $0x300] sm:$0xff]  ;;  %727 = vmatpush.msra.mxu1 %v519_v33  ;;  %v248_v38 = vld [vmem:[#allocation2 + $0x308] sm:$0xff]  ;;  %767 = vmatpush.msra.mxu3 %v520_v35  ;;  %v585_v17 = vld [vmem:[#allocation2 + $0xd90] sm:$0xff] }
  0x37   :  { %v503_v37 = vld [vmem:[#allocation2 + $0xb00] sm:$0xff]  ;;  %v504_v39 = vld [vmem:[#allocation2 + $0xb08] sm:$0xff]  ;;  %708 = vmatpush.msra.mxu0 %v247_v36  ;;  %748 = vmatpush.msra.mxu2 %v248_v38  ;;  %v330_v18 = vld [vmem:[#allocation2 + $0x598] sm:$0xff] }
  0x38   :  { %v231_v40 = vld [vmem:[#allocation2 + $0x280] sm:$0xff]  ;;  %728 = vmatpush.msra.mxu1 %v503_v37  ;;  %v232_v42 = vld [vmem:[#allocation2 + $0x288] sm:$0xff]  ;;  %768 = vmatpush.msra.mxu3 %v504_v39  ;;  %v586_v19 = vld [vmem:[#allocation2 + $0xd98] sm:$0xff] }
  0x39   :  { %v487_v41 = vld [vmem:[#allocation2 + $0xa80] sm:$0xff]  ;;  %v488_v43 = vld [vmem:[#allocation2 + $0xa88] sm:$0xff]  ;;  %709 = vmatpush.msra.mxu0 %v231_v40  ;;  %749 = vmatpush.msra.mxu2 %v232_v42  ;;  %v313_v20 = vld [vmem:[#allocation2 + $0x510] sm:$0xff] }
  0x3a   :  { %v215_v44 = vld [vmem:[#allocation2 + $0x200] sm:$0xff]  ;;  %729 = vmatpush.msra.mxu1 %v487_v41  ;;  %v216_v46 = vld [vmem:[#allocation2 + $0x208] sm:$0xff]  ;;  %769 = vmatpush.msra.mxu3 %v488_v43  ;;  %v569_v21 = vld [vmem:[#allocation2 + $0xd10] sm:$0xff] }
  0x3b   :  { %v471_v45 = vld [vmem:[#allocation2 + $0xa00] sm:$0xff]  ;;  %v472_v47 = vld [vmem:[#allocation2 + $0xa08] sm:$0xff]  ;;  %710 = vmatpush.msra.mxu0 %v215_v44  ;;  %750 = vmatpush.msra.mxu2 %v216_v46  ;;  %v314_v22 = vld [vmem:[#allocation2 + $0x518] sm:$0xff] }
  0x3c   :  { %v199_v48 = vld [vmem:[#allocation2 + $0x180] sm:$0xff]  ;;  %730 = vmatpush.msra.mxu1 %v471_v45  ;;  %v200_v50 = vld [vmem:[#allocation2 + $0x188] sm:$0xff]  ;;  %770 = vmatpush.msra.mxu3 %v472_v47  ;;  %v570_v23 = vld [vmem:[#allocation2 + $0xd18] sm:$0xff] }
  0x3d   :  { %v455_v49 = vld [vmem:[#allocation2 + $0x980] sm:$0xff]  ;;  %v456_v51 = vld [vmem:[#allocation2 + $0x988] sm:$0xff]  ;;  %711 = vmatpush.msra.mxu0 %v199_v48  ;;  %751 = vmatpush.msra.mxu2 %v200_v50  ;;  %v297_v24 = vld [vmem:[#allocation2 + $0x490] sm:$0xff] }
  0x3e   :  { %v183_v52 = vld [vmem:[#allocation2 + $0x100] sm:$0xff]  ;;  %731 = vmatpush.msra.mxu1 %v455_v49  ;;  %v184_v54 = vld [vmem:[#allocation2 + $0x108] sm:$0xff]  ;;  %771 = vmatpush.msra.mxu3 %v456_v51  ;;  %v553_v25 = vld [vmem:[#allocation2 + $0xc90] sm:$0xff] }
  0x3f   :  { %v439_v53 = vld [vmem:[#allocation2 + $0x900] sm:$0xff]  ;;  %v440_v55 = vld [vmem:[#allocation2 + $0x908] sm:$0xff]  ;;  %712 = vmatpush.msra.mxu0 %v183_v52  ;;  %752 = vmatpush.msra.mxu2 %v184_v54  ;;  %v298_v26 = vld [vmem:[#allocation2 + $0x498] sm:$0xff] }
  0x40   :  { %v167_v56 = vld [vmem:[#allocation2 + $0x80] sm:$0xff]  ;;  %732 = vmatpush.msra.mxu1 %v439_v53  ;;  %v168_v58 = vld [vmem:[#allocation2 + $0x88] sm:$0xff]  ;;  %772 = vmatpush.msra.mxu3 %v440_v55  ;;  %v554_v27 = vld [vmem:[#allocation2 + $0xc98] sm:$0xff] }
  0x41   :  { %v423_v57 = vld [vmem:[#allocation2 + $0x880] sm:$0xff]  ;;  %v424_v59 = vld [vmem:[#allocation2 + $0x888] sm:$0xff]  ;;  %713 = vmatpush.msra.mxu0 %v167_v56  ;;  %753 = vmatpush.msra.mxu2 %v168_v58  ;;  %v281_v28 = vld [vmem:[#allocation2 + $0x410] sm:$0xff] }
  0x42   :  { %v151_v60 = vld [vmem:[#allocation2] sm:$0xff]  ;;  %733 = vmatpush.msra.mxu1 %v423_v57  ;;  %v152_v62 = vld [vmem:[#allocation2 + $0x8] sm:$0xff]  ;;  %773 = vmatpush.msra.mxu3 %v424_v59  ;;  %v537_v29 = vld [vmem:[#allocation2 + $0xc10] sm:$0xff] }
  0x43   :  { %v407_v61 = vld [vmem:[#allocation2 + $0x800] sm:$0xff]  ;;  %v408_v63 = vld [vmem:[#allocation2 + $0x808] sm:$0xff]  ;;  %714 = vmatpush.msra.mxu0 %v151_v60  ;;  %754 = vmatpush.msra.mxu2 %v152_v62  ;;  %v282_v30 = vld [vmem:[#allocation2 + $0x418] sm:$0xff] }
  0x44   :  { %734 = vmatpush.msra.mxu1 %v407_v61  ;;  %774 = vmatpush.msra.mxu3 %v408_v63  ;;  %v538_v31 = vld [vmem:[#allocation2 + $0xc18] sm:$0xff]  ;;  %v265_v32 = vld [vmem:[#allocation2 + $0x390] sm:$0xff]  ;;  %v4223_v60 = vld [vmem:[%s4505_s0] sm:$0xff] }
  0x45   :  { %779 = vmatpush.msrb.mxu0 %v393_v0  ;;  %819 = vmatpush.msrb.mxu2 %v394_v2  ;;  %v521_v33 = vld [vmem:[#allocation2 + $0xb90] sm:$0xff]  ;;  %v266_v34 = vld [vmem:[#allocation2 + $0x398] sm:$0xff]  ;;  %v395_v2 = vld [vmem:[#allocation2 + $0x7a0] sm:$0xff] }
  0x46   :  { %799 = vmatpush.msrb.mxu1 %v649_v1  ;;  %839 = vmatpush.msrb.mxu3 %v650_v3  ;;  %v522_v35 = vld [vmem:[#allocation2 + $0xb98] sm:$0xff]  ;;  %v249_v36 = vld [vmem:[#allocation2 + $0x310] sm:$0xff]  ;;  %v4229_v1 = vld [vmem:[%s4505_s0 + $0x8] sm:$0xff] }
  0x47   :  { %780 = vmatpush.msrb.mxu0 %v377_v4  ;;  %820 = vmatpush.msrb.mxu2 %v378_v6  ;;  %v505_v37 = vld [vmem:[#allocation2 + $0xb10] sm:$0xff]  ;;  %v250_v38 = vld [vmem:[#allocation2 + $0x318] sm:$0xff]  ;;  %v651_v3 = vld [vmem:[#allocation2 + $0xfa0] sm:$0xff] }
  0x48   :  { %800 = vmatpush.msrb.mxu1 %v633_v5  ;;  %840 = vmatpush.msrb.mxu3 %v634_v7  ;;  %v506_v39 = vld [vmem:[#allocation2 + $0xb18] sm:$0xff]  ;;  %v233_v40 = vld [vmem:[#allocation2 + $0x290] sm:$0xff]  ;;  %v396_v4 = vld [vmem:[#allocation2 + $0x7a8] sm:$0xff] }
  0x49   :  { %781 = vmatpush.msrb.mxu0 %v361_v8  ;;  %821 = vmatpush.msrb.mxu2 %v362_v10  ;;  %v489_v41 = vld [vmem:[#allocation2 + $0xa90] sm:$0xff]  ;;  %v234_v42 = vld [vmem:[#allocation2 + $0x298] sm:$0xff]  ;;  %v652_v5 = vld [vmem:[#allocation2 + $0xfa8] sm:$0xff] }
  0x4a   :  { %801 = vmatpush.msrb.mxu1 %v617_v9  ;;  %841 = vmatpush.msrb.mxu3 %v618_v11  ;;  %v490_v43 = vld [vmem:[#allocation2 + $0xa98] sm:$0xff]  ;;  %v217_v44 = vld [vmem:[#allocation2 + $0x210] sm:$0xff]  ;;  %v379_v6 = vld [vmem:[#allocation2 + $0x720] sm:$0xff] }
  0x4b   :  { %782 = vmatpush.msrb.mxu0 %v345_v12  ;;  %822 = vmatpush.msrb.mxu2 %v346_v14  ;;  %v473_v45 = vld [vmem:[#allocation2 + $0xa10] sm:$0xff]  ;;  %v218_v46 = vld [vmem:[#allocation2 + $0x218] sm:$0xff]  ;;  %v635_v7 = vld [vmem:[#allocation2 + $0xf20] sm:$0xff] }
  0x4c   :  { %802 = vmatpush.msrb.mxu1 %v601_v13  ;;  %842 = vmatpush.msrb.mxu3 %v602_v15  ;;  %v474_v47 = vld [vmem:[#allocation2 + $0xa18] sm:$0xff]  ;;  %v201_v48 = vld [vmem:[#allocation2 + $0x190] sm:$0xff]  ;;  %v380_v8 = vld [vmem:[#allocation2 + $0x728] sm:$0xff] }
  0x4d   :  { %783 = vmatpush.msrb.mxu0 %v329_v16  ;;  %823 = vmatpush.msrb.mxu2 %v330_v18  ;;  %v457_v49 = vld [vmem:[#allocation2 + $0x990] sm:$0xff]  ;;  %v202_v50 = vld [vmem:[#allocation2 + $0x198] sm:$0xff]  ;;  %v636_v9 = vld [vmem:[#allocation2 + $0xf28] sm:$0xff] }
  0x4e   :  { %803 = vmatpush.msrb.mxu1 %v585_v17  ;;  %843 = vmatpush.msrb.mxu3 %v586_v19  ;;  %v458_v51 = vld [vmem:[#allocation2 + $0x998] sm:$0xff]  ;;  %v185_v52 = vld [vmem:[#allocation2 + $0x110] sm:$0xff]  ;;  %v363_v10 = vld [vmem:[#allocation2 + $0x6a0] sm:$0xff] }
  0x4f   :  { %784 = vmatpush.msrb.mxu0 %v313_v20  ;;  %824 = vmatpush.msrb.mxu2 %v314_v22  ;;  %v441_v53 = vld [vmem:[#allocation2 + $0x910] sm:$0xff]  ;;  %v186_v54 = vld [vmem:[#allocation2 + $0x118] sm:$0xff]  ;;  %v619_v11 = vld [vmem:[#allocation2 + $0xea0] sm:$0xff] }
  0x50   :  { %804 = vmatpush.msrb.mxu1 %v569_v21  ;;  %844 = vmatpush.msrb.mxu3 %v570_v23  ;;  %v442_v55 = vld [vmem:[#allocation2 + $0x918] sm:$0xff]  ;;  %v169_v56 = vld [vmem:[#allocation2 + $0x90] sm:$0xff]  ;;  %v364_v12 = vld [vmem:[#allocation2 + $0x6a8] sm:$0xff] }
  0x51   :  { %785 = vmatpush.msrb.mxu0 %v297_v24  ;;  %825 = vmatpush.msrb.mxu2 %v298_v26  ;;  %v425_v57 = vld [vmem:[#allocation2 + $0x890] sm:$0xff]  ;;  %v170_v58 = vld [vmem:[#allocation2 + $0x98] sm:$0xff]  ;;  %v620_v13 = vld [vmem:[#allocation2 + $0xea8] sm:$0xff] }
  0x52   :  { %805 = vmatpush.msrb.mxu1 %v553_v25  ;;  %845 = vmatpush.msrb.mxu3 %v554_v27  ;;  %v426_v59 = vld [vmem:[#allocation2 + $0x898] sm:$0xff]  ;;  %v153_v61 = vld [vmem:[#allocation2 + $0x10] sm:$0xff]  ;;  %v347_v14 = vld [vmem:[#allocation2 + $0x620] sm:$0xff] }
  0x53   :  { %786 = vmatpush.msrb.mxu0 %v281_v28  ;;  %826 = vmatpush.msrb.mxu2 %v282_v30  ;;  %v409_v62 = vld [vmem:[#allocation2 + $0x810] sm:$0xff]  ;;  %v154_v63 = vld [vmem:[#allocation2 + $0x18] sm:$0xff]  ;;  %v603_v15 = vld [vmem:[#allocation2 + $0xe20] sm:$0xff] }
  0x54   :  { %806 = vmatpush.msrb.mxu1 %v537_v29  ;;  %846 = vmatpush.msrb.mxu3 %v538_v31  ;;  %v410_v0 = vld [vmem:[#allocation2 + $0x818] sm:$0xff]  ;;  %v348_v16 = vld [vmem:[#allocation2 + $0x628] sm:$0xff]  ;;  %v331_v18 = vld [vmem:[#allocation2 + $0x5a0] sm:$0xff] }
  0x55   :  { %787 = vmatpush.msrb.mxu0 %v265_v32  ;;  %827 = vmatpush.msrb.mxu2 %v266_v34  ;;  %v604_v17 = vld [vmem:[#allocation2 + $0xe28] sm:$0xff]  ;;  %v587_v19 = vld [vmem:[#allocation2 + $0xda0] sm:$0xff] }
  0x56   :  { %807 = vmatpush.msrb.mxu1 %v521_v33  ;;  %847 = vmatpush.msrb.mxu3 %v522_v35  ;;  %v332_v20 = vld [vmem:[#allocation2 + $0x5a8] sm:$0xff]  ;;  %v315_v22 = vld [vmem:[#allocation2 + $0x520] sm:$0xff] }
  0x57   :  { %788 = vmatpush.msrb.mxu0 %v249_v36  ;;  %828 = vmatpush.msrb.mxu2 %v250_v38  ;;  %v588_v21 = vld [vmem:[#allocation2 + $0xda8] sm:$0xff]  ;;  %v571_v23 = vld [vmem:[#allocation2 + $0xd20] sm:$0xff] }
  0x58   :  { %808 = vmatpush.msrb.mxu1 %v505_v37  ;;  %848 = vmatpush.msrb.mxu3 %v506_v39  ;;  %v316_v24 = vld [vmem:[#allocation2 + $0x528] sm:$0xff]  ;;  %v299_v26 = vld [vmem:[#allocation2 + $0x4a0] sm:$0xff] }
  0x59   :  { %789 = vmatpush.msrb.mxu0 %v233_v40  ;;  %829 = vmatpush.msrb.mxu2 %v234_v42  ;;  %v572_v25 = vld [vmem:[#allocation2 + $0xd28] sm:$0xff]  ;;  %v555_v27 = vld [vmem:[#allocation2 + $0xca0] sm:$0xff] }
  0x5a   :  { %809 = vmatpush.msrb.mxu1 %v489_v41  ;;  %849 = vmatpush.msrb.mxu3 %v490_v43  ;;  %v300_v28 = vld [vmem:[#allocation2 + $0x4a8] sm:$0xff]  ;;  %v283_v30 = vld [vmem:[#allocation2 + $0x420] sm:$0xff] }
  0x5b   :  { %790 = vmatpush.msrb.mxu0 %v217_v44  ;;  %830 = vmatpush.msrb.mxu2 %v218_v46  ;;  %v556_v29 = vld [vmem:[#allocation2 + $0xca8] sm:$0xff]  ;;  %v539_v31 = vld [vmem:[#allocation2 + $0xc20] sm:$0xff] }
  0x5c   :  { %810 = vmatpush.msrb.mxu1 %v473_v45  ;;  %850 = vmatpush.msrb.mxu3 %v474_v47  ;;  %v284_v32 = vld [vmem:[#allocation2 + $0x428] sm:$0xff]  ;;  %v267_v34 = vld [vmem:[#allocation2 + $0x3a0] sm:$0xff] }
  0x5d   :  { %791 = vmatpush.msrb.mxu0 %v201_v48  ;;  %831 = vmatpush.msrb.mxu2 %v202_v50  ;;  %v540_v33 = vld [vmem:[#allocation2 + $0xc28] sm:$0xff]  ;;  %v523_v35 = vld [vmem:[#allocation2 + $0xba0] sm:$0xff] }
  0x5e   :  { %811 = vmatpush.msrb.mxu1 %v457_v49  ;;  %851 = vmatpush.msrb.mxu3 %v458_v51  ;;  %v268_v36 = vld [vmem:[#allocation2 + $0x3a8] sm:$0xff]  ;;  %v251_v38 = vld [vmem:[#allocation2 + $0x320] sm:$0xff] }
  0x5f   :  { %792 = vmatpush.msrb.mxu0 %v185_v52  ;;  %832 = vmatpush.msrb.mxu2 %v186_v54  ;;  %v524_v37 = vld [vmem:[#allocation2 + $0xba8] sm:$0xff]  ;;  %v507_v39 = vld [vmem:[#allocation2 + $0xb20] sm:$0xff] }
  0x60   :  { %812 = vmatpush.msrb.mxu1 %v441_v53  ;;  %852 = vmatpush.msrb.mxu3 %v442_v55  ;;  %v252_v40 = vld [vmem:[#allocation2 + $0x328] sm:$0xff]  ;;  %v235_v42 = vld [vmem:[#allocation2 + $0x2a0] sm:$0xff] }
  0x61   :  { %793 = vmatpush.msrb.mxu0 %v169_v56  ;;  %833 = vmatpush.msrb.mxu2 %v170_v58  ;;  %v508_v41 = vld [vmem:[#allocation2 + $0xb28] sm:$0xff]  ;;  %v491_v43 = vld [vmem:[#allocation2 + $0xaa0] sm:$0xff] }
  0x62   :  { %813 = vmatpush.msrb.mxu1 %v425_v57  ;;  %853 = vmatpush.msrb.mxu3 %v426_v59  ;;  %v236_v44 = vld [vmem:[#allocation2 + $0x2a8] sm:$0xff]  ;;  %v219_v46 = vld [vmem:[#allocation2 + $0x220] sm:$0xff] }
  0x63   :  { %755 = vmatmul.f32.vlgmr.msra.gmra.mxu2 %v4223_v60  ;;  %794 = vmatpush.msrb.mxu0 %v153_v61  ;;  %v492_v45 = vld [vmem:[#allocation2 + $0xaa8] sm:$0xff]  ;;  %v475_v47 = vld [vmem:[#allocation2 + $0xa20] sm:$0xff] }
  0x64   :  { %814 = vmatpush.msrb.mxu1 %v409_v62  ;;  %834 = vmatpush.msrb.mxu2 %v154_v63  ;;  %v220_v48 = vld [vmem:[#allocation2 + $0x228] sm:$0xff]  ;;  %v203_v50 = vld [vmem:[#allocation2 + $0x1a0] sm:$0xff] }
  0x65   :  { %854 = vmatpush.msrb.mxu3 %v410_v0  ;;  %715 = vmatmul.f32.vlgmr.msra.gmra.mxu0 %v4223_v60  ;;  %v476_v49 = vld [vmem:[#allocation2 + $0xa28] sm:$0xff]  ;;  %v459_v51 = vld [vmem:[#allocation2 + $0x9a0] sm:$0xff] }
  0x66   :  { %735 = vmatmul.f32.vlgmr.msra.gmra.mxu1 %v4229_v1  ;;  %775 = vmatmul.f32.vlgmr.msra.gmra.mxu3 %v4229_v1  ;;  %v204_v52 = vld [vmem:[#allocation2 + $0x1a8] sm:$0xff]  ;;  %v187_v54 = vld [vmem:[#allocation2 + $0x120] sm:$0xff] }
  0x67   :  { %859 = vmatpush.msra.mxu0 %v395_v2  ;;  %879 = vmatpush.msra.mxu1 %v651_v3  ;;  %v460_v53 = vld [vmem:[#allocation2 + $0x9a8] sm:$0xff]  ;;  %v443_v55 = vld [vmem:[#allocation2 + $0x920] sm:$0xff] }
  0x68   :  { %899 = vmatpush.msra.mxu2 %v396_v4  ;;  %919 = vmatpush.msra.mxu3 %v652_v5  ;;  %v188_v56 = vld [vmem:[#allocation2 + $0x128] sm:$0xff]  ;;  %v171_v58 = vld [vmem:[#allocation2 + $0xa0] sm:$0xff]  ;;  %v397_v4 = vld [vmem:[#allocation2 + $0x7b0] sm:$0xff] }
  0x69   :  { %860 = vmatpush.msra.mxu0 %v379_v6  ;;  %880 = vmatpush.msra.mxu1 %v635_v7  ;;  %v444_v57 = vld [vmem:[#allocation2 + $0x928] sm:$0xff]  ;;  %v427_v59 = vld [vmem:[#allocation2 + $0x8a0] sm:$0xff]  ;;  %v653_v5 = vld [vmem:[#allocation2 + $0xfb0] sm:$0xff] }
  0x6a   :  { %900 = vmatpush.msra.mxu2 %v380_v8  ;;  %920 = vmatpush.msra.mxu3 %v636_v9  ;;  %v172_v61 = vld [vmem:[#allocation2 + $0xa8] sm:$0xff]  ;;  %v155_v63 = vld [vmem:[#allocation2 + $0x20] sm:$0xff]  ;;  %v398_v6 = vld [vmem:[#allocation2 + $0x7b8] sm:$0xff] }
  0x6b   :  { %861 = vmatpush.msra.mxu0 %v363_v10  ;;  %881 = vmatpush.msra.mxu1 %v619_v11  ;;  %v428_v62 = vld [vmem:[#allocation2 + $0x8a8] sm:$0xff]  ;;  %v411_v0 = vld [vmem:[#allocation2 + $0x820] sm:$0xff]  ;;  %v654_v7 = vld [vmem:[#allocation2 + $0xfb8] sm:$0xff] }
  0x6c   :  { %901 = vmatpush.msra.mxu2 %v364_v12  ;;  %921 = vmatpush.msra.mxu3 %v620_v13  ;;  %v156_v2 = vld [vmem:[#allocation2 + $0x28] sm:$0xff]  ;;  %v381_v8 = vld [vmem:[#allocation2 + $0x730] sm:$0xff]  ;;  %v382_v10 = vld [vmem:[#allocation2 + $0x738] sm:$0xff] }
  0x6d   :  { %862 = vmatpush.msra.mxu0 %v347_v14  ;;  %882 = vmatpush.msra.mxu1 %v603_v15  ;;  %v412_v3 = vld [vmem:[#allocation2 + $0x828] sm:$0xff]  ;;  %v637_v9 = vld [vmem:[#allocation2 + $0xf30] sm:$0xff]  ;;  %v638_v11 = vld [vmem:[#allocation2 + $0xf38] sm:$0xff] }
  0x6e   :  { %902 = vmatpush.msra.mxu2 %v348_v16  ;;  %922 = vmatpush.msra.mxu3 %v604_v17  ;;  %v365_v12 = vld [vmem:[#allocation2 + $0x6b0] sm:$0xff]  ;;  %v366_v14 = vld [vmem:[#allocation2 + $0x6b8] sm:$0xff] }
  0x6f   :  { %863 = vmatpush.msra.mxu0 %v331_v18  ;;  %883 = vmatpush.msra.mxu1 %v587_v19  ;;  %v621_v13 = vld [vmem:[#allocation2 + $0xeb0] sm:$0xff]  ;;  %v622_v15 = vld [vmem:[#allocation2 + $0xeb8] sm:$0xff] }
  0x70   :  { %903 = vmatpush.msra.mxu2 %v332_v20  ;;  %923 = vmatpush.msra.mxu3 %v588_v21  ;;  %v349_v16 = vld [vmem:[#allocation2 + $0x630] sm:$0xff]  ;;  %v350_v18 = vld [vmem:[#allocation2 + $0x638] sm:$0xff] }
  0x71   :  { %864 = vmatpush.msra.mxu0 %v315_v22  ;;  %884 = vmatpush.msra.mxu1 %v571_v23  ;;  %v605_v17 = vld [vmem:[#allocation2 + $0xe30] sm:$0xff]  ;;  %v606_v19 = vld [vmem:[#allocation2 + $0xe38] sm:$0xff] }
  0x72   :  { %904 = vmatpush.msra.mxu2 %v316_v24  ;;  %924 = vmatpush.msra.mxu3 %v572_v25  ;;  %v333_v20 = vld [vmem:[#allocation2 + $0x5b0] sm:$0xff]  ;;  %v334_v22 = vld [vmem:[#allocation2 + $0x5b8] sm:$0xff] }
  0x73   :  { %865 = vmatpush.msra.mxu0 %v299_v26  ;;  %885 = vmatpush.msra.mxu1 %v555_v27  ;;  %v589_v21 = vld [vmem:[#allocation2 + $0xdb0] sm:$0xff]  ;;  %v590_v23 = vld [vmem:[#allocation2 + $0xdb8] sm:$0xff] }
  0x74   :  { %905 = vmatpush.msra.mxu2 %v300_v28  ;;  %925 = vmatpush.msra.mxu3 %v556_v29  ;;  %v317_v24 = vld [vmem:[#allocation2 + $0x530] sm:$0xff]  ;;  %v318_v26 = vld [vmem:[#allocation2 + $0x538] sm:$0xff] }
  0x75   :  { %866 = vmatpush.msra.mxu0 %v283_v30  ;;  %886 = vmatpush.msra.mxu1 %v539_v31  ;;  %v573_v25 = vld [vmem:[#allocation2 + $0xd30] sm:$0xff]  ;;  %v574_v27 = vld [vmem:[#allocation2 + $0xd38] sm:$0xff] }
  0x76   :  { %906 = vmatpush.msra.mxu2 %v284_v32  ;;  %926 = vmatpush.msra.mxu3 %v540_v33  ;;  %v301_v28 = vld [vmem:[#allocation2 + $0x4b0] sm:$0xff]  ;;  %v302_v30 = vld [vmem:[#allocation2 + $0x4b8] sm:$0xff] }
  0x77   :  { %867 = vmatpush.msra.mxu0 %v267_v34  ;;  %887 = vmatpush.msra.mxu1 %v523_v35  ;;  %v557_v29 = vld [vmem:[#allocation2 + $0xcb0] sm:$0xff]  ;;  %v558_v31 = vld [vmem:[#allocation2 + $0xcb8] sm:$0xff] }
  0x78   :  { %907 = vmatpush.msra.mxu2 %v268_v36  ;;  %927 = vmatpush.msra.mxu3 %v524_v37  ;;  %v285_v32 = vld [vmem:[#allocation2 + $0x430] sm:$0xff]  ;;  %v286_v34 = vld [vmem:[#allocation2 + $0x438] sm:$0xff] }
  0x79   :  { %868 = vmatpush.msra.mxu0 %v251_v38  ;;  %888 = vmatpush.msra.mxu1 %v507_v39  ;;  %v541_v33 = vld [vmem:[#allocation2 + $0xc30] sm:$0xff]  ;;  %v542_v35 = vld [vmem:[#allocation2 + $0xc38] sm:$0xff] }
  0x7a   :  { %908 = vmatpush.msra.mxu2 %v252_v40  ;;  %928 = vmatpush.msra.mxu3 %v508_v41  ;;  %v269_v36 = vld [vmem:[#allocation2 + $0x3b0] sm:$0xff]  ;;  %v270_v38 = vld [vmem:[#allocation2 + $0x3b8] sm:$0xff] }
  0x7b   :  { %869 = vmatpush.msra.mxu0 %v235_v42  ;;  %889 = vmatpush.msra.mxu1 %v491_v43  ;;  %v525_v37 = vld [vmem:[#allocation2 + $0xbb0] sm:$0xff]  ;;  %v526_v39 = vld [vmem:[#allocation2 + $0xbb8] sm:$0xff] }
  0x7c   :  { %909 = vmatpush.msra.mxu2 %v236_v44  ;;  %929 = vmatpush.msra.mxu3 %v492_v45  ;;  %v253_v40 = vld [vmem:[#allocation2 + $0x330] sm:$0xff]  ;;  %v254_v42 = vld [vmem:[#allocation2 + $0x338] sm:$0xff] }
  0x7d   :  { %870 = vmatpush.msra.mxu0 %v219_v46  ;;  %890 = vmatpush.msra.mxu1 %v475_v47  ;;  %v509_v41 = vld [vmem:[#allocation2 + $0xb30] sm:$0xff]  ;;  %v510_v43 = vld [vmem:[#allocation2 + $0xb38] sm:$0xff] }
  0x7e   :  { %910 = vmatpush.msra.mxu2 %v220_v48  ;;  %930 = vmatpush.msra.mxu3 %v476_v49  ;;  %v237_v44 = vld [vmem:[#allocation2 + $0x2b0] sm:$0xff]  ;;  %v238_v46 = vld [vmem:[#allocation2 + $0x2b8] sm:$0xff] }
  0x7f   :  { %871 = vmatpush.msra.mxu0 %v203_v50  ;;  %891 = vmatpush.msra.mxu1 %v459_v51  ;;  %v493_v45 = vld [vmem:[#allocation2 + $0xab0] sm:$0xff]  ;;  %v494_v47 = vld [vmem:[#allocation2 + $0xab8] sm:$0xff] }
  0x80   :  { %911 = vmatpush.msra.mxu2 %v204_v52  ;;  %931 = vmatpush.msra.mxu3 %v460_v53  ;;  %v221_v48 = vld [vmem:[#allocation2 + $0x230] sm:$0xff]  ;;  %v222_v50 = vld [vmem:[#allocation2 + $0x238] sm:$0xff] }
  0x81   :  { %872 = vmatpush.msra.mxu0 %v187_v54  ;;  %892 = vmatpush.msra.mxu1 %v443_v55  ;;  %v477_v49 = vld [vmem:[#allocation2 + $0xa30] sm:$0xff]  ;;  %v478_v51 = vld [vmem:[#allocation2 + $0xa38] sm:$0xff] }
  0x82   :  { %912 = vmatpush.msra.mxu2 %v188_v56  ;;  %932 = vmatpush.msra.mxu3 %v444_v57  ;;  %v205_v52 = vld [vmem:[#allocation2 + $0x1b0] sm:$0xff]  ;;  %v206_v54 = vld [vmem:[#allocation2 + $0x1b8] sm:$0xff] }
  0x83   :  { %873 = vmatpush.msra.mxu0 %v171_v58  ;;  %893 = vmatpush.msra.mxu1 %v427_v59  ;;  %v461_v53 = vld [vmem:[#allocation2 + $0x9b0] sm:$0xff]  ;;  %v462_v55 = vld [vmem:[#allocation2 + $0x9b8] sm:$0xff] }
  0x84   :  { %913 = vmatpush.msra.mxu2 %v172_v61  ;;  %933 = vmatpush.msra.mxu3 %v428_v62  ;;  %v189_v56 = vld [vmem:[#allocation2 + $0x130] sm:$0xff]  ;;  %v190_v58 = vld [vmem:[#allocation2 + $0x138] sm:$0xff] }
  0x85   :  { %835 = vmatmul.f32.vlgmr.msrb.gmra.mxu2 %v4223_v60  ;;  %874 = vmatpush.msra.mxu0 %v155_v63  ;;  %v445_v57 = vld [vmem:[#allocation2 + $0x930] sm:$0xff]  ;;  %v446_v59 = vld [vmem:[#allocation2 + $0x938] sm:$0xff] }
  0x86   :  { %894 = vmatpush.msra.mxu1 %v411_v0  ;;  %914 = vmatpush.msra.mxu2 %v156_v2  ;;  %v173_v61 = vld [vmem:[#allocation2 + $0xb0] sm:$0xff]  ;;  %v174_v63 = vld [vmem:[#allocation2 + $0xb8] sm:$0xff] }
  0x87   :  { %934 = vmatpush.msra.mxu3 %v412_v3  ;;  %795 = vmatmul.f32.vlgmr.msrb.gmra.mxu0 %v4223_v60  ;;  %v429_v62 = vld [vmem:[#allocation2 + $0x8b0] sm:$0xff]  ;;  %v430_v0 = vld [vmem:[#allocation2 + $0x8b8] sm:$0xff] }
  0x88   :  { %815 = vmatmul.f32.vlgmr.msrb.gmra.mxu1 %v4229_v1  ;;  %855 = vmatmul.f32.vlgmr.msrb.gmra.mxu3 %v4229_v1  ;;  %v157_v2 = vld [vmem:[#allocation2 + $0x30] sm:$0xff] }
  0x89   :  { %939 = vmatpush.msrb.mxu0 %v397_v4  ;;  %959 = vmatpush.msrb.mxu1 %v653_v5  ;;  %v413_v3 = vld [vmem:[#allocation2 + $0x830] sm:$0xff]  ;;  %v158_v4 = vld [vmem:[#allocation2 + $0x38] sm:$0xff] }
  0x8a   :  { %979 = vmatpush.msrb.mxu2 %v398_v6  ;;  %999 = vmatpush.msrb.mxu3 %v654_v7  ;;  %v414_v5 = vld [vmem:[#allocation2 + $0x838] sm:$0xff]  ;;  %v399_v6 = vld [vmem:[#allocation2 + $0x7c0] sm:$0xff] }
  0x8b   :  { %940 = vmatpush.msrb.mxu0 %v381_v8  ;;  %960 = vmatpush.msrb.mxu1 %v637_v9  ;;  %v655_v7 = vld [vmem:[#allocation2 + $0xfc0] sm:$0xff]  ;;  %v400_v8 = vld [vmem:[#allocation2 + $0x7c8] sm:$0xff] }
  0x8c   :  { %980 = vmatpush.msrb.mxu2 %v382_v10  ;;  %1000 = vmatpush.msrb.mxu3 %v638_v11  ;;  %v656_v9 = vld [vmem:[#allocation2 + $0xfc8] sm:$0xff]  ;;  %v383_v10 = vld [vmem:[#allocation2 + $0x740] sm:$0xff] }
  0x8d   :  { %941 = vmatpush.msrb.mxu0 %v365_v12  ;;  %961 = vmatpush.msrb.mxu1 %v621_v13  ;;  %v639_v11 = vld [vmem:[#allocation2 + $0xf40] sm:$0xff]  ;;  %v384_v12 = vld [vmem:[#allocation2 + $0x748] sm:$0xff] }
  0x8e   :  { %981 = vmatpush.msrb.mxu2 %v366_v14  ;;  %1001 = vmatpush.msrb.mxu3 %v622_v15  ;;  %v640_v13 = vld [vmem:[#allocation2 + $0xf48] sm:$0xff]  ;;  %v367_v14 = vld [vmem:[#allocation2 + $0x6c0] sm:$0xff] }
  0x8f   :  { %942 = vmatpush.msrb.mxu0 %v349_v16  ;;  %962 = vmatpush.msrb.mxu1 %v605_v17  ;;  %v623_v15 = vld [vmem:[#allocation2 + $0xec0] sm:$0xff]  ;;  %v368_v16 = vld [vmem:[#allocation2 + $0x6c8] sm:$0xff] }
  0x90   :  { %982 = vmatpush.msrb.mxu2 %v350_v18  ;;  %1002 = vmatpush.msrb.mxu3 %v606_v19  ;;  %v624_v17 = vld [vmem:[#allocation2 + $0xec8] sm:$0xff]  ;;  %v351_v18 = vld [vmem:[#allocation2 + $0x640] sm:$0xff] }
  0x91   :  { %943 = vmatpush.msrb.mxu0 %v333_v20  ;;  %963 = vmatpush.msrb.mxu1 %v589_v21  ;;  %v607_v19 = vld [vmem:[#allocation2 + $0xe40] sm:$0xff]  ;;  %v352_v20 = vld [vmem:[#allocation2 + $0x648] sm:$0xff] }
  0x92   :  { %983 = vmatpush.msrb.mxu2 %v334_v22  ;;  %1003 = vmatpush.msrb.mxu3 %v590_v23  ;;  %v608_v21 = vld [vmem:[#allocation2 + $0xe48] sm:$0xff]  ;;  %v335_v22 = vld [vmem:[#allocation2 + $0x5c0] sm:$0xff] }
  0x93   :  { %944 = vmatpush.msrb.mxu0 %v317_v24  ;;  %964 = vmatpush.msrb.mxu1 %v573_v25  ;;  %v591_v23 = vld [vmem:[#allocation2 + $0xdc0] sm:$0xff]  ;;  %v336_v24 = vld [vmem:[#allocation2 + $0x5c8] sm:$0xff] }
  0x94   :  { %984 = vmatpush.msrb.mxu2 %v318_v26  ;;  %1004 = vmatpush.msrb.mxu3 %v574_v27  ;;  %v592_v25 = vld [vmem:[#allocation2 + $0xdc8] sm:$0xff]  ;;  %v319_v26 = vld [vmem:[#allocation2 + $0x540] sm:$0xff] }
  0x95   :  { %945 = vmatpush.msrb.mxu0 %v301_v28  ;;  %965 = vmatpush.msrb.mxu1 %v557_v29  ;;  %v575_v27 = vld [vmem:[#allocation2 + $0xd40] sm:$0xff]  ;;  %v320_v28 = vld [vmem:[#allocation2 + $0x548] sm:$0xff] }
  0x96   :  { %985 = vmatpush.msrb.mxu2 %v302_v30  ;;  %1005 = vmatpush.msrb.mxu3 %v558_v31  ;;  %v576_v29 = vld [vmem:[#allocation2 + $0xd48] sm:$0xff]  ;;  %v303_v30 = vld [vmem:[#allocation2 + $0x4c0] sm:$0xff] }
  0x97   :  { %946 = vmatpush.msrb.mxu0 %v285_v32  ;;  %966 = vmatpush.msrb.mxu1 %v541_v33  ;;  %v559_v31 = vld [vmem:[#allocation2 + $0xcc0] sm:$0xff]  ;;  %v304_v32 = vld [vmem:[#allocation2 + $0x4c8] sm:$0xff] }
  0x98   :  { %986 = vmatpush.msrb.mxu2 %v286_v34  ;;  %1006 = vmatpush.msrb.mxu3 %v542_v35  ;;  %v560_v33 = vld [vmem:[#allocation2 + $0xcc8] sm:$0xff]  ;;  %v287_v34 = vld [vmem:[#allocation2 + $0x440] sm:$0xff] }
  0x99   :  { %947 = vmatpush.msrb.mxu0 %v269_v36  ;;  %967 = vmatpush.msrb.mxu1 %v525_v37  ;;  %v543_v35 = vld [vmem:[#allocation2 + $0xc40] sm:$0xff]  ;;  %v288_v36 = vld [vmem:[#allocation2 + $0x448] sm:$0xff] }
  0x9a   :  { %987 = vmatpush.msrb.mxu2 %v270_v38  ;;  %1007 = vmatpush.msrb.mxu3 %v526_v39  ;;  %v544_v37 = vld [vmem:[#allocation2 + $0xc48] sm:$0xff]  ;;  %v271_v38 = vld [vmem:[#allocation2 + $0x3c0] sm:$0xff] }
  0x9b   :  { %948 = vmatpush.msrb.mxu0 %v253_v40  ;;  %968 = vmatpush.msrb.mxu1 %v509_v41  ;;  %v527_v39 = vld [vmem:[#allocation2 + $0xbc0] sm:$0xff]  ;;  %v272_v40 = vld [vmem:[#allocation2 + $0x3c8] sm:$0xff] }
  0x9c   :  { %988 = vmatpush.msrb.mxu2 %v254_v42  ;;  %1008 = vmatpush.msrb.mxu3 %v510_v43  ;;  %v528_v41 = vld [vmem:[#allocation2 + $0xbc8] sm:$0xff]  ;;  %v255_v42 = vld [vmem:[#allocation2 + $0x340] sm:$0xff] }
  0x9d   :  { %949 = vmatpush.msrb.mxu0 %v237_v44  ;;  %969 = vmatpush.msrb.mxu1 %v493_v45  ;;  %v511_v43 = vld [vmem:[#allocation2 + $0xb40] sm:$0xff]  ;;  %v256_v44 = vld [vmem:[#allocation2 + $0x348] sm:$0xff] }
  0x9e   :  { %989 = vmatpush.msrb.mxu2 %v238_v46  ;;  %1009 = vmatpush.msrb.mxu3 %v494_v47  ;;  %v512_v45 = vld [vmem:[#allocation2 + $0xb48] sm:$0xff]  ;;  %v239_v46 = vld [vmem:[#allocation2 + $0x2c0] sm:$0xff] }
  0x9f   :  { %950 = vmatpush.msrb.mxu0 %v221_v48  ;;  %970 = vmatpush.msrb.mxu1 %v477_v49  ;;  %v495_v47 = vld [vmem:[#allocation2 + $0xac0] sm:$0xff]  ;;  %v240_v48 = vld [vmem:[#allocation2 + $0x2c8] sm:$0xff] }
  0xa0   :  { %990 = vmatpush.msrb.mxu2 %v222_v50  ;;  %1010 = vmatpush.msrb.mxu3 %v478_v51  ;;  %v496_v49 = vld [vmem:[#allocation2 + $0xac8] sm:$0xff]  ;;  %v223_v50 = vld [vmem:[#allocation2 + $0x240] sm:$0xff] }
  0xa1   :  { %951 = vmatpush.msrb.mxu0 %v205_v52  ;;  %971 = vmatpush.msrb.mxu1 %v461_v53  ;;  %v479_v51 = vld [vmem:[#allocation2 + $0xa40] sm:$0xff]  ;;  %v224_v52 = vld [vmem:[#allocation2 + $0x248] sm:$0xff] }
  0xa2   :  { %991 = vmatpush.msrb.mxu2 %v206_v54  ;;  %1011 = vmatpush.msrb.mxu3 %v462_v55  ;;  %v480_v53 = vld [vmem:[#allocation2 + $0xa48] sm:$0xff]  ;;  %v207_v54 = vld [vmem:[#allocation2 + $0x1c0] sm:$0xff] }
  0xa3   :  { %952 = vmatpush.msrb.mxu0 %v189_v56  ;;  %972 = vmatpush.msrb.mxu1 %v445_v57  ;;  %v463_v55 = vld [vmem:[#allocation2 + $0x9c0] sm:$0xff]  ;;  %v208_v56 = vld [vmem:[#allocation2 + $0x1c8] sm:$0xff] }
  0xa4   :  { %992 = vmatpush.msrb.mxu2 %v190_v58  ;;  %1012 = vmatpush.msrb.mxu3 %v446_v59  ;;  %v464_v57 = vld [vmem:[#allocation2 + $0x9c8] sm:$0xff]  ;;  %v191_v58 = vld [vmem:[#allocation2 + $0x140] sm:$0xff] }
  0xa5   :  { %953 = vmatpush.msrb.mxu0 %v173_v61  ;;  %973 = vmatpush.msrb.mxu1 %v429_v62  ;;  %v447_v59 = vld [vmem:[#allocation2 + $0x940] sm:$0xff]  ;;  %v192_v61 = vld [vmem:[#allocation2 + $0x148] sm:$0xff] }
  0xa6   :  { %993 = vmatpush.msrb.mxu2 %v174_v63  ;;  %1013 = vmatpush.msrb.mxu3 %v430_v0  ;;  %v448_v62 = vld [vmem:[#allocation2 + $0x948] sm:$0xff]  ;;  %v175_v63 = vld [vmem:[#allocation2 + $0xc0] sm:$0xff] }
  0xa7   :  { %915 = vmatmul.f32.vlgmr.msra.gmra.mxu2 %v4223_v60  ;;  %954 = vmatpush.msrb.mxu0 %v157_v2  ;;  %v431_v0 = vld [vmem:[#allocation2 + $0x8c0] sm:$0xff]  ;;  %v176_v2 = vld [vmem:[#allocation2 + $0xc8] sm:$0xff] }
  0xa8   :  { %974 = vmatpush.msrb.mxu1 %v413_v3  ;;  %994 = vmatpush.msrb.mxu2 %v158_v4  ;;  %v432_v3 = vld [vmem:[#allocation2 + $0x8c8] sm:$0xff]  ;;  %v159_v4 = vld [vmem:[#allocation2 + $0x40] sm:$0xff] }
  0xa9   :  { %1014 = vmatpush.msrb.mxu3 %v414_v5  ;;  %875 = vmatmul.f32.vlgmr.msra.gmra.mxu0 %v4223_v60  ;;  %v415_v5 = vld [vmem:[#allocation2 + $0x840] sm:$0xff] }
  0xaa   :  { %895 = vmatmul.f32.vlgmr.msra.gmra.mxu1 %v4229_v1  ;;  %935 = vmatmul.f32.vlgmr.msra.gmra.mxu3 %v4229_v1 }
  0xab   :  { %1019 = vmatpush.msra.mxu0 %v399_v6  ;;  %1039 = vmatpush.msra.mxu1 %v655_v7  ;;  %v160_v6 = vld [vmem:[#allocation2 + $0x48] sm:$0xff] }
  0xac   :  { %1059 = vmatpush.msra.mxu2 %v400_v8  ;;  %1079 = vmatpush.msra.mxu3 %v656_v9  ;;  %v416_v7 = vld [vmem:[#allocation2 + $0x848] sm:$0xff]  ;;  %v401_v8 = vld [vmem:[#allocation2 + $0x7d0] sm:$0xff] }
  0xad   :  { %1020 = vmatpush.msra.mxu0 %v383_v10  ;;  %1040 = vmatpush.msra.mxu1 %v639_v11  ;;  %v657_v9 = vld [vmem:[#allocation2 + $0xfd0] sm:$0xff]  ;;  %v402_v10 = vld [vmem:[#allocation2 + $0x7d8] sm:$0xff] }
  0xae   :  { %1060 = vmatpush.msra.mxu2 %v384_v12  ;;  %1080 = vmatpush.msra.mxu3 %v640_v13  ;;  %v658_v11 = vld [vmem:[#allocation2 + $0xfd8] sm:$0xff]  ;;  %v385_v12 = vld [vmem:[#allocation2 + $0x750] sm:$0xff] }
  0xaf   :  { %1021 = vmatpush.msra.mxu0 %v367_v14  ;;  %1041 = vmatpush.msra.mxu1 %v623_v15  ;;  %v641_v13 = vld [vmem:[#allocation2 + $0xf50] sm:$0xff]  ;;  %v386_v14 = vld [vmem:[#allocation2 + $0x758] sm:$0xff] }
  0xb0   :  { %1061 = vmatpush.msra.mxu2 %v368_v16  ;;  %1081 = vmatpush.msra.mxu3 %v624_v17  ;;  %v642_v15 = vld [vmem:[#allocation2 + $0xf58] sm:$0xff]  ;;  %v369_v16 = vld [vmem:[#allocation2 + $0x6d0] sm:$0xff] }
  0xb1   :  { %1022 = vmatpush.msra.mxu0 %v351_v18  ;;  %1042 = vmatpush.msra.mxu1 %v607_v19  ;;  %v625_v17 = vld [vmem:[#allocation2 + $0xed0] sm:$0xff]  ;;  %v370_v18 = vld [vmem:[#allocation2 + $0x6d8] sm:$0xff] }
  0xb2   :  { %1062 = vmatpush.msra.mxu2 %v352_v20  ;;  %1082 = vmatpush.msra.mxu3 %v608_v21  ;;  %v353_v19 = vld [vmem:[#allocation2 + $0x650] sm:$0xff]  ;;  %v610_v21 = vld [vmem:[#allocation2 + $0xe58] sm:$0xff] }
  0xb3   :  { %1023 = vmatpush.msra.mxu0 %v335_v22  ;;  %1043 = vmatpush.msra.mxu1 %v591_v23  ;;  %v609_v20 = vld [vmem:[#allocation2 + $0xe50] sm:$0xff] }
  0xb4   :  { %1063 = vmatpush.msra.mxu2 %v336_v24  ;;  %1083 = vmatpush.msra.mxu3 %v592_v25  ;;  %v337_v22 = vld [vmem:[#allocation2 + $0x5d0] sm:$0xff]  ;;  %v338_v24 = vld [vmem:[#allocation2 + $0x5d8] sm:$0xff] }
  0xb5   :  { %1024 = vmatpush.msra.mxu0 %v319_v26  ;;  %1044 = vmatpush.msra.mxu1 %v575_v27  ;;  %v593_v23 = vld [vmem:[#allocation2 + $0xdd0] sm:$0xff]  ;;  %v594_v25 = vld [vmem:[#allocation2 + $0xdd8] sm:$0xff] }
  0xb6   :  { %1064 = vmatpush.msra.mxu2 %v320_v28  ;;  %1084 = vmatpush.msra.mxu3 %v576_v29  ;;  %v321_v26 = vld [vmem:[#allocation2 + $0x550] sm:$0xff]  ;;  %v322_v28 = vld [vmem:[#allocation2 + $0x558] sm:$0xff] }
  0xb7   :  { %1025 = vmatpush.msra.mxu0 %v303_v30  ;;  %1045 = vmatpush.msra.mxu1 %v559_v31  ;;  %v577_v27 = vld [vmem:[#allocation2 + $0xd50] sm:$0xff]  ;;  %v578_v29 = vld [vmem:[#allocation2 + $0xd58] sm:$0xff] }
  0xb8   :  { %1065 = vmatpush.msra.mxu2 %v304_v32  ;;  %1085 = vmatpush.msra.mxu3 %v560_v33  ;;  %v305_v30 = vld [vmem:[#allocation2 + $0x4d0] sm:$0xff]  ;;  %v306_v32 = vld [vmem:[#allocation2 + $0x4d8] sm:$0xff] }
  0xb9   :  { %1026 = vmatpush.msra.mxu0 %v287_v34  ;;  %1046 = vmatpush.msra.mxu1 %v543_v35  ;;  %v561_v31 = vld [vmem:[#allocation2 + $0xcd0] sm:$0xff]  ;;  %v562_v33 = vld [vmem:[#allocation2 + $0xcd8] sm:$0xff] }
  0xba   :  { %1066 = vmatpush.msra.mxu2 %v288_v36  ;;  %1086 = vmatpush.msra.mxu3 %v544_v37  ;;  %v289_v34 = vld [vmem:[#allocation2 + $0x450] sm:$0xff]  ;;  %v290_v36 = vld [vmem:[#allocation2 + $0x458] sm:$0xff] }
  0xbb   :  { %1027 = vmatpush.msra.mxu0 %v271_v38  ;;  %1047 = vmatpush.msra.mxu1 %v527_v39  ;;  %v545_v35 = vld [vmem:[#allocation2 + $0xc50] sm:$0xff]  ;;  %v546_v37 = vld [vmem:[#allocation2 + $0xc58] sm:$0xff] }
  0xbc   :  { %1067 = vmatpush.msra.mxu2 %v272_v40  ;;  %1087 = vmatpush.msra.mxu3 %v528_v41  ;;  %v273_v38 = vld [vmem:[#allocation2 + $0x3d0] sm:$0xff]  ;;  %v274_v40 = vld [vmem:[#allocation2 + $0x3d8] sm:$0xff] }
  0xbd   :  { %1028 = vmatpush.msra.mxu0 %v255_v42  ;;  %1048 = vmatpush.msra.mxu1 %v511_v43  ;;  %v529_v39 = vld [vmem:[#allocation2 + $0xbd0] sm:$0xff]  ;;  %v530_v41 = vld [vmem:[#allocation2 + $0xbd8] sm:$0xff] }
  0xbe   :  { %1068 = vmatpush.msra.mxu2 %v256_v44  ;;  %1088 = vmatpush.msra.mxu3 %v512_v45  ;;  %v257_v42 = vld [vmem:[#allocation2 + $0x350] sm:$0xff]  ;;  %v258_v44 = vld [vmem:[#allocation2 + $0x358] sm:$0xff] }
  0xbf   :  { %1029 = vmatpush.msra.mxu0 %v239_v46  ;;  %1049 = vmatpush.msra.mxu1 %v495_v47  ;;  %v513_v43 = vld [vmem:[#allocation2 + $0xb50] sm:$0xff]  ;;  %v514_v45 = vld [vmem:[#allocation2 + $0xb58] sm:$0xff] }
  0xc0   :  { %1069 = vmatpush.msra.mxu2 %v240_v48  ;;  %1089 = vmatpush.msra.mxu3 %v496_v49  ;;  %v241_v46 = vld [vmem:[#allocation2 + $0x2d0] sm:$0xff]  ;;  %v242_v48 = vld [vmem:[#allocation2 + $0x2d8] sm:$0xff] }
  0xc1   :  { %1030 = vmatpush.msra.mxu0 %v223_v50  ;;  %1050 = vmatpush.msra.mxu1 %v479_v51  ;;  %v497_v47 = vld [vmem:[#allocation2 + $0xad0] sm:$0xff]  ;;  %v498_v49 = vld [vmem:[#allocation2 + $0xad8] sm:$0xff] }
  0xc2   :  { %1070 = vmatpush.msra.mxu2 %v224_v52  ;;  %1090 = vmatpush.msra.mxu3 %v480_v53  ;;  %v225_v50 = vld [vmem:[#allocation2 + $0x250] sm:$0xff]  ;;  %v226_v52 = vld [vmem:[#allocation2 + $0x258] sm:$0xff] }
  0xc3   :  { %1031 = vmatpush.msra.mxu0 %v207_v54  ;;  %1051 = vmatpush.msra.mxu1 %v463_v55  ;;  %v481_v51 = vld [vmem:[#allocation2 + $0xa50] sm:$0xff]  ;;  %v482_v53 = vld [vmem:[#allocation2 + $0xa58] sm:$0xff] }
  0xc4   :  { %1071 = vmatpush.msra.mxu2 %v208_v56  ;;  %1091 = vmatpush.msra.mxu3 %v464_v57  ;;  %v209_v54 = vld [vmem:[#allocation2 + $0x1d0] sm:$0xff]  ;;  %v210_v56 = vld [vmem:[#allocation2 + $0x1d8] sm:$0xff] }
  0xc5   :  { %1032 = vmatpush.msra.mxu0 %v191_v58  ;;  %1052 = vmatpush.msra.mxu1 %v447_v59  ;;  %v465_v55 = vld [vmem:[#allocation2 + $0x9d0] sm:$0xff]  ;;  %v466_v57 = vld [vmem:[#allocation2 + $0x9d8] sm:$0xff] }
  0xc6   :  { %1072 = vmatpush.msra.mxu2 %v192_v61  ;;  %1092 = vmatpush.msra.mxu3 %v448_v62  ;;  %v193_v58 = vld [vmem:[#allocation2 + $0x150] sm:$0xff]  ;;  %v194_v61 = vld [vmem:[#allocation2 + $0x158] sm:$0xff] }
  0xc7   :  { %1033 = vmatpush.msra.mxu0 %v175_v63  ;;  %1053 = vmatpush.msra.mxu1 %v431_v0  ;;  %v449_v59 = vld [vmem:[#allocation2 + $0x950] sm:$0xff]  ;;  %v450_v62 = vld [vmem:[#allocation2 + $0x958] sm:$0xff] }
  0xc8   :  { %1073 = vmatpush.msra.mxu2 %v176_v2  ;;  %1093 = vmatpush.msra.mxu3 %v432_v3  ;;  %v177_v63 = vld [vmem:[#allocation2 + $0xd0] sm:$0xff]  ;;  %v178_v2 = vld [vmem:[#allocation2 + $0xd8] sm:$0xff] }
  0xc9   :  { %995 = vmatmul.f32.vlgmr.msrb.gmra.mxu2 %v4223_v60  ;;  %1034 = vmatpush.msra.mxu0 %v159_v4  ;;  %v433_v0 = vld [vmem:[#allocation2 + $0x8d0] sm:$0xff]  ;;  %v434_v3 = vld [vmem:[#allocation2 + $0x8d8] sm:$0xff] }
  0xca   :  { %1054 = vmatpush.msra.mxu1 %v415_v5  ;;  %1074 = vmatpush.msra.mxu2 %v160_v6  ;;  %v161_v4 = vld [vmem:[#allocation2 + $0x50] sm:$0xff]  ;;  %v162_v6 = vld [vmem:[#allocation2 + $0x58] sm:$0xff] }
  0xcb   :  { %1094 = vmatpush.msra.mxu3 %v416_v7  ;;  %955 = vmatmul.f32.vlgmr.msrb.gmra.mxu0 %v4223_v60  ;;  %v626_v60 = vld [vmem:[#allocation2 + $0xed8] sm:$0xff]  ;;  %v417_v5 = vld [vmem:[#allocation2 + $0x850] sm:$0xff] }
  0xcc   :  { %975 = vmatmul.f32.vlgmr.msrb.gmra.mxu1 %v4229_v1  ;;  %1015 = vmatmul.f32.vlgmr.msrb.gmra.mxu3 %v4229_v1  ;;  %v354_v1 = vld [vmem:[#allocation2 + $0x658] sm:$0xff] }
  0xcd   :  { %1099 = vmatpush.msrb.mxu0 %v401_v8  ;;  %1119 = vmatpush.msrb.mxu1 %v657_v9  ;;  %v418_v7 = vld [vmem:[#allocation2 + $0x858] sm:$0xff]  ;;  %v4249_v8 = vld [vmem:[%s4505_s0] sm:$0xff] }
  0xce   :  { %1139 = vmatpush.msrb.mxu2 %v402_v10  ;;  %1159 = vmatpush.msrb.mxu3 %v658_v11  ;;  %v403_v9 = vld [vmem:[#allocation2 + $0x7e0] sm:$0xff]  ;;  %v404_v11 = vld [vmem:[#allocation2 + $0x7e8] sm:$0xff] }
  0xcf   :  { %1100 = vmatpush.msrb.mxu0 %v385_v12  ;;  %1120 = vmatpush.msrb.mxu1 %v641_v13  ;;  %v659_v10 = vld [vmem:[#allocation2 + $0xfe0] sm:$0xff]  ;;  %v660_v12 = vld [vmem:[#allocation2 + $0xfe8] sm:$0xff] }
  0xd0   :  { %1140 = vmatpush.msrb.mxu2 %v386_v14  ;;  %1160 = vmatpush.msrb.mxu3 %v642_v15  ;;  %v4256_v13 = vld [vmem:[%s4505_s0 + $0x8] sm:$0xff]  ;;  %v387_v14 = vld [vmem:[#allocation2 + $0x760] sm:$0xff] }
  0xd1   :  { %1101 = vmatpush.msrb.mxu0 %v369_v16  ;;  %1121 = vmatpush.msrb.mxu1 %v625_v17  ;;  %v643_v15 = vld [vmem:[#allocation2 + $0xf60] sm:$0xff]  ;;  %v388_v16 = vld [vmem:[#allocation2 + $0x768] sm:$0xff] }
  0xd2   :  { %1141 = vmatpush.msrb.mxu2 %v370_v18  ;;  %1161 = vmatpush.msrb.mxu3 %v626_v60  ;;  %v644_v17 = vld [vmem:[#allocation2 + $0xf68] sm:$0xff]  ;;  %v371_v18 = vld [vmem:[#allocation2 + $0x6e0] sm:$0xff] }
  0xd3   :  { %1102 = vmatpush.msrb.mxu0 %v353_v19  ;;  %1122 = vmatpush.msrb.mxu1 %v609_v20  ;;  %v627_v60 = vld [vmem:[#allocation2 + $0xee0] sm:$0xff]  ;;  %v372_v19 = vld [vmem:[#allocation2 + $0x6e8] sm:$0xff] }
  0xd4   :  { %1142 = vmatpush.msrb.mxu2 %v354_v1  ;;  %1162 = vmatpush.msrb.mxu3 %v610_v21  ;;  %v628_v20 = vld [vmem:[#allocation2 + $0xee8] sm:$0xff]  ;;  %v355_v1 = vld [vmem:[#allocation2 + $0x660] sm:$0xff] }
  0xd5   :  { %1103 = vmatpush.msrb.mxu0 %v337_v22  ;;  %1123 = vmatpush.msrb.mxu1 %v593_v23  ;;  %v611_v21 = vld [vmem:[#allocation2 + $0xe60] sm:$0xff]  ;;  %v356_v22 = vld [vmem:[#allocation2 + $0x668] sm:$0xff] }
  0xd6   :  { %1143 = vmatpush.msrb.mxu2 %v338_v24  ;;  %1163 = vmatpush.msrb.mxu3 %v594_v25  ;;  %v612_v23 = vld [vmem:[#allocation2 + $0xe68] sm:$0xff]  ;;  %v339_v24 = vld [vmem:[#allocation2 + $0x5e0] sm:$0xff] }
  0xd7   :  { %1104 = vmatpush.msrb.mxu0 %v321_v26  ;;  %1124 = vmatpush.msrb.mxu1 %v577_v27  ;;  %v595_v25 = vld [vmem:[#allocation2 + $0xde0] sm:$0xff]  ;;  %v340_v26 = vld [vmem:[#allocation2 + $0x5e8] sm:$0xff] }
  0xd8   :  { %1144 = vmatpush.msrb.mxu2 %v322_v28  ;;  %1164 = vmatpush.msrb.mxu3 %v578_v29  ;;  %v596_v27 = vld [vmem:[#allocation2 + $0xde8] sm:$0xff]  ;;  %v323_v28 = vld [vmem:[#allocation2 + $0x560] sm:$0xff] }
  0xd9   :  { %1105 = vmatpush.msrb.mxu0 %v305_v30  ;;  %1125 = vmatpush.msrb.mxu1 %v561_v31  ;;  %v579_v29 = vld [vmem:[#allocation2 + $0xd60] sm:$0xff]  ;;  %v324_v30 = vld [vmem:[#allocation2 + $0x568] sm:$0xff] }
  0xda   :  { %1145 = vmatpush.msrb.mxu2 %v306_v32  ;;  %1165 = vmatpush.msrb.mxu3 %v562_v33  ;;  %v580_v31 = vld [vmem:[#allocation2 + $0xd68] sm:$0xff]  ;;  %v307_v32 = vld [vmem:[#allocation2 + $0x4e0] sm:$0xff] }
  0xdb   :  { %1106 = vmatpush.msrb.mxu0 %v289_v34  ;;  %1126 = vmatpush.msrb.mxu1 %v545_v35  ;;  %v563_v33 = vld [vmem:[#allocation2 + $0xce0] sm:$0xff]  ;;  %v308_v34 = vld [vmem:[#allocation2 + $0x4e8] sm:$0xff] }
  0xdc   :  { %1146 = vmatpush.msrb.mxu2 %v290_v36  ;;  %1166 = vmatpush.msrb.mxu3 %v546_v37  ;;  %v564_v35 = vld [vmem:[#allocation2 + $0xce8] sm:$0xff]  ;;  %v291_v36 = vld [vmem:[#allocation2 + $0x460] sm:$0xff] }
  0xdd   :  { %1107 = vmatpush.msrb.mxu0 %v273_v38  ;;  %1127 = vmatpush.msrb.mxu1 %v529_v39  ;;  %v547_v37 = vld [vmem:[#allocation2 + $0xc60] sm:$0xff]  ;;  %v292_v38 = vld [vmem:[#allocation2 + $0x468] sm:$0xff] }
  0xde   :  { %1147 = vmatpush.msrb.mxu2 %v274_v40  ;;  %1167 = vmatpush.msrb.mxu3 %v530_v41  ;;  %v548_v39 = vld [vmem:[#allocation2 + $0xc68] sm:$0xff]  ;;  %v275_v40 = vld [vmem:[#allocation2 + $0x3e0] sm:$0xff] }
  0xdf   :  { %1108 = vmatpush.msrb.mxu0 %v257_v42  ;;  %1128 = vmatpush.msrb.mxu1 %v513_v43  ;;  %v531_v41 = vld [vmem:[#allocation2 + $0xbe0] sm:$0xff]  ;;  %v276_v42 = vld [vmem:[#allocation2 + $0x3e8] sm:$0xff] }
  0xe0   :  { %1148 = vmatpush.msrb.mxu2 %v258_v44  ;;  %1168 = vmatpush.msrb.mxu3 %v514_v45  ;;  %v532_v43 = vld [vmem:[#allocation2 + $0xbe8] sm:$0xff]  ;;  %v259_v44 = vld [vmem:[#allocation2 + $0x360] sm:$0xff] }
  0xe1   :  { %1109 = vmatpush.msrb.mxu0 %v241_v46  ;;  %1129 = vmatpush.msrb.mxu1 %v497_v47  ;;  %v515_v45 = vld [vmem:[#allocation2 + $0xb60] sm:$0xff]  ;;  %v260_v46 = vld [vmem:[#allocation2 + $0x368] sm:$0xff] }
  0xe2   :  { %1149 = vmatpush.msrb.mxu2 %v242_v48  ;;  %1169 = vmatpush.msrb.mxu3 %v498_v49  ;;  %v516_v47 = vld [vmem:[#allocation2 + $0xb68] sm:$0xff]  ;;  %v243_v48 = vld [vmem:[#allocation2 + $0x2e0] sm:$0xff] }
  0xe3   :  { %1110 = vmatpush.msrb.mxu0 %v225_v50  ;;  %1130 = vmatpush.msrb.mxu1 %v481_v51  ;;  %v499_v49 = vld [vmem:[#allocation2 + $0xae0] sm:$0xff]  ;;  %v244_v50 = vld [vmem:[#allocation2 + $0x2e8] sm:$0xff] }
  0xe4   :  { %1150 = vmatpush.msrb.mxu2 %v226_v52  ;;  %1170 = vmatpush.msrb.mxu3 %v482_v53  ;;  %v500_v51 = vld [vmem:[#allocation2 + $0xae8] sm:$0xff]  ;;  %v483_v52 = vld [vmem:[#allocation2 + $0xa60] sm:$0xff] }
  0xe5   :  { %1111 = vmatpush.msrb.mxu0 %v209_v54  ;;  %1131 = vmatpush.msrb.mxu1 %v465_v55  ;;  %v227_v53 = vld [vmem:[#allocation2 + $0x260] sm:$0xff]  ;;  %v228_v54 = vld [vmem:[#allocation2 + $0x268] sm:$0xff] }
  0xe6   :  { %1151 = vmatpush.msrb.mxu2 %v210_v56  ;;  %1171 = vmatpush.msrb.mxu3 %v466_v57  ;;  %v484_v55 = vld [vmem:[#allocation2 + $0xa68] sm:$0xff]  ;;  %v211_v56 = vld [vmem:[#allocation2 + $0x1e0] sm:$0xff] }
  0xe7   :  { %1112 = vmatpush.msrb.mxu0 %v193_v58  ;;  %1132 = vmatpush.msrb.mxu1 %v449_v59  ;;  %v467_v57 = vld [vmem:[#allocation2 + $0x9e0] sm:$0xff]  ;;  %v212_v58 = vld [vmem:[#allocation2 + $0x1e8] sm:$0xff] }
  0xe8   :  { %1152 = vmatpush.msrb.mxu2 %v194_v61  ;;  %1172 = vmatpush.msrb.mxu3 %v450_v62  ;;  %v468_v59 = vld [vmem:[#allocation2 + $0x9e8] sm:$0xff]  ;;  %v195_v61 = vld [vmem:[#allocation2 + $0x160] sm:$0xff] }
  0xe9   :  { %1113 = vmatpush.msrb.mxu0 %v177_v63  ;;  %1133 = vmatpush.msrb.mxu1 %v433_v0  ;;  %v451_v62 = vld [vmem:[#allocation2 + $0x960] sm:$0xff]  ;;  %v196_v63 = vld [vmem:[#allocation2 + $0x168] sm:$0xff] }
  0xea   :  { %1153 = vmatpush.msrb.mxu2 %v178_v2  ;;  %1173 = vmatpush.msrb.mxu3 %v434_v3  ;;  %v452_v0 = vld [vmem:[#allocation2 + $0x968] sm:$0xff]  ;;  %v179_v2 = vld [vmem:[#allocation2 + $0xe0] sm:$0xff] }
  0xeb   :  { %1075 = vmatmul.f32.vlgmr.msra.gmra.mxu2 %v4249_v8  ;;  %1114 = vmatpush.msrb.mxu0 %v161_v4  ;;  %v435_v3 = vld [vmem:[#allocation2 + $0x8e0] sm:$0xff]  ;;  %v180_v4 = vld [vmem:[#allocation2 + $0xe8] sm:$0xff] }
  0xec   :  { %1134 = vmatpush.msrb.mxu1 %v417_v5  ;;  %1154 = vmatpush.msrb.mxu2 %v162_v6  ;;  %v436_v5 = vld [vmem:[#allocation2 + $0x8e8] sm:$0xff]  ;;  %v163_v6 = vld [vmem:[#allocation2 + $0x60] sm:$0xff] }
  0xed   :  { %1174 = vmatpush.msrb.mxu3 %v418_v7  ;;  %1035 = vmatmul.f32.vlgmr.msra.gmra.mxu0 %v4249_v8  ;;  %v419_v7 = vld [vmem:[#allocation2 + $0x860] sm:$0xff] }
  0xee   :  { %1055 = vmatmul.f32.vlgmr.msra.gmra.mxu1 %v4256_v13  ;;  %1095 = vmatmul.f32.vlgmr.msra.gmra.mxu3 %v4256_v13 }
  0xef   :  { %1179 = vmatpush.msra.mxu0 %v403_v9  ;;  %1199 = vmatpush.msra.mxu1 %v659_v10  ;;  %v164_v9 = vld [vmem:[#allocation2 + $0x68] sm:$0xff] }
  0xf0   :  { %1219 = vmatpush.msra.mxu2 %v404_v11  ;;  %1239 = vmatpush.msra.mxu3 %v660_v12  ;;  %v420_v10 = vld [vmem:[#allocation2 + $0x868] sm:$0xff]  ;;  %v405_v11 = vld [vmem:[#allocation2 + $0x7f0] sm:$0xff] }
  0xf1   :  { %1180 = vmatpush.msra.mxu0 %v387_v14  ;;  %1200 = vmatpush.msra.mxu1 %v643_v15  ;;  %v661_v12 = vld [vmem:[#allocation2 + $0xff0] sm:$0xff]  ;;  %v406_v14 = vld [vmem:[#allocation2 + $0x7f8] sm:$0xff] }
  0xf2   :  { %1220 = vmatpush.msra.mxu2 %v388_v16  ;;  %1240 = vmatpush.msra.mxu3 %v644_v17  ;;  %v662_v15 = vld [vmem:[#allocation2 + $0xff8] sm:$0xff]  ;;  %v389_v16 = vld [vmem:[#allocation2 + $0x770] sm:$0xff] }
  0xf3   :  { %1181 = vmatpush.msra.mxu0 %v371_v18  ;;  %1201 = vmatpush.msra.mxu1 %v627_v60  ;;  %v645_v17 = vld [vmem:[#allocation2 + $0xf70] sm:$0xff]  ;;  %v390_v18 = vld [vmem:[#allocation2 + $0x778] sm:$0xff] }
  0xf4   :  { %1221 = vmatpush.msra.mxu2 %v372_v19  ;;  %1241 = vmatpush.msra.mxu3 %v628_v20  ;;  %v646_v60 = vld [vmem:[#allocation2 + $0xf78] sm:$0xff]  ;;  %v373_v19 = vld [vmem:[#allocation2 + $0x6f0] sm:$0xff] }
  0xf5   :  { %1182 = vmatpush.msra.mxu0 %v355_v1  ;;  %1202 = vmatpush.msra.mxu1 %v611_v21  ;;  %v629_v20 = vld [vmem:[#allocation2 + $0xef0] sm:$0xff]  ;;  %v374_v1 = vld [vmem:[#allocation2 + $0x6f8] sm:$0xff] }
  0xf6   :  { %1222 = vmatpush.msra.mxu2 %v356_v22  ;;  %1242 = vmatpush.msra.mxu3 %v612_v23  ;;  %v630_v21 = vld [vmem:[#allocation2 + $0xef8] sm:$0xff]  ;;  %v357_v22 = vld [vmem:[#allocation2 + $0x670] sm:$0xff] }
  0xf7   :  { %1183 = vmatpush.msra.mxu0 %v339_v24  ;;  %1203 = vmatpush.msra.mxu1 %v595_v25  ;;  %v613_v23 = vld [vmem:[#allocation2 + $0xe70] sm:$0xff]  ;;  %v358_v24 = vld [vmem:[#allocation2 + $0x678] sm:$0xff] }
  0xf8   :  { %1223 = vmatpush.msra.mxu2 %v340_v26  ;;  %1243 = vmatpush.msra.mxu3 %v596_v27  ;;  %v614_v25 = vld [vmem:[#allocation2 + $0xe78] sm:$0xff]  ;;  %v341_v26 = vld [vmem:[#allocation2 + $0x5f0] sm:$0xff] }
  0xf9   :  { %1184 = vmatpush.msra.mxu0 %v323_v28  ;;  %1204 = vmatpush.msra.mxu1 %v579_v29  ;;  %v597_v27 = vld [vmem:[#allocation2 + $0xdf0] sm:$0xff]  ;;  %v342_v28 = vld [vmem:[#allocation2 + $0x5f8] sm:$0xff] }
  0xfa   :  { %1224 = vmatpush.msra.mxu2 %v324_v30  ;;  %1244 = vmatpush.msra.mxu3 %v580_v31  ;;  %v598_v29 = vld [vmem:[#allocation2 + $0xdf8] sm:$0xff]  ;;  %v325_v30 = vld [vmem:[#allocation2 + $0x570] sm:$0xff] }
  0xfb   :  { %1185 = vmatpush.msra.mxu0 %v307_v32  ;;  %1205 = vmatpush.msra.mxu1 %v563_v33  ;;  %v581_v31 = vld [vmem:[#allocation2 + $0xd70] sm:$0xff]  ;;  %v326_v32 = vld [vmem:[#allocation2 + $0x578] sm:$0xff] }
  0xfc   :  { %1225 = vmatpush.msra.mxu2 %v308_v34  ;;  %1245 = vmatpush.msra.mxu3 %v564_v35  ;;  %v582_v33 = vld [vmem:[#allocation2 + $0xd78] sm:$0xff]  ;;  %v309_v34 = vld [vmem:[#allocation2 + $0x4f0] sm:$0xff] }
  0xfd   :  { %1186 = vmatpush.msra.mxu0 %v291_v36  ;;  %1206 = vmatpush.msra.mxu1 %v547_v37  ;;  %v565_v35 = vld [vmem:[#allocation2 + $0xcf0] sm:$0xff]  ;;  %v310_v36 = vld [vmem:[#allocation2 + $0x4f8] sm:$0xff] }
  0xfe   :  { %1226 = vmatpush.msra.mxu2 %v292_v38  ;;  %1246 = vmatpush.msra.mxu3 %v548_v39  ;;  %v566_v37 = vld [vmem:[#allocation2 + $0xcf8] sm:$0xff]  ;;  %v293_v38 = vld [vmem:[#allocation2 + $0x470] sm:$0xff] }
  0xff   :  { %1187 = vmatpush.msra.mxu0 %v275_v40  ;;  %1207 = vmatpush.msra.mxu1 %v531_v41  ;;  %v549_v39 = vld [vmem:[#allocation2 + $0xc70] sm:$0xff]  ;;  %v294_v40 = vld [vmem:[#allocation2 + $0x478] sm:$0xff] }
 0x100   :  { %1227 = vmatpush.msra.mxu2 %v276_v42  ;;  %1247 = vmatpush.msra.mxu3 %v532_v43  ;;  %v550_v41 = vld [vmem:[#allocation2 + $0xc78] sm:$0xff]  ;;  %v277_v42 = vld [vmem:[#allocation2 + $0x3f0] sm:$0xff] }
 0x101   :  { %1155 = vmatmul.f32.vlgmr.msrb.gmra.mxu2 %v4249_v8  ;;  %1188 = vmatpush.msra.mxu0 %v259_v44  ;;  %v533_v43 = vld [vmem:[#allocation2 + $0xbf0] sm:$0xff]  ;;  %v278_v44 = vld [vmem:[#allocation2 + $0x3f8] sm:$0xff] }
 0x102   :  { %1208 = vmatpush.msra.mxu1 %v515_v45  ;;  %1228 = vmatpush.msra.mxu2 %v260_v46  ;;  %v534_v45 = vld [vmem:[#allocation2 + $0xbf8] sm:$0xff]  ;;  %v261_v46 = vld [vmem:[#allocation2 + $0x370] sm:$0xff] }
 0x103   :  { %1248 = vmatpush.msra.mxu3 %v516_v47  ;;  %1189 = vmatpush.msra.mxu0 %v243_v48  ;;  %v517_v47 = vld [vmem:[#allocation2 + $0xb70] sm:$0xff]  ;;  %v262_v48 = vld [vmem:[#allocation2 + $0x378] sm:$0xff] }
 0x104   :  { %1175 = vmatmul.f32.vlgmr.msrb.gmra.mxu3 %v4256_v13  ;;  %1209 = vmatpush.msra.mxu1 %v499_v49  ;;  %v518_v49 = vld [vmem:[#allocation2 + $0xb78] sm:$0xff] }
 0x105   :  { %1229 = vmatpush.msra.mxu2 %v244_v50  ;;  %1249 = vmatpush.msra.mxu3 %v500_v51  ;;  %v245_v50 = vld [vmem:[#allocation2 + $0x2f0] sm:$0xff] }
 0x106   :  { %1115 = vmatmul.f32.vlgmr.msrb.gmra.mxu0 %v4249_v8  ;;  %1210 = vmatpush.msra.mxu1 %v483_v52  ;;  %v501_v51 = vld [vmem:[#allocation2 + $0xaf0] sm:$0xff]  ;;  %v246_v52 = vld [vmem:[#allocation2 + $0x2f8] sm:$0xff] }
 0x107   :  { %1190 = vmatpush.msra.mxu0 %v227_v53  ;;  %1230 = vmatpush.msra.mxu2 %v228_v54  ;;  %v502_v53 = vld [vmem:[#allocation2 + $0xaf8] sm:$0xff]  ;;  %v485_v54 = vld [vmem:[#allocation2 + $0xa70] sm:$0xff] }
 0x108   :  { %1250 = vmatpush.msra.mxu3 %v484_v55  ;;  %1135 = vmatmul.f32.vlgmr.msrb.gmra.mxu1 %v4256_v13  ;;  %v229_v55 = vld [vmem:[#allocation2 + $0x270] sm:$0xff] }
 0x109   :  { %1191 = vmatpush.msra.mxu0 %v211_v56  ;;  %1211 = vmatpush.msra.mxu1 %v467_v57  ;;  %v230_v56 = vld [vmem:[#allocation2 + $0x278] sm:$0xff] }
 0x10a   :  { %1231 = vmatpush.msra.mxu2 %v212_v58  ;;  %1251 = vmatpush.msra.mxu3 %v468_v59  ;;  %v486_v57 = vld [vmem:[#allocation2 + $0xa78] sm:$0xff]  ;;  %v213_v58 = vld [vmem:[#allocation2 + $0x1f0] sm:$0xff] }
 0x10b   :  { %1192 = vmatpush.msra.mxu0 %v195_v61  ;;  %1212 = vmatpush.msra.mxu1 %v451_v62  ;;  %v469_v59 = vld [vmem:[#allocation2 + $0x9f0] sm:$0xff]  ;;  %v214_v61 = vld [vmem:[#allocation2 + $0x1f8] sm:$0xff] }
 0x10c   :  { %1232 = vmatpush.msra.mxu2 %v196_v63  ;;  %1252 = vmatpush.msra.mxu3 %v452_v0  ;;  %v470_v62 = vld [vmem:[#allocation2 + $0x9f8] sm:$0xff]  ;;  %v197_v63 = vld [vmem:[#allocation2 + $0x170] sm:$0xff] }
 0x10d   :  { %1193 = vmatpush.msra.mxu0 %v179_v2  ;;  %1213 = vmatpush.msra.mxu1 %v435_v3  ;;  %v453_v0 = vld [vmem:[#allocation2 + $0x970] sm:$0xff]  ;;  %v198_v2 = vld [vmem:[#allocation2 + $0x178] sm:$0xff] }
 0x10e   :  { %1233 = vmatpush.msra.mxu2 %v180_v4  ;;  %1253 = vmatpush.msra.mxu3 %v436_v5  ;;  %v454_v3 = vld [vmem:[#allocation2 + $0x978] sm:$0xff]  ;;  %v181_v4 = vld [vmem:[#allocation2 + $0xf0] sm:$0xff] }
 0x10f   :  { %1194 = vmatpush.msra.mxu0 %v163_v6  ;;  %1214 = vmatpush.msra.mxu1 %v419_v7  ;;  %v437_v5 = vld [vmem:[#allocation2 + $0x8f0] sm:$0xff]  ;;  %v182_v6 = vld [vmem:[#allocation2 + $0xf8] sm:$0xff] }
 0x110   :  { %1234 = vmatpush.msra.mxu2 %v164_v9  ;;  %1254 = vmatpush.msra.mxu3 %v420_v10  ;;  %v438_v7 = vld [vmem:[#allocation2 + $0x8f8] sm:$0xff]  ;;  %v165_v9 = vld [vmem:[#allocation2 + $0x70] sm:$0xff] }
 0x111   :  { %1259 = vmatpush.msrb.mxu0 %v405_v11  ;;  %1279 = vmatpush.msrb.mxu1 %v661_v12  ;;  %v421_v10 = vld [vmem:[#allocation2 + $0x870] sm:$0xff]  ;;  %v166_v11 = vld [vmem:[#allocation2 + $0x78] sm:$0xff] }
 0x112   :  { %1299 = vmatpush.msrb.mxu2 %v406_v14  ;;  %1319 = vmatpush.msrb.mxu3 %v662_v15  ;;  %v422_v12 = vld [vmem:[#allocation2 + $0x878] sm:$0xff]  ;;  %v1447_v14 = vld [vmem:[#allocation6 + $0x1e0] sm:$0xff] }
 0x113   :  { %1260 = vmatpush.msrb.mxu0 %v389_v16  ;;  %1280 = vmatpush.msrb.mxu1 %v645_v17  ;;  %v1511_v15 = vld [vmem:[#allocation6 + $0x3e0] sm:$0xff] }
 0x114   :  { %1300 = vmatpush.msrb.mxu2 %v390_v18  ;;  %1320 = vmatpush.msrb.mxu3 %v646_v60  ;;  %v1575_v16 = vld [vmem:[#allocation6 + $0x5e0] sm:$0xff] }
 0x115   :  { %1261 = vmatpush.msrb.mxu0 %v373_v19  ;;  %1281 = vmatpush.msrb.mxu1 %v629_v20  ;;  %v1639_v17 = vld [vmem:[#allocation6 + $0x7e0] sm:$0xff] }
 0x116   :  { %1301 = vmatpush.msrb.mxu2 %v374_v1  ;;  %1321 = vmatpush.msrb.mxu3 %v630_v21  ;;  %v1443_v18 = vld [vmem:[#allocation6 + $0x1c0] sm:$0xff] }
 0x117   :  { %1262 = vmatpush.msrb.mxu0 %v357_v22  ;;  %1282 = vmatpush.msrb.mxu1 %v613_v23  ;;  %v1507_v60 = vld [vmem:[#allocation6 + $0x3c0] sm:$0xff] }
 0x118   :  { %1302 = vmatpush.msrb.mxu2 %v358_v24  ;;  %1322 = vmatpush.msrb.mxu3 %v614_v25  ;;  %v1571_v19 = vld [vmem:[#allocation6 + $0x5c0] sm:$0xff] }
 0x119   :  { %1263 = vmatpush.msrb.mxu0 %v341_v26  ;;  %1283 = vmatpush.msrb.mxu1 %v597_v27  ;;  %v1635_v20 = vld [vmem:[#allocation6 + $0x7c0] sm:$0xff] }
 0x11a   :  { %1303 = vmatpush.msrb.mxu2 %v342_v28  ;;  %1323 = vmatpush.msrb.mxu3 %v598_v29  ;;  %v1439_v1 = vld [vmem:[#allocation6 + $0x1a0] sm:$0xff] }
 0x11b   :  { %1264 = vmatpush.msrb.mxu0 %v325_v30  ;;  %1284 = vmatpush.msrb.mxu1 %v581_v31  ;;  %v1503_v21 = vld [vmem:[#allocation6 + $0x3a0] sm:$0xff] }
 0x11c   :  { %1304 = vmatpush.msrb.mxu2 %v326_v32  ;;  %1324 = vmatpush.msrb.mxu3 %v582_v33  ;;  %v1567_v22 = vld [vmem:[#allocation6 + $0x5a0] sm:$0xff] }
 0x11d   :  { %1265 = vmatpush.msrb.mxu0 %v309_v34  ;;  %1285 = vmatpush.msrb.mxu1 %v565_v35  ;;  %v1631_v23 = vld [vmem:[#allocation6 + $0x7a0] sm:$0xff]  ;;  %v716_v34 = vpop.f32.mrf.mxu0  ;;  %v756_v35 = vpop.f32.mrf.mxu2 }
 0x11e   :  { %1305 = vmatpush.msrb.mxu2 %v310_v36  ;;  %1325 = vmatpush.msrb.mxu3 %v566_v37  ;;  %v1499_v24 = vld [vmem:[#allocation6 + $0x380] sm:$0xff] }
 0x11f   :  { %1266 = vmatpush.msrb.mxu0 %v293_v38  ;;  %1286 = vmatpush.msrb.mxu1 %v549_v39  ;;  %v1563_v25 = vld [vmem:[#allocation6 + $0x580] sm:$0xff] }
 0x120   :  { %1306 = vmatpush.msrb.mxu2 %v294_v40  ;;  %1326 = vmatpush.msrb.mxu3 %v550_v41  ;;  %v1627_v26 = vld [vmem:[#allocation6 + $0x780] sm:$0xff]  ;;  %v4272_v40 = vld [vmem:[#allocation4] sm:$0xff] }
 0x121   :  { %1267 = vmatpush.msrb.mxu0 %v277_v42  ;;  %1287 = vmatpush.msrb.mxu1 %v533_v43  ;;  %v1431_v27 = vld [vmem:[#allocation6 + $0x160] sm:$0xff] }
 0x122   :  { %1307 = vmatpush.msrb.mxu2 %v278_v44  ;;  %1327 = vmatpush.msrb.mxu3 %v534_v45  ;;  %v1495_v28 = vld [vmem:[#allocation6 + $0x360] sm:$0xff]  ;;  %v736_v45 = vpop.f32.mrf.mxu1 }
 0x123   :  { %1235 = vmatmul.f32.vlgmr.msra.gmra.mxu2 %v4249_v8  ;;  %1268 = vmatpush.msrb.mxu0 %v261_v46  ;;  %v1623_v29 = vld [vmem:[#allocation6 + $0x760] sm:$0xff]  ;;  %v776_v46 = vpop.f32.mrf.mxu3 }
 0x124   :  { %1288 = vmatpush.msrb.mxu1 %v517_v47  ;;  %1308 = vmatpush.msrb.mxu2 %v262_v48  ;;  %v1427_v30 = vld [vmem:[#allocation6 + $0x140] sm:$0xff] }
 0x125   :  { %1328 = vmatpush.msrb.mxu3 %v518_v49  ;;  %1269 = vmatpush.msrb.mxu0 %v245_v50  ;;  %v1491_v31 = vld [vmem:[#allocation6 + $0x340] sm:$0xff]  ;;  %v667_v49 = vperm.slane %v4272_v40, 0 }
 0x126   :  { %1255 = vmatmul.f32.vlgmr.msra.gmra.mxu3 %v4256_v13  ;;  %1289 = vmatpush.msrb.mxu1 %v501_v51  ;;  %v1555_v32 = vld [vmem:[#allocation6 + $0x540] sm:$0xff] }
 0x127   :  { %1309 = vmatpush.msrb.mxu2 %v246_v52  ;;  %1329 = vmatpush.msrb.mxu3 %v502_v53  ;;  %v1619_v33 = vld [vmem:[#allocation6 + $0x740] sm:$0xff]  ;;  %v668_v52 = vperm.slane %v4272_v40, 1 }
 0x128   :  { %1195 = vmatmul.f32.vlgmr.msra.gmra.mxu0 %v4249_v8  ;;  %1290 = vmatpush.msrb.mxu1 %v485_v54  ;;  %v1423_v36 = vld [vmem:[#allocation6 + $0x120] sm:$0xff] }
 0x129   :  { %1270 = vmatpush.msrb.mxu0 %v229_v55  ;;  %1310 = vmatpush.msrb.mxu2 %v230_v56  ;;  %v1487_v37 = vld [vmem:[#allocation6 + $0x320] sm:$0xff]  ;;  %v669_v55 = vperm.slane %v4272_v40, 2  ;;  %v670_v56 = vperm.slane %v4272_v40, 3 }
 0x12a   :  { %1330 = vmatpush.msrb.mxu3 %v486_v57  ;;  %1215 = vmatmul.f32.vlgmr.msra.gmra.mxu1 %v4256_v13  ;;  %v1551_v38 = vld [vmem:[#allocation6 + $0x520] sm:$0xff] }
 0x12b   :  { %1271 = vmatpush.msrb.mxu0 %v213_v58  ;;  %1291 = vmatpush.msrb.mxu1 %v469_v59  ;;  %v1615_v39 = vld [vmem:[#allocation6 + $0x720] sm:$0xff]  ;;  %v796_v59 = vpop.f32.mrf.mxu0 }
 0x12c   :  { %1311 = vmatpush.msrb.mxu2 %v214_v61  ;;  %1331 = vmatpush.msrb.mxu3 %v470_v62  ;;  %v1419_v41 = vld [vmem:[#allocation6 + $0x100] sm:$0xff]  ;;  %v836_v61 = vpop.f32.mrf.mxu2 }
 0x12d   :  { %1272 = vmatpush.msrb.mxu0 %v197_v63  ;;  %1292 = vmatpush.msrb.mxu1 %v453_v0  ;;  %v1483_v42 = vld [vmem:[#allocation6 + $0x300] sm:$0xff]  ;;  %v717_v0 = vadd.f32 %v716_v34, %v667_v49 }
 0x12e   :  { %1312 = vmatpush.msrb.mxu2 %v198_v2  ;;  %1332 = vmatpush.msrb.mxu3 %v454_v3  ;;  %v1547_v43 = vld [vmem:[#allocation6 + $0x500] sm:$0xff] }
 0x12f   :  { %1273 = vmatpush.msrb.mxu0 %v181_v4  ;;  %1293 = vmatpush.msrb.mxu1 %v437_v5  ;;  %v1611_v44 = vld [vmem:[#allocation6 + $0x700] sm:$0xff]  ;;  %v757_v4 = vadd.f32 %v756_v35, %v668_v52 }
 0x130   :  { %1313 = vmatpush.msrb.mxu2 %v182_v6  ;;  %1333 = vmatpush.msrb.mxu3 %v438_v7  ;;  %v1415_v47 = vld [vmem:[#allocation6 + $0xe0] sm:$0xff]  ;;  %v797_v7 = vadd.f32 %v796_v59, %v669_v55 }
 0x131   :  { %1274 = vmatpush.msrb.mxu0 %v165_v9  ;;  %1294 = vmatpush.msrb.mxu1 %v421_v10  ;;  %v1479_v48 = vld [vmem:[#allocation6 + $0x2e0] sm:$0xff]  ;;  %v837_v9 = vadd.f32 %v836_v61, %v670_v56 }
 0x132   :  { %1314 = vmatpush.msrb.mxu2 %v166_v11  ;;  %1334 = vmatpush.msrb.mxu3 %v422_v12  ;;  %v1543_v50 = vld [vmem:[#allocation6 + $0x4e0] sm:$0xff]  ;;  %v816_v12 = vpop.f32.mrf.mxu1 }
 0x133   :  { %1275 = vmatmul.f32.vlgmr.msrb.gmra.mxu0 %v4249_v8  ;;  %1315 = vmatmul.f32.vlgmr.msrb.gmra.mxu2 %v4249_v8  ;;  %v1435_v8 = vld [vmem:[#allocation6 + $0x180] sm:$0xff] }
 0x134   :  { %2421 = vmatpush.msra.mxu0 %v1447_v14  ;;  %2441 = vmatpush.msra.mxu1 %v1511_v15  ;;  %v1607_v51 = vld [vmem:[#allocation6 + $0x6e0] sm:$0xff]  ;;  %v856_v14 = vpop.f32.mrf.mxu3 }
 0x135   :  { %2461 = vmatpush.msra.mxu2 %v1575_v16  ;;  %2481 = vmatpush.msra.mxu3 %v1639_v17  ;;  %v1411_v53 = vld [vmem:[#allocation6 + $0xc0] sm:$0xff]  ;;  %v737_v17 = vadd.f32 %v736_v45, %v717_v0 }
 0x136   :  { %1295 = vmatmul.f32.vlgmr.msrb.gmra.mxu1 %v4256_v13  ;;  %1335 = vmatmul.f32.vlgmr.msrb.gmra.mxu3 %v4256_v13  ;;  %v1559_v13 = vld [vmem:[#allocation6 + $0x560] sm:$0xff] }
 0x137   :  { %2422 = vmatpush.msra.mxu0 %v1443_v18  ;;  %2442 = vmatpush.msra.mxu1 %v1507_v60  ;;  %v1475_v54 = vld [vmem:[#allocation6 + $0x2c0] sm:$0xff]  ;;  %vm1339_vm0 = vcmp.ge.f32.partialorder %v737_v17, 0.0 }
 0x138   :  { %2462 = vmatpush.msra.mxu2 %v1571_v19  ;;  %2482 = vmatpush.msra.mxu3 %v1635_v20  ;;  %v1539_v57 = vld [vmem:[#allocation6 + $0x4c0] sm:$0xff]  ;;  %v777_v19 = vadd.f32 %v776_v46, %v757_v4 }
 0x139   :  { %2423 = vmatpush.msra.mxu0 %v1439_v1  ;;  %2443 = vmatpush.msra.mxu1 %v1503_v21  ;;  %v1603_v58 = vld [vmem:[#allocation6 + $0x6c0] sm:$0xff]  ;;  %v817_v21 = vadd.f32 %v816_v12, %v797_v7 }
 0x13a   :  { %2463 = vmatpush.msra.mxu2 %v1567_v22  ;;  %2483 = vmatpush.msra.mxu3 %v1631_v23  ;;  %v1407_v62 = vld [vmem:[#allocation6 + $0xa0] sm:$0xff]  ;;  %v857_v22 = vadd.f32 %v856_v14, %v837_v9  ;;  %vm1340_vm1 = vcmp.ge.f32.partialorder %v777_v19, 0.0  ;;  %v896_v14 = vpop.f32.mrf.mxu1 }
 0x13b   :  { %2424 = vmatpush.msra.mxu0 %v1435_v8  ;;  %2444 = vmatpush.msra.mxu1 %v1499_v24  ;;  %v1471_v63 = vld [vmem:[#allocation6 + $0x2a0] sm:$0xff]  ;;  %vm1341_vm2 = vcmp.ge.f32.partialorder %v817_v21, 0.0 }
 0x13c   :  { %2464 = vmatpush.msra.mxu2 %v1563_v25  ;;  %2484 = vmatpush.msra.mxu3 %v1627_v26  ;;  %v1535_v2 = vld [vmem:[#allocation6 + $0x4a0] sm:$0xff]  ;;  %v1355_v26 = vmul.f32 0.01, %v737_v17  ;;  %vm1342_vm3 = vcmp.ge.f32.partialorder %v857_v22, 0.0 }
 0x13d   :  { %2425 = vmatpush.msra.mxu0 %v1431_v27  ;;  %2445 = vmatpush.msra.mxu1 %v1495_v28  ;;  %v1599_v3 = vld [vmem:[#allocation6 + $0x6a0] sm:$0xff] }
 0x13e   :  { %2465 = vmatpush.msra.mxu2 %v1559_v13  ;;  %2485 = vmatpush.msra.mxu3 %v1623_v29  ;;  %v1403_v5 = vld [vmem:[#allocation6 + $0x80] sm:$0xff]  ;;  %v1356_v13 = vmul.f32 0.01, %v777_v19  ;;  %v4279_v35 = vsel %vm1339_vm0, %v737_v17, %v1355_v26 }
 0x13f   :  { %2426 = vmatpush.msra.mxu0 %v1427_v30  ;;  %2446 = vmatpush.msra.mxu1 %v1491_v31  ;;  %v1467_v6 = vld [vmem:[#allocation6 + $0x280] sm:$0xff]  ;;  %v1357_v31 = vmul.f32 0.01, %v817_v21 }
 0x140   :  { %2466 = vmatpush.msra.mxu2 %v1555_v32  ;;  %2486 = vmatpush.msra.mxu3 %v1619_v33  ;;  %v1531_v10 = vld [vmem:[#allocation6 + $0x480] sm:$0xff]  ;;  %v1358_v32 = vmul.f32 0.01, %v857_v22 }
 0x141   :  { %2427 = vmatpush.msra.mxu0 %v1423_v36  ;;  %2447 = vmatpush.msra.mxu1 %v1487_v37  ;;  %v1595_v11 = vld [vmem:[#allocation6 + $0x680] sm:$0xff]  ;;  %v4282_v36 = vsel %vm1340_vm1, %v777_v19, %v1356_v13 }
 0x142   :  { %2467 = vmatpush.msra.mxu2 %v1551_v38  ;;  %2487 = vmatpush.msra.mxu3 %v1615_v39  ;;  %v1399_v15 = vld [vmem:[#allocation6 + $0x60] sm:$0xff]  ;;  %v4286_v39 = vsel %vm1341_vm2, %v817_v21, %v1357_v31 }
 0x143   :  { %2428 = vmatpush.msra.mxu0 %v1419_v41  ;;  %2448 = vmatpush.msra.mxu1 %v1483_v42  ;;  %v1463_v16 = vld [vmem:[#allocation6 + $0x260] sm:$0xff]  ;;  %v4288_v41 = vsel %vm1342_vm3, %v857_v22, %v1358_v32  ;;  %v673_v22 = vperm.slane %v4272_v40, 6 }
 0x144   :  { %2468 = vmatpush.msra.mxu2 %v1547_v43  ;;  %2488 = vmatpush.msra.mxu3 %v1611_v44  ;;  %v1527_v18 = vld [vmem:[#allocation6 + $0x460] sm:$0xff] }
 0x145   :  { %2429 = vmatpush.msra.mxu0 %v1415_v47  ;;  %2449 = vmatpush.msra.mxu1 %v1479_v48  ;;  %v1591_v60 = vld [vmem:[#allocation6 + $0x660] sm:$0xff] }
 0x146   :  { %2469 = vmatpush.msra.mxu2 %v1543_v50  ;;  %2489 = vmatpush.msra.mxu3 %v1607_v51  ;;  %v1395_v20 = vld [vmem:[#allocation6 + $0x40] sm:$0xff] }
 0x147   :  { %2430 = vmatpush.msra.mxu0 %v1411_v53  ;;  %2450 = vmatpush.msra.mxu1 %v1475_v54  ;;  %v1459_v1 = vld [vmem:[#allocation6 + $0x240] sm:$0xff] }
 0x148   :  { %2470 = vmatpush.msra.mxu2 %v1539_v57  ;;  %2490 = vmatpush.msra.mxu3 %v1603_v58  ;;  %v1523_v23 = vld [vmem:[#allocation6 + $0x440] sm:$0xff] }
 0x149   :  { %2431 = vmatpush.msra.mxu0 %v1407_v62  ;;  %2451 = vmatpush.msra.mxu1 %v1471_v63  ;;  %v1587_v8 = vld [vmem:[#allocation6 + $0x640] sm:$0xff] }
 0x14a   :  { %2471 = vmatpush.msra.mxu2 %v1535_v2  ;;  %2491 = vmatpush.msra.mxu3 %v1599_v3  ;;  %v1391_v24 = vld [vmem:[#allocation6 + $0x20] sm:$0xff]  ;;  %v876_v2 = vpop.f32.mrf.mxu0  ;;  %v916_v3 = vpop.f32.mrf.mxu2 }
 0x14b   :  { %2432 = vmatpush.msra.mxu0 %v1403_v5  ;;  %2452 = vmatpush.msra.mxu1 %v1467_v6  ;;  %v1455_v25 = vld [vmem:[#allocation6 + $0x220] sm:$0xff] }
 0x14c   :  { %2472 = vmatpush.msra.mxu2 %v1531_v10  ;;  %2492 = vmatpush.msra.mxu3 %v1595_v11  ;;  %v1519_v27 = vld [vmem:[#allocation6 + $0x420] sm:$0xff] }
 0x14d   :  { %2433 = vmatpush.msra.mxu0 %v1399_v15  ;;  %2453 = vmatpush.msra.mxu1 %v1463_v16  ;;  %v1583_v28 = vld [vmem:[#allocation6 + $0x620] sm:$0xff]  ;;  %v936_v15 = vpop.f32.mrf.mxu3 }
 0x14e   :  { %2473 = vmatpush.msra.mxu2 %v1527_v18  ;;  %2493 = vmatpush.msra.mxu3 %v1591_v60  ;;  %v1387_v29 = vld [vmem:[#allocation6] sm:$0xff]  ;;  %v671_v18 = vperm.slane %v4272_v40, 4 }
 0x14f   :  { %2434 = vmatpush.msra.mxu0 %v1395_v20  ;;  %2454 = vmatpush.msra.mxu1 %v1459_v1  ;;  %v1451_v30 = vld [vmem:[#allocation6 + $0x200] sm:$0xff]  ;;  %v672_v20 = vperm.slane %v4272_v40, 5 }
 0x150   :  { %2474 = vmatpush.msra.mxu2 %v1523_v23  ;;  %2494 = vmatpush.msra.mxu3 %v1587_v8  ;;  %v1515_v33 = vld [vmem:[#allocation6 + $0x400] sm:$0xff]  ;;  %v674_v23 = vperm.slane %v4272_v40, 7  ;;  %v877_v13 = vadd.f32 %v876_v2, %v671_v18 }
 0x151   :  { %2435 = vmatpush.msra.mxu0 %v1391_v24  ;;  %2455 = vmatpush.msra.mxu1 %v1455_v25  ;;  %v1579_v34 = vld [vmem:[#allocation6 + $0x600] sm:$0xff]  ;;  %v917_v31 = vadd.f32 %v916_v3, %v672_v20 }
 0x152   :  { %2475 = vmatpush.msra.mxu2 %v1519_v27  ;;  %2495 = vmatpush.msra.mxu3 %v1583_v28  ;;  %v1703_v37 = vld [vmem:[#allocation6 + $0x9e0] sm:$0xff]  ;;  %v956_v25 = vpop.f32.mrf.mxu0  ;;  %v996_v26 = vpop.f32.mrf.mxu2 }
 0x153   :  { %2436 = vmatpush.msra.mxu0 %v1387_v29  ;;  %2456 = vmatpush.msra.mxu1 %v1451_v30  ;;  %v1767_v38 = vld [vmem:[#allocation6 + $0xbe0] sm:$0xff] }
 0x154   :  { %2476 = vmatpush.msra.mxu2 %v1515_v33  ;;  %2496 = vmatpush.msra.mxu3 %v1579_v34  ;;  %v1831_v42 = vld [vmem:[#allocation6 + $0xde0] sm:$0xff]  ;;  %v957_v33 = vadd.f32 %v956_v25, %v673_v22  ;;  %v997_v34 = vadd.f32 %v996_v26, %v674_v23 }
 0x155   :  { %2437 = vmatmul.f32.vlgmr.msra.gmra.mxu0 %v4279_v35  ;;  %2457 = vmatmul.f32.vlgmr.msra.gmra.mxu1 %v4282_v36  ;;  %v1895_v43 = vld [vmem:[#allocation6 + $0xfe0] sm:$0xff] }
 0x156   :  { %2477 = vmatmul.f32.vlgmr.msra.gmra.mxu2 %v4286_v39  ;;  %2497 = vmatmul.f32.vlgmr.msra.gmra.mxu3 %v4288_v41  ;;  %v1699_v44 = vld [vmem:[#allocation6 + $0x9c0] sm:$0xff] }
 0x157   :  { %v1763_v45 = vld [vmem:[#allocation6 + $0xbc0] sm:$0xff]  ;;  %2501 = vmatpush.msrb.mxu0 %v1703_v37  ;;  %2521 = vmatpush.msrb.mxu1 %v1767_v38 }
 0x158   :  { %v1827_v46 = vld [vmem:[#allocation6 + $0xdc0] sm:$0xff]  ;;  %2541 = vmatpush.msrb.mxu2 %v1831_v42  ;;  %2561 = vmatpush.msrb.mxu3 %v1895_v43  ;;  %v976_v42 = vpop.f32.mrf.mxu1  ;;  %v1016_v43 = vpop.f32.mrf.mxu3 }
 0x159   :  { %v1891_v47 = vld [vmem:[#allocation6 + $0xfc0] sm:$0xff]  ;;  %2502 = vmatpush.msrb.mxu0 %v1699_v44  ;;  %2522 = vmatpush.msrb.mxu1 %v1763_v45 }
 0x15a   :  { %v1695_v48 = vld [vmem:[#allocation6 + $0x9a0] sm:$0xff]  ;;  %2542 = vmatpush.msrb.mxu2 %v1827_v46  ;;  %2562 = vmatpush.msrb.mxu3 %v1891_v47  ;;  %v897_v46 = vadd.f32 %v896_v14, %v877_v13 }
 0x15b   :  { %v1759_v49 = vld [vmem:[#allocation6 + $0xba0] sm:$0xff]  ;;  %2503 = vmatpush.msrb.mxu0 %v1695_v48 }
 0x15c   :  { %v1823_v50 = vld [vmem:[#allocation6 + $0xda0] sm:$0xff]  ;;  %2523 = vmatpush.msrb.mxu1 %v1759_v49  ;;  %v937_v49 = vadd.f32 %v936_v15, %v917_v31  ;;  %vm1343_vm4 = vcmp.ge.f32.partialorder %v897_v46, 0.0 }
 0x15d   :  { %v1887_v51 = vld [vmem:[#allocation6 + $0xfa0] sm:$0xff]  ;;  %2543 = vmatpush.msrb.mxu2 %v1823_v50 }
 0x15e   :  { %v1691_v52 = vld [vmem:[#allocation6 + $0x980] sm:$0xff]  ;;  %2563 = vmatpush.msrb.mxu3 %v1887_v51  ;;  %vm1344_vm5 = vcmp.ge.f32.partialorder %v937_v49, 0.0 }
 0x15f   :  { %v1755_v53 = vld [vmem:[#allocation6 + $0xb80] sm:$0xff]  ;;  %2504 = vmatpush.msrb.mxu0 %v1691_v52  ;;  %v977_v52 = vadd.f32 %v976_v42, %v957_v33  ;;  %v4310_v42 = vld [vmem:[#allocation4 + $0x8] sm:$0xff] }
 0x160   :  { %v1819_v54 = vld [vmem:[#allocation6 + $0xd80] sm:$0xff]  ;;  %2524 = vmatpush.msrb.mxu1 %v1755_v53  ;;  %v1017_v53 = vadd.f32 %v1016_v43, %v997_v34 }
 0x161   :  { %v1883_v55 = vld [vmem:[#allocation6 + $0xf80] sm:$0xff]  ;;  %2544 = vmatpush.msrb.mxu2 %v1819_v54  ;;  %v1361_v2 = vmul.f32 0.01, %v977_v52  ;;  %vm1345_vm6 = vcmp.ge.f32.partialorder %v977_v52, 0.0 }
 0x162   :  { %v1687_v56 = vld [vmem:[#allocation6 + $0x960] sm:$0xff]  ;;  %2564 = vmatpush.msrb.mxu3 %v1883_v55  ;;  %v1362_v3 = vmul.f32 0.01, %v1017_v53  ;;  %vm1346_vm7 = vcmp.ge.f32.partialorder %v1017_v53, 0.0 }
 0x163   :  { %v1751_v57 = vld [vmem:[#allocation6 + $0xb60] sm:$0xff]  ;;  %2505 = vmatpush.msrb.mxu0 %v1687_v56 }
 0x164   :  { %v1815_v58 = vld [vmem:[#allocation6 + $0xd60] sm:$0xff]  ;;  %2525 = vmatpush.msrb.mxu1 %v1751_v57 }
 0x165   :  { %v1879_v59 = vld [vmem:[#allocation6 + $0xf60] sm:$0xff]  ;;  %2545 = vmatpush.msrb.mxu2 %v1815_v58  ;;  %v1359_v58 = vmul.f32 0.01, %v897_v46 }
 0x166   :  { %v1683_v61 = vld [vmem:[#allocation6 + $0x940] sm:$0xff]  ;;  %2565 = vmatpush.msrb.mxu3 %v1879_v59 }
 0x167   :  { %v1747_v62 = vld [vmem:[#allocation6 + $0xb40] sm:$0xff]  ;;  %2506 = vmatpush.msrb.mxu0 %v1683_v61 }
 0x168   :  { %v1811_v63 = vld [vmem:[#allocation6 + $0xd40] sm:$0xff]  ;;  %2526 = vmatpush.msrb.mxu1 %v1747_v62  ;;  %v1360_v62 = vmul.f32 0.01, %v937_v49 }
 0x169   :  { %v1875_v0 = vld [vmem:[#allocation6 + $0xf40] sm:$0xff]  ;;  %2546 = vmatpush.msrb.mxu2 %v1811_v63 }
 0x16a   :  { %v1679_v4 = vld [vmem:[#allocation6 + $0x920] sm:$0xff]  ;;  %2566 = vmatpush.msrb.mxu3 %v1875_v0  ;;  %v1036_v13 = vpop.f32.mrf.mxu0 }
 0x16b   :  { %v1743_v5 = vld [vmem:[#allocation6 + $0xb20] sm:$0xff]  ;;  %2507 = vmatpush.msrb.mxu0 %v1679_v4  ;;  %v1056_v43 = vpop.f32.mrf.mxu1 }
 0x16c   :  { %v1807_v6 = vld [vmem:[#allocation6 + $0xd20] sm:$0xff]  ;;  %2527 = vmatpush.msrb.mxu1 %v1743_v5 }
 0x16d   :  { %v1871_v7 = vld [vmem:[#allocation6 + $0xf20] sm:$0xff]  ;;  %2547 = vmatpush.msrb.mxu2 %v1807_v6  ;;  %v4297_v6 = vsel %vm1343_vm4, %v897_v46, %v1359_v58 }
 0x16e   :  { %v1675_v9 = vld [vmem:[#allocation6 + $0x900] sm:$0xff]  ;;  %2567 = vmatpush.msrb.mxu3 %v1871_v7  ;;  %v4300_v7 = vsel %vm1344_vm5, %v937_v49, %v1360_v62  ;;  %v1076_v34 = vpop.f32.mrf.mxu2 }
 0x16f   :  { %v1739_v10 = vld [vmem:[#allocation6 + $0xb00] sm:$0xff]  ;;  %2508 = vmatpush.msrb.mxu0 %v1675_v9 }
 0x170   :  { %v1803_v11 = vld [vmem:[#allocation6 + $0xd00] sm:$0xff]  ;;  %2528 = vmatpush.msrb.mxu1 %v1739_v10 }
 0x171   :  { %v1867_v12 = vld [vmem:[#allocation6 + $0xf00] sm:$0xff]  ;;  %2548 = vmatpush.msrb.mxu2 %v1803_v11  ;;  %v4304_v11 = vsel %vm1345_vm6, %v977_v52, %v1361_v2 }
 0x172   :  { %v1671_v16 = vld [vmem:[#allocation6 + $0x8e0] sm:$0xff]  ;;  %2568 = vmatpush.msrb.mxu3 %v1867_v12  ;;  %v4306_v12 = vsel %vm1346_vm7, %v1017_v53, %v1362_v3 }
 0x173   :  { %v1735_v17 = vld [vmem:[#allocation6 + $0xae0] sm:$0xff]  ;;  %2509 = vmatpush.msrb.mxu0 %v1671_v16 }
 0x174   :  { %v1799_v60 = vld [vmem:[#allocation6 + $0xce0] sm:$0xff]  ;;  %2529 = vmatpush.msrb.mxu1 %v1735_v17 }
 0x175   :  { %v1863_v19 = vld [vmem:[#allocation6 + $0xee0] sm:$0xff]  ;;  %2549 = vmatpush.msrb.mxu2 %v1799_v60 }
 0x176   :  { %v1667_v1 = vld [vmem:[#allocation6 + $0x8c0] sm:$0xff]  ;;  %2569 = vmatpush.msrb.mxu3 %v1863_v19 }
 0x177   :  { %v1731_v21 = vld [vmem:[#allocation6 + $0xac0] sm:$0xff]  ;;  %2510 = vmatpush.msrb.mxu0 %v1667_v1 }
 0x178   :  { %v1795_v8 = vld [vmem:[#allocation6 + $0xcc0] sm:$0xff]  ;;  %2530 = vmatpush.msrb.mxu1 %v1731_v21 }
 0x179   :  { %v1859_v24 = vld [vmem:[#allocation6 + $0xec0] sm:$0xff]  ;;  %2550 = vmatpush.msrb.mxu2 %v1795_v8 }
 0x17a   :  { %v1663_v27 = vld [vmem:[#allocation6 + $0x8a0] sm:$0xff]  ;;  %2570 = vmatpush.msrb.mxu3 %v1859_v24 }
 0x17b   :  { %v1727_v28 = vld [vmem:[#allocation6 + $0xaa0] sm:$0xff]  ;;  %2511 = vmatpush.msrb.mxu0 %v1663_v27 }
 0x17c   :  { %v1791_v29 = vld [vmem:[#allocation6 + $0xca0] sm:$0xff]  ;;  %2531 = vmatpush.msrb.mxu1 %v1727_v28 }
 0x17d   :  { %v1855_v30 = vld [vmem:[#allocation6 + $0xea0] sm:$0xff]  ;;  %2551 = vmatpush.msrb.mxu2 %v1791_v29 }
 0x17e   :  { %v1659_v32 = vld [vmem:[#allocation6 + $0x880] sm:$0xff]  ;;  %2571 = vmatpush.msrb.mxu3 %v1855_v30 }
 0x17f   :  { %v1723_v40 = vld [vmem:[#allocation6 + $0xa80] sm:$0xff]  ;;  %2512 = vmatpush.msrb.mxu0 %v1659_v32 }
 0x180   :  { %v1787_v37 = vld [vmem:[#allocation6 + $0xc80] sm:$0xff]  ;;  %2532 = vmatpush.msrb.mxu1 %v1723_v40 }
 0x181   :  { %v1851_v38 = vld [vmem:[#allocation6 + $0xe80] sm:$0xff]  ;;  %2552 = vmatpush.msrb.mxu2 %v1787_v37 }
 0x182   :  { %v1655_v44 = vld [vmem:[#allocation6 + $0x860] sm:$0xff]  ;;  %2572 = vmatpush.msrb.mxu3 %v1851_v38 }
 0x183   :  { %v1719_v45 = vld [vmem:[#allocation6 + $0xa60] sm:$0xff]  ;;  %2513 = vmatpush.msrb.mxu0 %v1655_v44  ;;  %v1116_v58 = vpop.f32.mrf.mxu0 }
 0x184   :  { %v1783_v47 = vld [vmem:[#allocation6 + $0xc60] sm:$0xff]  ;;  %2533 = vmatpush.msrb.mxu1 %v1719_v45 }
 0x185   :  { %v1847_v48 = vld [vmem:[#allocation6 + $0xe60] sm:$0xff]  ;;  %2553 = vmatpush.msrb.mxu2 %v1783_v47 }
 0x186   :  { %v1651_v50 = vld [vmem:[#allocation6 + $0x840] sm:$0xff]  ;;  %2573 = vmatpush.msrb.mxu3 %v1847_v48 }
 0x187   :  { %v1715_v51 = vld [vmem:[#allocation6 + $0xa40] sm:$0xff]  ;;  %2514 = vmatpush.msrb.mxu0 %v1651_v50  ;;  %v675_v50 = vperm.slane %v4310_v42, 0 }
 0x188   :  { %v1779_v54 = vld [vmem:[#allocation6 + $0xc40] sm:$0xff]  ;;  %2534 = vmatpush.msrb.mxu1 %v1715_v51  ;;  %v1096_v51 = vpop.f32.mrf.mxu3 }
 0x189   :  { %v1843_v55 = vld [vmem:[#allocation6 + $0xe40] sm:$0xff]  ;;  %2554 = vmatpush.msrb.mxu2 %v1779_v54  ;;  %v677_v54 = vperm.slane %v4310_v42, 2  ;;  %v1037_v2 = vadd.f32 %v1036_v13, %v675_v50 }
 0x18a   :  { %v1647_v56 = vld [vmem:[#allocation6 + $0x820] sm:$0xff]  ;;  %2574 = vmatpush.msrb.mxu3 %v1843_v55  ;;  %v676_v55 = vperm.slane %v4310_v42, 1 }
 0x18b   :  { %v1711_v57 = vld [vmem:[#allocation6 + $0xa20] sm:$0xff]  ;;  %2515 = vmatpush.msrb.mxu0 %v1647_v56 }
 0x18c   :  { %v1775_v59 = vld [vmem:[#allocation6 + $0xc20] sm:$0xff]  ;;  %2535 = vmatpush.msrb.mxu1 %v1711_v57 }
 0x18d   :  { %v1839_v61 = vld [vmem:[#allocation6 + $0xe20] sm:$0xff]  ;;  %2555 = vmatpush.msrb.mxu2 %v1775_v59 }
 0x18e   :  { %v1643_v63 = vld [vmem:[#allocation6 + $0x800] sm:$0xff]  ;;  %2575 = vmatpush.msrb.mxu3 %v1839_v61 }
 0x18f   :  { %v1707_v0 = vld [vmem:[#allocation6 + $0xa00] sm:$0xff]  ;;  %2516 = vmatpush.msrb.mxu0 %v1643_v63 }
 0x190   :  { %v1771_v4 = vld [vmem:[#allocation6 + $0xc00] sm:$0xff]  ;;  %2536 = vmatpush.msrb.mxu1 %v1707_v0  ;;  %2517 = vmatmul.f32.vlgmr.msrb.gmra.mxu0 %v4297_v6  ;;  %v678_v0 = vperm.slane %v4310_v42, 3 }
 0x191   :  { %v1835_v5 = vld [vmem:[#allocation6 + $0xe00] sm:$0xff]  ;;  %2556 = vmatpush.msrb.mxu2 %v1771_v4  ;;  %2537 = vmatmul.f32.vlgmr.msrb.gmra.mxu1 %v4300_v7 }
 0x192   :  { %2576 = vmatpush.msrb.mxu3 %v1835_v5  ;;  %v1959_v9 = vld [vmem:[#allocation6 + $0x11e0] sm:$0xff]  ;;  %2557 = vmatmul.f32.vlgmr.msrb.gmra.mxu2 %v4304_v11  ;;  %v1117_v5 = vadd.f32 %v1116_v58, %v677_v54 }
 0x193   :  { %v2023_v10 = vld [vmem:[#allocation6 + $0x13e0] sm:$0xff]  ;;  %2577 = vmatmul.f32.vlgmr.msrb.gmra.mxu3 %v4306_v12  ;;  %2581 = vmatpush.msra.mxu0 %v1959_v9  ;;  %v1156_v9 = vpop.f32.mrf.mxu2 }
 0x194   :  { %v2087_v14 = vld [vmem:[#allocation6 + $0x15e0] sm:$0xff]  ;;  %2601 = vmatpush.msra.mxu1 %v2023_v10  ;;  %v1077_v10 = vadd.f32 %v1076_v34, %v676_v55 }
 0x195   :  { %v2151_v15 = vld [vmem:[#allocation6 + $0x17e0] sm:$0xff]  ;;  %2621 = vmatpush.msra.mxu2 %v2087_v14 }
 0x196   :  { %v1955_v16 = vld [vmem:[#allocation6 + $0x11c0] sm:$0xff]  ;;  %2641 = vmatpush.msra.mxu3 %v2151_v15 }
 0x197   :  { %v2019_v17 = vld [vmem:[#allocation6 + $0x13c0] sm:$0xff]  ;;  %2582 = vmatpush.msra.mxu0 %v1955_v16  ;;  %v1136_v16 = vpop.f32.mrf.mxu1 }
 0x198   :  { %v2083_v18 = vld [vmem:[#allocation6 + $0x15c0] sm:$0xff]  ;;  %2602 = vmatpush.msra.mxu1 %v2019_v17 }
 0x199   :  { %v2147_v60 = vld [vmem:[#allocation6 + $0x17c0] sm:$0xff]  ;;  %2622 = vmatpush.msra.mxu2 %v2083_v18 }
 0x19a   :  { %v1951_v19 = vld [vmem:[#allocation6 + $0x11a0] sm:$0xff]  ;;  %2642 = vmatpush.msra.mxu3 %v2147_v60 }
 0x19b   :  { %v2015_v20 = vld [vmem:[#allocation6 + $0x13a0] sm:$0xff]  ;;  %2583 = vmatpush.msra.mxu0 %v1951_v19 }
 0x19c   :  { %v2079_v1 = vld [vmem:[#allocation6 + $0x15a0] sm:$0xff]  ;;  %2603 = vmatpush.msra.mxu1 %v2015_v20  ;;  %v1157_v20 = vadd.f32 %v1156_v9, %v678_v0 }
 0x19d   :  { %v2143_v21 = vld [vmem:[#allocation6 + $0x17a0] sm:$0xff]  ;;  %2623 = vmatpush.msra.mxu2 %v2079_v1  ;;  %v1057_v1 = vadd.f32 %v1056_v43, %v1037_v2 }
 0x19e   :  { %v1947_v22 = vld [vmem:[#allocation6 + $0x1180] sm:$0xff]  ;;  %2643 = vmatpush.msra.mxu3 %v2143_v21 }
 0x19f   :  { %v2011_v23 = vld [vmem:[#allocation6 + $0x1380] sm:$0xff]  ;;  %2584 = vmatpush.msra.mxu0 %v1947_v22  ;;  %vm1347_vm9 = vcmp.ge.f32.partialorder %v1057_v1, 0.0 }
 0x1a0   :  { %v2075_v8 = vld [vmem:[#allocation6 + $0x1580] sm:$0xff]  ;;  %2604 = vmatpush.msra.mxu1 %v2011_v23  ;;  %v1137_v23 = vadd.f32 %v1136_v16, %v1117_v5 }
 0x1a1   :  { %v2139_v24 = vld [vmem:[#allocation6 + $0x1780] sm:$0xff]  ;;  %2624 = vmatpush.msra.mxu2 %v2075_v8  ;;  %v1176_v8 = vpop.f32.mrf.mxu3 }
 0x1a2   :  { %v1943_v25 = vld [vmem:[#allocation6 + $0x1160] sm:$0xff]  ;;  %2644 = vmatpush.msra.mxu3 %v2139_v24  ;;  %v1097_v24 = vadd.f32 %v1096_v51, %v1077_v10  ;;  %v1177_v13 = vadd.f32 %v1176_v8, %v1157_v20  ;;  %vm1349_vm8 = vcmp.ge.f32.partialorder %v1137_v23, 0.0 }
 0x1a3   :  { %v2007_v26 = vld [vmem:[#allocation6 + $0x1360] sm:$0xff]  ;;  %2585 = vmatpush.msra.mxu0 %v1943_v25 }
 0x1a4   :  { %v2071_v27 = vld [vmem:[#allocation6 + $0x1560] sm:$0xff]  ;;  %2605 = vmatpush.msra.mxu1 %v2007_v26  ;;  %v1364_v34 = vmul.f32 0.01, %v1097_v24  ;;  %vm1348_vm10 = vcmp.ge.f32.partialorder %v1097_v24, 0.0  ;;  %vm1350_vm11 = vcmp.ge.f32.partialorder %v1177_v13, 0.0 }
 0x1a5   :  { %v2135_v28 = vld [vmem:[#allocation6 + $0x1760] sm:$0xff]  ;;  %2625 = vmatpush.msra.mxu2 %v2071_v27 }
 0x1a6   :  { %v1939_v29 = vld [vmem:[#allocation6 + $0x1140] sm:$0xff]  ;;  %2645 = vmatpush.msra.mxu3 %v2135_v28 }
 0x1a7   :  { %v2003_v30 = vld [vmem:[#allocation6 + $0x1340] sm:$0xff]  ;;  %2586 = vmatpush.msra.mxu0 %v1939_v29 }
 0x1a8   :  { %v2067_v31 = vld [vmem:[#allocation6 + $0x1540] sm:$0xff]  ;;  %2606 = vmatpush.msra.mxu1 %v2003_v30 }
 0x1a9   :  { %v2131_v32 = vld [vmem:[#allocation6 + $0x1740] sm:$0xff]  ;;  %2626 = vmatpush.msra.mxu2 %v2067_v31  ;;  %v1363_v31 = vmul.f32 0.01, %v1057_v1 }
 0x1aa   :  { %v1935_v40 = vld [vmem:[#allocation6 + $0x1120] sm:$0xff]  ;;  %2646 = vmatpush.msra.mxu3 %v2131_v32  ;;  %v1365_v32 = vmul.f32 0.01, %v1137_v23 }
 0x1ab   :  { %v1999_v33 = vld [vmem:[#allocation6 + $0x1320] sm:$0xff]  ;;  %2587 = vmatpush.msra.mxu0 %v1935_v40 }
 0x1ac   :  { %v2063_v37 = vld [vmem:[#allocation6 + $0x1520] sm:$0xff]  ;;  %2607 = vmatpush.msra.mxu1 %v1999_v33 }
 0x1ad   :  { %v2127_v38 = vld [vmem:[#allocation6 + $0x1720] sm:$0xff]  ;;  %2627 = vmatpush.msra.mxu2 %v2063_v37 }
 0x1ae   :  { %v1931_v44 = vld [vmem:[#allocation6 + $0x1100] sm:$0xff]  ;;  %2647 = vmatpush.msra.mxu3 %v2127_v38 }
 0x1af   :  { %v1995_v45 = vld [vmem:[#allocation6 + $0x1300] sm:$0xff]  ;;  %2588 = vmatpush.msra.mxu0 %v1931_v44 }
 0x1b0   :  { %v2059_v46 = vld [vmem:[#allocation6 + $0x1500] sm:$0xff]  ;;  %2608 = vmatpush.msra.mxu1 %v1995_v45  ;;  %v1366_v45 = vmul.f32 0.01, %v1177_v13 }
 0x1b1   :  { %v2123_v47 = vld [vmem:[#allocation6 + $0x1700] sm:$0xff]  ;;  %2628 = vmatpush.msra.mxu2 %v2059_v46  ;;  %v4317_v46 = vsel %vm1349_vm8, %v1137_v23, %v1365_v32 }
 0x1b2   :  { %v1927_v48 = vld [vmem:[#allocation6 + $0x10e0] sm:$0xff]  ;;  %2648 = vmatpush.msra.mxu3 %v2123_v47  ;;  %v4329_v54 = vsel %vm1350_vm11, %v1177_v13, %v1366_v45 }
 0x1b3   :  { %v1991_v49 = vld [vmem:[#allocation6 + $0x12e0] sm:$0xff]  ;;  %2589 = vmatpush.msra.mxu0 %v1927_v48  ;;  %v4320_v48 = vsel %vm1347_vm9, %v1057_v1, %v1363_v31 }
 0x1b4   :  { %v2055_v52 = vld [vmem:[#allocation6 + $0x14e0] sm:$0xff]  ;;  %2609 = vmatpush.msra.mxu1 %v1991_v49  ;;  %v4323_v49 = vsel %vm1348_vm10, %v1097_v24, %v1364_v34 }
 0x1b5   :  { %v2119_v53 = vld [vmem:[#allocation6 + $0x16e0] sm:$0xff]  ;;  %2629 = vmatpush.msra.mxu2 %v2055_v52 }
 0x1b6   :  { %v1923_v56 = vld [vmem:[#allocation6 + $0x10c0] sm:$0xff]  ;;  %2649 = vmatpush.msra.mxu3 %v2119_v53 }
 0x1b7   :  { %v1987_v57 = vld [vmem:[#allocation6 + $0x12c0] sm:$0xff]  ;;  %2590 = vmatpush.msra.mxu0 %v1923_v56 }
 0x1b8   :  { %v2051_v59 = vld [vmem:[#allocation6 + $0x14c0] sm:$0xff]  ;;  %2610 = vmatpush.msra.mxu1 %v1987_v57 }
 0x1b9   :  { %v2115_v61 = vld [vmem:[#allocation6 + $0x16c0] sm:$0xff]  ;;  %2630 = vmatpush.msra.mxu2 %v2051_v59 }
 0x1ba   :  { %v1919_v62 = vld [vmem:[#allocation6 + $0x10a0] sm:$0xff]  ;;  %2650 = vmatpush.msra.mxu3 %v2115_v61 }
 0x1bb   :  { %v1983_v63 = vld [vmem:[#allocation6 + $0x12a0] sm:$0xff]  ;;  %2591 = vmatpush.msra.mxu0 %v1919_v62 }
 0x1bc   :  { %v2047_v3 = vld [vmem:[#allocation6 + $0x14a0] sm:$0xff]  ;;  %2611 = vmatpush.msra.mxu1 %v1983_v63 }
 0x1bd   :  { %v2111_v4 = vld [vmem:[#allocation6 + $0x16a0] sm:$0xff]  ;;  %2631 = vmatpush.msra.mxu2 %v2047_v3 }
 0x1be   :  { %v1915_v14 = vld [vmem:[#allocation6 + $0x1080] sm:$0xff]  ;;  %2651 = vmatpush.msra.mxu3 %v2111_v4 }
 0x1bf   :  { %v1979_v15 = vld [vmem:[#allocation6 + $0x1280] sm:$0xff]  ;;  %2592 = vmatpush.msra.mxu0 %v1915_v14 }
 0x1c0   :  { %v2043_v17 = vld [vmem:[#allocation6 + $0x1480] sm:$0xff]  ;;  %2612 = vmatpush.msra.mxu1 %v1979_v15 }
 0x1c1   :  { %v2107_v18 = vld [vmem:[#allocation6 + $0x1680] sm:$0xff]  ;;  %2632 = vmatpush.msra.mxu2 %v2043_v17 }
 0x1c2   :  { %v1911_v60 = vld [vmem:[#allocation6 + $0x1060] sm:$0xff]  ;;  %2652 = vmatpush.msra.mxu3 %v2107_v18 }
 0x1c3   :  { %v1975_v19 = vld [vmem:[#allocation6 + $0x1260] sm:$0xff]  ;;  %2593 = vmatpush.msra.mxu0 %v1911_v60 }
 0x1c4   :  { %v2039_v21 = vld [vmem:[#allocation6 + $0x1460] sm:$0xff]  ;;  %2613 = vmatpush.msra.mxu1 %v1975_v19 }
 0x1c5   :  { %v2103_v22 = vld [vmem:[#allocation6 + $0x1660] sm:$0xff]  ;;  %2633 = vmatpush.msra.mxu2 %v2039_v21 }
 0x1c6   :  { %v1907_v25 = vld [vmem:[#allocation6 + $0x1040] sm:$0xff]  ;;  %2653 = vmatpush.msra.mxu3 %v2103_v22 }
 0x1c7   :  { %v1971_v26 = vld [vmem:[#allocation6 + $0x1240] sm:$0xff]  ;;  %2594 = vmatpush.msra.mxu0 %v1907_v25  ;;  %v679_v25 = vperm.slane %v4310_v42, 4 }
 0x1c8   :  { %v2035_v27 = vld [vmem:[#allocation6 + $0x1440] sm:$0xff]  ;;  %2614 = vmatpush.msra.mxu1 %v1971_v26 }
 0x1c9   :  { %v2099_v28 = vld [vmem:[#allocation6 + $0x1640] sm:$0xff]  ;;  %2634 = vmatpush.msra.mxu2 %v2035_v27 }
 0x1ca   :  { %v1903_v29 = vld [vmem:[#allocation6 + $0x1020] sm:$0xff]  ;;  %2654 = vmatpush.msra.mxu3 %v2099_v28  ;;  %v1196_v28 = vpop.f32.mrf.mxu0 }
 0x1cb   :  { %v1967_v30 = vld [vmem:[#allocation6 + $0x1220] sm:$0xff]  ;;  %2595 = vmatpush.msra.mxu0 %v1903_v29 }
 0x1cc   :  { %v2031_v40 = vld [vmem:[#allocation6 + $0x1420] sm:$0xff]  ;;  %2615 = vmatpush.msra.mxu1 %v1967_v30  ;;  %v680_v30 = vperm.slane %v4310_v42, 5 }
 0x1cd   :  { %v2095_v33 = vld [vmem:[#allocation6 + $0x1620] sm:$0xff]  ;;  %2635 = vmatpush.msra.mxu2 %v2031_v40  ;;  %v1236_v40 = vpop.f32.mrf.mxu2 }
 0x1ce   :  { %v1899_v37 = vld [vmem:[#allocation6 + $0x1000] sm:$0xff]  ;;  %2655 = vmatpush.msra.mxu3 %v2095_v33 }
 0x1cf   :  { %v1963_v38 = vld [vmem:[#allocation6 + $0x1200] sm:$0xff]  ;;  %2596 = vmatpush.msra.mxu0 %v1899_v37  ;;  %v1197_v37 = vadd.f32 %v1196_v28, %v679_v25  ;;  %v1508_v28 = vld [vmem:[#allocation6 + $0x3c8] sm:$0xff] }
 0x1d0   :  { %v2027_v43 = vld [vmem:[#allocation6 + $0x1400] sm:$0xff]  ;;  %2616 = vmatpush.msra.mxu1 %v1963_v38  ;;  %2597 = vmatmul.f32.vlgmr.msra.gmra.mxu0 %v4320_v48 }
 0x1d1   :  { %v2091_v44 = vld [vmem:[#allocation6 + $0x1600] sm:$0xff]  ;;  %2636 = vmatpush.msra.mxu2 %v2027_v43  ;;  %2617 = vmatmul.f32.vlgmr.msra.gmra.mxu1 %v4323_v49 }
 0x1d2   :  { %v2215_v47 = vld [vmem:[#allocation6 + $0x19e0] sm:$0xff]  ;;  %2656 = vmatpush.msra.mxu3 %v2091_v44  ;;  %2637 = vmatmul.f32.vlgmr.msra.gmra.mxu2 %v4317_v46  ;;  %v1216_v44 = vpop.f32.mrf.mxu1 }
 0x1d3   :  { %v2279_v50 = vld [vmem:[#allocation6 + $0x1be0] sm:$0xff]  ;;  %2661 = vmatpush.msrb.mxu0 %v2215_v47  ;;  %2657 = vmatmul.f32.vlgmr.msra.gmra.mxu3 %v4329_v54 }
 0x1d4   :  { %v2343_v51 = vld [vmem:[#allocation6 + $0x1de0] sm:$0xff]  ;;  %2681 = vmatpush.msrb.mxu1 %v2279_v50  ;;  %v1237_v50 = vadd.f32 %v1236_v40, %v680_v30  ;;  %v1572_v30 = vld [vmem:[#allocation6 + $0x5c8] sm:$0xff] }
 0x1d5   :  { %v2407_v52 = vld [vmem:[#allocation6 + $0x1fe0] sm:$0xff]  ;;  %2701 = vmatpush.msrb.mxu2 %v2343_v51  ;;  %v1504_v40 = vld [vmem:[#allocation6 + $0x3a8] sm:$0xff] }
 0x1d6   :  { %v2211_v53 = vld [vmem:[#allocation6 + $0x19c0] sm:$0xff]  ;;  %2721 = vmatpush.msrb.mxu3 %v2407_v52 }
 0x1d7   :  { %v2275_v55 = vld [vmem:[#allocation6 + $0x1bc0] sm:$0xff]  ;;  %2662 = vmatpush.msrb.mxu0 %v2211_v53  ;;  %v1256_v53 = vpop.f32.mrf.mxu3 }
 0x1d8   :  { %v2339_v56 = vld [vmem:[#allocation6 + $0x1dc0] sm:$0xff]  ;;  %2682 = vmatpush.msrb.mxu1 %v2275_v55 }
 0x1d9   :  { %v2403_v57 = vld [vmem:[#allocation6 + $0x1fc0] sm:$0xff]  ;;  %2702 = vmatpush.msrb.mxu2 %v2339_v56 }
 0x1da   :  { %v2207_v58 = vld [vmem:[#allocation6 + $0x19a0] sm:$0xff]  ;;  %2722 = vmatpush.msrb.mxu3 %v2403_v57  ;;  %v1217_v57 = vadd.f32 %v1216_v44, %v1197_v37 }
 0x1db   :  { %v2271_v59 = vld [vmem:[#allocation6 + $0x1ba0] sm:$0xff]  ;;  %2663 = vmatpush.msrb.mxu0 %v2207_v58 }
 0x1dc   :  { %v2335_v61 = vld [vmem:[#allocation6 + $0x1da0] sm:$0xff]  ;;  %2683 = vmatpush.msrb.mxu1 %v2271_v59  ;;  %vm1351_vm12 = vcmp.ge.f32.partialorder %v1217_v57, 0.0 }
 0x1dd   :  { %v2399_v62 = vld [vmem:[#allocation6 + $0x1fa0] sm:$0xff]  ;;  %2703 = vmatpush.msrb.mxu2 %v2335_v61 }
 0x1de   :  { %v2203_v63 = vld [vmem:[#allocation6 + $0x1980] sm:$0xff]  ;;  %2723 = vmatpush.msrb.mxu3 %v2399_v62 }
 0x1df   :  { %v2267_v0 = vld [vmem:[#allocation6 + $0x1b80] sm:$0xff]  ;;  %2664 = vmatpush.msrb.mxu0 %v2203_v63  ;;  %v1257_v63 = vadd.f32 %v1256_v53, %v1237_v50  ;;  %v1336_v44 = vpop.f32.mrf.mxu3  ;;  %v1432_v50 = vld [vmem:[#allocation6 + $0x168] sm:$0xff] }
 0x1e0   :  { %v2331_v2 = vld [vmem:[#allocation6 + $0x1d80] sm:$0xff]  ;;  %2684 = vmatpush.msrb.mxu1 %v2267_v0  ;;  %v1624_v53 = vld [vmem:[#allocation6 + $0x768] sm:$0xff] }
 0x1e1   :  { %v2395_v3 = vld [vmem:[#allocation6 + $0x1f80] sm:$0xff]  ;;  %2704 = vmatpush.msrb.mxu2 %v2331_v2  ;;  %vm1352_vm13 = vcmp.ge.f32.partialorder %v1257_v63, 0.0 }
 0x1e2   :  { %v2199_v4 = vld [vmem:[#allocation6 + $0x1960] sm:$0xff]  ;;  %2724 = vmatpush.msrb.mxu3 %v2395_v3  ;;  %v681_v3 = vperm.slane %v4310_v42, 6 }
 0x1e3   :  { %v2263_v5 = vld [vmem:[#allocation6 + $0x1b60] sm:$0xff]  ;;  %2665 = vmatpush.msrb.mxu0 %v2199_v4  ;;  %v1367_v4 = vmul.f32 0.01, %v1217_v57 }
 0x1e4   :  { %v2327_v9 = vld [vmem:[#allocation6 + $0x1d60] sm:$0xff]  ;;  %2685 = vmatpush.msrb.mxu1 %v2263_v5 }
 0x1e5   :  { %v2391_v10 = vld [vmem:[#allocation6 + $0x1f60] sm:$0xff]  ;;  %2705 = vmatpush.msrb.mxu2 %v2327_v9 }
 0x1e6   :  { %v2195_v14 = vld [vmem:[#allocation6 + $0x1940] sm:$0xff]  ;;  %2725 = vmatpush.msrb.mxu3 %v2391_v10  ;;  %v1276_v10 = vpop.f32.mrf.mxu0 }
 0x1e7   :  { %v2259_v15 = vld [vmem:[#allocation6 + $0x1b40] sm:$0xff]  ;;  %2666 = vmatpush.msrb.mxu0 %v2195_v14 }
 0x1e8   :  { %v2323_v16 = vld [vmem:[#allocation6 + $0x1d40] sm:$0xff]  ;;  %2686 = vmatpush.msrb.mxu1 %v2259_v15 }
 0x1e9   :  { %v2387_v17 = vld [vmem:[#allocation6 + $0x1f40] sm:$0xff]  ;;  %2706 = vmatpush.msrb.mxu2 %v2323_v16  ;;  %v1368_v16 = vmul.f32 0.01, %v1257_v63 }
 0x1ea   :  { %v2191_v18 = vld [vmem:[#allocation6 + $0x1920] sm:$0xff]  ;;  %2726 = vmatpush.msrb.mxu3 %v2387_v17 }
 0x1eb   :  { %v2255_v60 = vld [vmem:[#allocation6 + $0x1b20] sm:$0xff]  ;;  %2667 = vmatpush.msrb.mxu0 %v2191_v18  ;;  %v4339_v25 = vsel %vm1352_vm13, %v1257_v63, %v1368_v16  ;;  %v1480_v16 = vld [vmem:[#allocation6 + $0x2e8] sm:$0xff] }
 0x1ec   :  { %v2319_v19 = vld [vmem:[#allocation6 + $0x1d20] sm:$0xff]  ;;  %2687 = vmatpush.msrb.mxu1 %v2255_v60 }
 0x1ed   :  { %v2383_v20 = vld [vmem:[#allocation6 + $0x1f20] sm:$0xff]  ;;  %2707 = vmatpush.msrb.mxu2 %v2319_v19 }
 0x1ee   :  { %v2187_v1 = vld [vmem:[#allocation6 + $0x1900] sm:$0xff]  ;;  %2727 = vmatpush.msrb.mxu3 %v2383_v20  ;;  %v1277_v20 = vadd.f32 %v1276_v10, %v681_v3  ;;  %v1616_v3 = vld [vmem:[#allocation6 + $0x728] sm:$0xff] }
 0x1ef   :  { %v2251_v21 = vld [vmem:[#allocation6 + $0x1b00] sm:$0xff]  ;;  %2668 = vmatpush.msrb.mxu0 %v2187_v1  ;;  %v4336_v1 = vsel %vm1351_vm12, %v1217_v57, %v1367_v4  ;;  %v1428_v57 = vld [vmem:[#allocation6 + $0x148] sm:$0xff] }
 0x1f0   :  { %v2315_v22 = vld [vmem:[#allocation6 + $0x1d00] sm:$0xff]  ;;  %2688 = vmatpush.msrb.mxu1 %v2251_v21  ;;  %v1512_v21 = vld [vmem:[#allocation6 + $0x3e8] sm:$0xff] }
 0x1f1   :  { %v2379_v23 = vld [vmem:[#allocation6 + $0x1f00] sm:$0xff]  ;;  %2708 = vmatpush.msrb.mxu2 %v2315_v22  ;;  %v1296_v22 = vpop.f32.mrf.mxu1  ;;  %v1420_v4 = vld [vmem:[#allocation6 + $0x108] sm:$0xff] }
 0x1f2   :  { %v2183_v8 = vld [vmem:[#allocation6 + $0x18e0] sm:$0xff]  ;;  %2728 = vmatpush.msrb.mxu3 %v2379_v23  ;;  %v1448_v23 = vld [vmem:[#allocation6 + $0x1e8] sm:$0xff] }
 0x1f3   :  { %v2247_v24 = vld [vmem:[#allocation6 + $0x1ae0] sm:$0xff]  ;;  %2669 = vmatpush.msrb.mxu0 %v2183_v8  ;;  %v1576_v8 = vld [vmem:[#allocation6 + $0x5e8] sm:$0xff] }
 0x1f4   :  { %v2311_v26 = vld [vmem:[#allocation6 + $0x1ce0] sm:$0xff]  ;;  %2689 = vmatpush.msrb.mxu1 %v2247_v24  ;;  %v1640_v24 = vld [vmem:[#allocation6 + $0x7e8] sm:$0xff] }
 0x1f5   :  { %v2375_v27 = vld [vmem:[#allocation6 + $0x1ee0] sm:$0xff]  ;;  %2709 = vmatpush.msrb.mxu2 %v2311_v26  ;;  %v682_v26 = vperm.slane %v4310_v42, 7  ;;  %v1632_v42 = vld [vmem:[#allocation6 + $0x7a8] sm:$0xff] }
 0x1f6   :  { %v2179_v13 = vld [vmem:[#allocation6 + $0x18c0] sm:$0xff]  ;;  %2729 = vmatpush.msrb.mxu3 %v2375_v27  ;;  %v1444_v27 = vld [vmem:[#allocation6 + $0x1c8] sm:$0xff] }
 0x1f7   :  { %v2243_v29 = vld [vmem:[#allocation6 + $0x1ac0] sm:$0xff]  ;;  %2670 = vmatpush.msrb.mxu0 %v2179_v13  ;;  %v1297_v13 = vadd.f32 %v1296_v22, %v1277_v20  ;;  %v1612_v10 = vld [vmem:[#allocation6 + $0x708] sm:$0xff] }
 0x1f8   :  { %v2307_v31 = vld [vmem:[#allocation6 + $0x1cc0] sm:$0xff]  ;;  %2690 = vmatpush.msrb.mxu1 %v2243_v29  ;;  %v1316_v29 = vpop.f32.mrf.mxu2  ;;  %v1540_v20 = vld [vmem:[#allocation6 + $0x4c8] sm:$0xff] }
 0x1f9   :  { %v2371_v32 = vld [vmem:[#allocation6 + $0x1ec0] sm:$0xff]  ;;  %2710 = vmatpush.msrb.mxu2 %v2307_v31  ;;  %v1636_v31 = vld [vmem:[#allocation6 + $0x7c8] sm:$0xff]  ;;  %v1369_v37 = vmul.f32 0.01, %v1297_v13  ;;  %vm1353_vm14 = vcmp.ge.f32.partialorder %v1297_v13, 0.0 }
 0x1fa   :  { %v2175_v33 = vld [vmem:[#allocation6 + $0x18a0] sm:$0xff]  ;;  %2730 = vmatpush.msrb.mxu3 %v2371_v32  ;;  %v1440_v32 = vld [vmem:[#allocation6 + $0x1a8] sm:$0xff] }
 0x1fb   :  { %v2239_v34 = vld [vmem:[#allocation6 + $0x1aa0] sm:$0xff]  ;;  %2671 = vmatpush.msrb.mxu0 %v2175_v33  ;;  %v1568_v33 = vld [vmem:[#allocation6 + $0x5a8] sm:$0xff] }
 0x1fc   :  { %v2303_v38 = vld [vmem:[#allocation6 + $0x1ca0] sm:$0xff]  ;;  %2691 = vmatpush.msrb.mxu1 %v2239_v34  ;;  %v1317_v34 = vadd.f32 %v1316_v29, %v682_v26  ;;  %v1408_v22 = vld [vmem:[#allocation6 + $0xa8] sm:$0xff] }
 0x1fd   :  { %v2367_v43 = vld [vmem:[#allocation6 + $0x1ea0] sm:$0xff]  ;;  %2711 = vmatpush.msrb.mxu2 %v2303_v38  ;;  %v1436_v38 = vld [vmem:[#allocation6 + $0x188] sm:$0xff] }
 0x1fe   :  { %v2171_v45 = vld [vmem:[#allocation6 + $0x1880] sm:$0xff]  ;;  %2731 = vmatpush.msrb.mxu3 %v2367_v43  ;;  %v1500_v43 = vld [vmem:[#allocation6 + $0x388] sm:$0xff] }
 0x1ff   :  { %v2235_v47 = vld [vmem:[#allocation6 + $0x1a80] sm:$0xff]  ;;  %2672 = vmatpush.msrb.mxu0 %v2171_v45  ;;  %v1564_v45 = vld [vmem:[#allocation6 + $0x588] sm:$0xff] }
 0x200   :  { %v2299_v51 = vld [vmem:[#allocation6 + $0x1c80] sm:$0xff]  ;;  %2692 = vmatpush.msrb.mxu1 %v2235_v47  ;;  %v1628_v47 = vld [vmem:[#allocation6 + $0x788] sm:$0xff] }
 0x201   :  { %v2363_v52 = vld [vmem:[#allocation6 + $0x1e80] sm:$0xff]  ;;  %2712 = vmatpush.msrb.mxu2 %v2299_v51  ;;  %v1496_v51 = vld [vmem:[#allocation6 + $0x368] sm:$0xff] }
 0x202   :  { %v2167_v55 = vld [vmem:[#allocation6 + $0x1860] sm:$0xff]  ;;  %2732 = vmatpush.msrb.mxu3 %v2363_v52  ;;  %v1560_v52 = vld [vmem:[#allocation6 + $0x568] sm:$0xff] }
 0x203   :  { %v2231_v56 = vld [vmem:[#allocation6 + $0x1a60] sm:$0xff]  ;;  %2673 = vmatpush.msrb.mxu0 %v2167_v55  ;;  %v1337_v55 = vadd.f32 %v1336_v44, %v1317_v34  ;;  %v1404_v26 = vld [vmem:[#allocation6 + $0x88] sm:$0xff] }
 0x204   :  { %v2295_v58 = vld [vmem:[#allocation6 + $0x1c60] sm:$0xff]  ;;  %2693 = vmatpush.msrb.mxu1 %v2231_v56  ;;  %v4345_v56 = vsel %vm1353_vm14, %v1297_v13, %v1369_v37  ;;  %v1596_v13 = vld [vmem:[#allocation6 + $0x688] sm:$0xff] }
 0x205   :  { %v2359_v59 = vld [vmem:[#allocation6 + $0x1e60] sm:$0xff]  ;;  %2713 = vmatpush.msrb.mxu2 %v2295_v58  ;;  %v1492_v58 = vld [vmem:[#allocation6 + $0x348] sm:$0xff]  ;;  %v1370_v63 = vmul.f32 0.01, %v1337_v55  ;;  %vm1354_vm15 = vcmp.ge.f32.partialorder %v1337_v55, 0.0 }
 0x206   :  { %v2163_v61 = vld [vmem:[#allocation6 + $0x1840] sm:$0xff]  ;;  %2733 = vmatpush.msrb.mxu3 %v2359_v59  ;;  %v1556_v59 = vld [vmem:[#allocation6 + $0x548] sm:$0xff] }
 0x207   :  { %v2227_v62 = vld [vmem:[#allocation6 + $0x1a40] sm:$0xff]  ;;  %2674 = vmatpush.msrb.mxu0 %v2163_v61  ;;  %v1620_v61 = vld [vmem:[#allocation6 + $0x748] sm:$0xff] }
 0x208   :  { %v2291_v0 = vld [vmem:[#allocation6 + $0x1c40] sm:$0xff]  ;;  %2694 = vmatpush.msrb.mxu1 %v2227_v62  ;;  %v1424_v62 = vld [vmem:[#allocation6 + $0x128] sm:$0xff] }
 0x209   :  { %v2355_v2 = vld [vmem:[#allocation6 + $0x1e40] sm:$0xff]  ;;  %2714 = vmatpush.msrb.mxu2 %v2291_v0  ;;  %v1488_v0 = vld [vmem:[#allocation6 + $0x328] sm:$0xff] }
 0x20a   :  { %v2159_v5 = vld [vmem:[#allocation6 + $0x1820] sm:$0xff]  ;;  %2734 = vmatpush.msrb.mxu3 %v2355_v2  ;;  %v1552_v2 = vld [vmem:[#allocation6 + $0x528] sm:$0xff] }
 0x20b   :  { %v2223_v9 = vld [vmem:[#allocation6 + $0x1a20] sm:$0xff]  ;;  %2675 = vmatpush.msrb.mxu0 %v2159_v5  ;;  %v1484_v5 = vld [vmem:[#allocation6 + $0x308] sm:$0xff] }
 0x20c   :  { %v2287_v14 = vld [vmem:[#allocation6 + $0x1c20] sm:$0xff]  ;;  %2695 = vmatpush.msrb.mxu1 %v2223_v9  ;;  %v1548_v9 = vld [vmem:[#allocation6 + $0x508] sm:$0xff] }
 0x20d   :  { %v2351_v15 = vld [vmem:[#allocation6 + $0x1e20] sm:$0xff]  ;;  %2715 = vmatpush.msrb.mxu2 %v2287_v14  ;;  %v1416_v14 = vld [vmem:[#allocation6 + $0xe8] sm:$0xff] }
 0x20e   :  { %v2155_v17 = vld [vmem:[#allocation6 + $0x1800] sm:$0xff]  ;;  %2735 = vmatpush.msrb.mxu3 %v2351_v15  ;;  %v4348_v15 = vsel %vm1354_vm15, %v1337_v55, %v1370_v63  ;;  %v1400_v29 = vld [vmem:[#allocation6 + $0x68] sm:$0xff] }
 0x20f   :  { %v2219_v18 = vld [vmem:[#allocation6 + $0x1a00] sm:$0xff]  ;;  %2676 = vmatpush.msrb.mxu0 %v2155_v17  ;;  %v1544_v17 = vld [vmem:[#allocation6 + $0x4e8] sm:$0xff] }
 0x210   :  { %v2283_v60 = vld [vmem:[#allocation6 + $0x1c00] sm:$0xff]  ;;  %2696 = vmatpush.msrb.mxu1 %v2219_v18  ;;  %2677 = vmatmul.f32.vlgmr.msrb.gmra.mxu0 %v4336_v1  ;;  %v1608_v18 = vld [vmem:[#allocation6 + $0x6e8] sm:$0xff] }
 0x211   :  { %v2347_v19 = vld [vmem:[#allocation6 + $0x1e00] sm:$0xff]  ;;  %2716 = vmatpush.msrb.mxu2 %v2283_v60  ;;  %2741 = vmatpush.msra.mxu0 %v1448_v23  ;;  %v1412_v60 = vld [vmem:[#allocation6 + $0xc8] sm:$0xff] }
 0x212   :  { %2736 = vmatpush.msrb.mxu3 %v2347_v19  ;;  %2761 = vmatpush.msra.mxu1 %v1512_v21  ;;  %v1476_v19 = vld [vmem:[#allocation6 + $0x2c8] sm:$0xff] }
 0x213   :  { %2781 = vmatpush.msra.mxu2 %v1576_v8  ;;  %2697 = vmatmul.f32.vlgmr.msrb.gmra.mxu1 %v4339_v25  ;;  %v1604_v21 = vld [vmem:[#allocation6 + $0x6c8] sm:$0xff] }
 0x214   :  { %2801 = vmatpush.msra.mxu3 %v1640_v24  ;;  %2742 = vmatpush.msra.mxu0 %v1444_v27  ;;  %v1472_v23 = vld [vmem:[#allocation6 + $0x2a8] sm:$0xff] }
 0x215   :  { %2762 = vmatpush.msra.mxu1 %v1508_v28  ;;  %2782 = vmatpush.msra.mxu2 %v1572_v30  ;;  %v1536_v8 = vld [vmem:[#allocation6 + $0x4a8] sm:$0xff] }
 0x216   :  { %2802 = vmatpush.msra.mxu3 %v1636_v31  ;;  %2743 = vmatpush.msra.mxu0 %v1440_v32  ;;  %v1600_v24 = vld [vmem:[#allocation6 + $0x6a8] sm:$0xff] }
 0x217   :  { %2763 = vmatpush.msra.mxu1 %v1504_v40  ;;  %2783 = vmatpush.msra.mxu2 %v1568_v33  ;;  %v1468_v27 = vld [vmem:[#allocation6 + $0x288] sm:$0xff] }
 0x218   :  { %2803 = vmatpush.msra.mxu3 %v1632_v42  ;;  %2744 = vmatpush.msra.mxu0 %v1436_v38  ;;  %v1532_v28 = vld [vmem:[#allocation6 + $0x488] sm:$0xff] }
 0x219   :  { %2764 = vmatpush.msra.mxu1 %v1500_v43  ;;  %2784 = vmatpush.msra.mxu2 %v1564_v45  ;;  %v1464_v30 = vld [vmem:[#allocation6 + $0x268] sm:$0xff] }
 0x21a   :  { %2804 = vmatpush.msra.mxu3 %v1628_v47  ;;  %2745 = vmatpush.msra.mxu0 %v1432_v50  ;;  %v1528_v31 = vld [vmem:[#allocation6 + $0x468] sm:$0xff] }
 0x21b   :  { %2765 = vmatpush.msra.mxu1 %v1496_v51  ;;  %2785 = vmatpush.msra.mxu2 %v1560_v52  ;;  %v1592_v32 = vld [vmem:[#allocation6 + $0x668] sm:$0xff] }
 0x21c   :  { %2805 = vmatpush.msra.mxu3 %v1624_v53  ;;  %2717 = vmatmul.f32.vlgmr.msrb.gmra.mxu2 %v4345_v56  ;;  %v1396_v40 = vld [vmem:[#allocation6 + $0x48] sm:$0xff] }
 0x21d   :  { %2746 = vmatpush.msra.mxu0 %v1428_v57  ;;  %2766 = vmatpush.msra.mxu1 %v1492_v58  ;;  %v1460_v33 = vld [vmem:[#allocation6 + $0x248] sm:$0xff] }
 0x21e   :  { %2786 = vmatpush.msra.mxu2 %v1556_v59  ;;  %2806 = vmatpush.msra.mxu3 %v1620_v61  ;;  %v1524_v42 = vld [vmem:[#allocation6 + $0x448] sm:$0xff] }
 0x21f   :  { %2747 = vmatpush.msra.mxu0 %v1424_v62  ;;  %2767 = vmatpush.msra.mxu1 %v1488_v0  ;;  %v1588_v34 = vld [vmem:[#allocation6 + $0x648] sm:$0xff] }
 0x220   :  { %2787 = vmatpush.msra.mxu2 %v1552_v2  ;;  %2807 = vmatpush.msra.mxu3 %v1616_v3  ;;  %v1392_v37 = vld [vmem:[#allocation6 + $0x28] sm:$0xff] }
 0x221   :  { %2748 = vmatpush.msra.mxu0 %v1420_v4  ;;  %2768 = vmatpush.msra.mxu1 %v1484_v5  ;;  %v1456_v38 = vld [vmem:[#allocation6 + $0x228] sm:$0xff] }
 0x222   :  { %2788 = vmatpush.msra.mxu2 %v1548_v9  ;;  %2808 = vmatpush.msra.mxu3 %v1612_v10  ;;  %v1520_v43 = vld [vmem:[#allocation6 + $0x428] sm:$0xff] }
 0x223   :  { %2749 = vmatpush.msra.mxu0 %v1416_v14  ;;  %2737 = vmatmul.f32.vlgmr.msrb.gmra.mxu3 %v4348_v15  ;;  %v1584_v44 = vld [vmem:[#allocation6 + $0x628] sm:$0xff] }
 0x224   :  { %2769 = vmatpush.msra.mxu1 %v1480_v16  ;;  %2789 = vmatpush.msra.mxu2 %v1544_v17  ;;  %v1388_v45 = vld [vmem:[#allocation6 + $0x8] sm:$0xff] }
 0x225   :  { %2809 = vmatpush.msra.mxu3 %v1608_v18  ;;  %2750 = vmatpush.msra.mxu0 %v1412_v60  ;;  %v1452_v47 = vld [vmem:[#allocation6 + $0x208] sm:$0xff] }
 0x226   :  { %2770 = vmatpush.msra.mxu1 %v1476_v19  ;;  %2790 = vmatpush.msra.mxu2 %v1540_v20  ;;  %v1516_v50 = vld [vmem:[#allocation6 + $0x408] sm:$0xff] }
 0x227   :  { %2810 = vmatpush.msra.mxu3 %v1604_v21  ;;  %2751 = vmatpush.msra.mxu0 %v1408_v22  ;;  %v1580_v51 = vld [vmem:[#allocation6 + $0x608] sm:$0xff] }
 0x228   :  { %2771 = vmatpush.msra.mxu1 %v1472_v23  ;;  %2791 = vmatpush.msra.mxu2 %v1536_v8  ;;  %v1704_v52 = vld [vmem:[#allocation6 + $0x9e8] sm:$0xff] }
 0x229   :  { %2811 = vmatpush.msra.mxu3 %v1600_v24  ;;  %2752 = vmatpush.msra.mxu0 %v1404_v26  ;;  %v1768_v53 = vld [vmem:[#allocation6 + $0xbe8] sm:$0xff] }
 0x22a   :  { %2772 = vmatpush.msra.mxu1 %v1468_v27  ;;  %2792 = vmatpush.msra.mxu2 %v1532_v28  ;;  %v1832_v55 = vld [vmem:[#allocation6 + $0xde8] sm:$0xff] }
 0x22b   :  { %2812 = vmatpush.msra.mxu3 %v1596_v13  ;;  %2753 = vmatpush.msra.mxu0 %v1400_v29  ;;  %v1896_v57 = vld [vmem:[#allocation6 + $0xfe8] sm:$0xff] }
 0x22c   :  { %2773 = vmatpush.msra.mxu1 %v1464_v30  ;;  %2793 = vmatpush.msra.mxu2 %v1528_v31  ;;  %v1700_v58 = vld [vmem:[#allocation6 + $0x9c8] sm:$0xff] }
 0x22d   :  { %2813 = vmatpush.msra.mxu3 %v1592_v32  ;;  %2754 = vmatpush.msra.mxu0 %v1396_v40  ;;  %v1764_v59 = vld [vmem:[#allocation6 + $0xbc8] sm:$0xff] }
 0x22e   :  { %2774 = vmatpush.msra.mxu1 %v1460_v33  ;;  %2794 = vmatpush.msra.mxu2 %v1524_v42  ;;  %v1828_v61 = vld [vmem:[#allocation6 + $0xdc8] sm:$0xff] }
 0x22f   :  { %2814 = vmatpush.msra.mxu3 %v1588_v34  ;;  %2755 = vmatpush.msra.mxu0 %v1392_v37  ;;  %v1892_v62 = vld [vmem:[#allocation6 + $0xfc8] sm:$0xff] }
 0x230   :  { %2775 = vmatpush.msra.mxu1 %v1456_v38  ;;  %2795 = vmatpush.msra.mxu2 %v1520_v43  ;;  %v1696_v63 = vld [vmem:[#allocation6 + $0x9a8] sm:$0xff] }
 0x231   :  { %2815 = vmatpush.msra.mxu3 %v1584_v44  ;;  %2756 = vmatpush.msra.mxu0 %v1388_v45  ;;  %v1760_v0 = vld [vmem:[#allocation6 + $0xba8] sm:$0xff] }
 0x232   :  { %2776 = vmatpush.msra.mxu1 %v1452_v47  ;;  %2796 = vmatpush.msra.mxu2 %v1516_v50  ;;  %v1824_v2 = vld [vmem:[#allocation6 + $0xda8] sm:$0xff] }
 0x233   :  { %2816 = vmatpush.msra.mxu3 %v1580_v51  ;;  %2757 = vmatmul.f32.vlgmr.msra.gmra.mxu0 %v4279_v35  ;;  %v1888_v3 = vld [vmem:[#allocation6 + $0xfa8] sm:$0xff] }
 0x234   :  { %2777 = vmatmul.f32.vlgmr.msra.gmra.mxu1 %v4282_v36  ;;  %2797 = vmatmul.f32.vlgmr.msra.gmra.mxu2 %v4286_v39  ;;  %v1692_v4 = vld [vmem:[#allocation6 + $0x988] sm:$0xff] }
 0x235   :  { %2817 = vmatmul.f32.vlgmr.msra.gmra.mxu3 %v4288_v41  ;;  %2821 = vmatpush.msrb.mxu0 %v1704_v52  ;;  %v1756_v5 = vld [vmem:[#allocation6 + $0xb88] sm:$0xff] }
 0x236   :  { %2841 = vmatpush.msrb.mxu1 %v1768_v53  ;;  %2861 = vmatpush.msrb.mxu2 %v1832_v55  ;;  %v1820_v9 = vld [vmem:[#allocation6 + $0xd88] sm:$0xff] }
 0x237   :  { %2881 = vmatpush.msrb.mxu3 %v1896_v57  ;;  %2822 = vmatpush.msrb.mxu0 %v1700_v58  ;;  %v1884_v10 = vld [vmem:[#allocation6 + $0xf88] sm:$0xff] }
 0x238   :  { %2842 = vmatpush.msrb.mxu1 %v1764_v59  ;;  %2862 = vmatpush.msrb.mxu2 %v1828_v61  ;;  %v1688_v14 = vld [vmem:[#allocation6 + $0x968] sm:$0xff] }
 0x239   :  { %2882 = vmatpush.msrb.mxu3 %v1892_v62  ;;  %2823 = vmatpush.msrb.mxu0 %v1696_v63  ;;  %v1752_v16 = vld [vmem:[#allocation6 + $0xb68] sm:$0xff] }
 0x23a   :  { %2843 = vmatpush.msrb.mxu1 %v1760_v0  ;;  %2863 = vmatpush.msrb.mxu2 %v1824_v2  ;;  %v1816_v17 = vld [vmem:[#allocation6 + $0xd68] sm:$0xff] }
 0x23b   :  { %2883 = vmatpush.msrb.mxu3 %v1888_v3  ;;  %2824 = vmatpush.msrb.mxu0 %v1692_v4  ;;  %v1880_v18 = vld [vmem:[#allocation6 + $0xf68] sm:$0xff] }
 0x23c   :  { %2844 = vmatpush.msrb.mxu1 %v1756_v5  ;;  %2864 = vmatpush.msrb.mxu2 %v1820_v9  ;;  %v1684_v60 = vld [vmem:[#allocation6 + $0x948] sm:$0xff] }
 0x23d   :  { %2884 = vmatpush.msrb.mxu3 %v1884_v10  ;;  %v1748_v19 = vld [vmem:[#allocation6 + $0xb48] sm:$0xff]  ;;  %2825 = vmatpush.msrb.mxu0 %v1688_v14 }
 0x23e   :  { %2845 = vmatpush.msrb.mxu1 %v1752_v16  ;;  %v1812_v20 = vld [vmem:[#allocation6 + $0xd48] sm:$0xff]  ;;  %2865 = vmatpush.msrb.mxu2 %v1816_v17 }
 0x23f   :  { %v1876_v21 = vld [vmem:[#allocation6 + $0xf48] sm:$0xff]  ;;  %2885 = vmatpush.msrb.mxu3 %v1880_v18  ;;  %2826 = vmatpush.msrb.mxu0 %v1684_v60 }
 0x240   :  { %v1680_v22 = vld [vmem:[#allocation6 + $0x928] sm:$0xff]  ;;  %2846 = vmatpush.msrb.mxu1 %v1748_v19  ;;  %2866 = vmatpush.msrb.mxu2 %v1812_v20 }
 0x241   :  { %v1744_v23 = vld [vmem:[#allocation6 + $0xb28] sm:$0xff]  ;;  %2886 = vmatpush.msrb.mxu3 %v1876_v21  ;;  %2827 = vmatpush.msrb.mxu0 %v1680_v22 }
 0x242   :  { %v1808_v8 = vld [vmem:[#allocation6 + $0xd28] sm:$0xff]  ;;  %2847 = vmatpush.msrb.mxu1 %v1744_v23 }
 0x243   :  { %v1872_v24 = vld [vmem:[#allocation6 + $0xf28] sm:$0xff]  ;;  %2867 = vmatpush.msrb.mxu2 %v1808_v8 }
 0x244   :  { %v1676_v26 = vld [vmem:[#allocation6 + $0x908] sm:$0xff]  ;;  %2887 = vmatpush.msrb.mxu3 %v1872_v24 }
 0x245   :  { %v1740_v27 = vld [vmem:[#allocation6 + $0xb08] sm:$0xff]  ;;  %2828 = vmatpush.msrb.mxu0 %v1676_v26 }
 0x246   :  { %v1804_v28 = vld [vmem:[#allocation6 + $0xd08] sm:$0xff]  ;;  %2848 = vmatpush.msrb.mxu1 %v1740_v27 }
 0x247   :  { %v1868_v13 = vld [vmem:[#allocation6 + $0xf08] sm:$0xff]  ;;  %2868 = vmatpush.msrb.mxu2 %v1804_v28 }
 0x248   :  { %v1672_v29 = vld [vmem:[#allocation6 + $0x8e8] sm:$0xff]  ;;  %2888 = vmatpush.msrb.mxu3 %v1868_v13 }
 0x249   :  { %v1736_v30 = vld [vmem:[#allocation6 + $0xae8] sm:$0xff]  ;;  %2829 = vmatpush.msrb.mxu0 %v1672_v29 }
 0x24a   :  { %v1800_v31 = vld [vmem:[#allocation6 + $0xce8] sm:$0xff]  ;;  %2849 = vmatpush.msrb.mxu1 %v1736_v30 }
 0x24b   :  { %v1864_v32 = vld [vmem:[#allocation6 + $0xee8] sm:$0xff]  ;;  %2869 = vmatpush.msrb.mxu2 %v1800_v31 }
 0x24c   :  { %v1668_v40 = vld [vmem:[#allocation6 + $0x8c8] sm:$0xff]  ;;  %2889 = vmatpush.msrb.mxu3 %v1864_v32 }
 0x24d   :  { %v1732_v33 = vld [vmem:[#allocation6 + $0xac8] sm:$0xff]  ;;  %2830 = vmatpush.msrb.mxu0 %v1668_v40 }
 0x24e   :  { %v1796_v42 = vld [vmem:[#allocation6 + $0xcc8] sm:$0xff]  ;;  %2850 = vmatpush.msrb.mxu1 %v1732_v33 }
 0x24f   :  { %v1860_v34 = vld [vmem:[#allocation6 + $0xec8] sm:$0xff]  ;;  %2870 = vmatpush.msrb.mxu2 %v1796_v42 }
 0x250   :  { %v1664_v37 = vld [vmem:[#allocation6 + $0x8a8] sm:$0xff]  ;;  %2890 = vmatpush.msrb.mxu3 %v1860_v34 }
 0x251   :  { %v1728_v38 = vld [vmem:[#allocation6 + $0xaa8] sm:$0xff]  ;;  %2831 = vmatpush.msrb.mxu0 %v1664_v37 }
 0x252   :  { %v1792_v43 = vld [vmem:[#allocation6 + $0xca8] sm:$0xff]  ;;  %2851 = vmatpush.msrb.mxu1 %v1728_v38 }
 0x253   :  { %v1856_v44 = vld [vmem:[#allocation6 + $0xea8] sm:$0xff]  ;;  %2871 = vmatpush.msrb.mxu2 %v1792_v43 }
 0x254   :  { %v1660_v45 = vld [vmem:[#allocation6 + $0x888] sm:$0xff]  ;;  %2891 = vmatpush.msrb.mxu3 %v1856_v44 }
 0x255   :  { %v1724_v47 = vld [vmem:[#allocation6 + $0xa88] sm:$0xff]  ;;  %2832 = vmatpush.msrb.mxu0 %v1660_v45 }
 0x256   :  { %v1788_v50 = vld [vmem:[#allocation6 + $0xc88] sm:$0xff]  ;;  %2852 = vmatpush.msrb.mxu1 %v1724_v47 }
 0x257   :  { %v1852_v51 = vld [vmem:[#allocation6 + $0xe88] sm:$0xff]  ;;  %2872 = vmatpush.msrb.mxu2 %v1788_v50 }
 0x258   :  { %v1656_v52 = vld [vmem:[#allocation6 + $0x868] sm:$0xff]  ;;  %2892 = vmatpush.msrb.mxu3 %v1852_v51 }
 0x259   :  { %v1720_v53 = vld [vmem:[#allocation6 + $0xa68] sm:$0xff]  ;;  %2833 = vmatpush.msrb.mxu0 %v1656_v52 }
 0x25a   :  { %v1784_v55 = vld [vmem:[#allocation6 + $0xc68] sm:$0xff]  ;;  %2853 = vmatpush.msrb.mxu1 %v1720_v53 }
 0x25b   :  { %v1848_v57 = vld [vmem:[#allocation6 + $0xe68] sm:$0xff]  ;;  %2873 = vmatpush.msrb.mxu2 %v1784_v55 }
 0x25c   :  { %v1652_v58 = vld [vmem:[#allocation6 + $0x848] sm:$0xff]  ;;  %2893 = vmatpush.msrb.mxu3 %v1848_v57 }
 0x25d   :  { %v1716_v59 = vld [vmem:[#allocation6 + $0xa48] sm:$0xff]  ;;  %2834 = vmatpush.msrb.mxu0 %v1652_v58 }
 0x25e   :  { %v1780_v61 = vld [vmem:[#allocation6 + $0xc48] sm:$0xff]  ;;  %2854 = vmatpush.msrb.mxu1 %v1716_v59 }
 0x25f   :  { %v1844_v62 = vld [vmem:[#allocation6 + $0xe48] sm:$0xff]  ;;  %2874 = vmatpush.msrb.mxu2 %v1780_v61 }
 0x260   :  { %v1648_v63 = vld [vmem:[#allocation6 + $0x828] sm:$0xff]  ;;  %2894 = vmatpush.msrb.mxu3 %v1844_v62 }
 0x261   :  { %v1712_v0 = vld [vmem:[#allocation6 + $0xa28] sm:$0xff]  ;;  %2835 = vmatpush.msrb.mxu0 %v1648_v63 }
 0x262   :  { %v1776_v2 = vld [vmem:[#allocation6 + $0xc28] sm:$0xff]  ;;  %2855 = vmatpush.msrb.mxu1 %v1712_v0 }
 0x263   :  { %v1840_v3 = vld [vmem:[#allocation6 + $0xe28] sm:$0xff]  ;;  %2875 = vmatpush.msrb.mxu2 %v1776_v2 }
 0x264   :  { %v1644_v4 = vld [vmem:[#allocation6 + $0x808] sm:$0xff]  ;;  %2895 = vmatpush.msrb.mxu3 %v1840_v3 }
 0x265   :  { %v1708_v5 = vld [vmem:[#allocation6 + $0xa08] sm:$0xff]  ;;  %2836 = vmatpush.msrb.mxu0 %v1644_v4 }
 0x266   :  { %v1772_v9 = vld [vmem:[#allocation6 + $0xc08] sm:$0xff]  ;;  %2856 = vmatpush.msrb.mxu1 %v1708_v5  ;;  %2837 = vmatmul.f32.vlgmr.msrb.gmra.mxu0 %v4297_v6 }
 0x267   :  { %v1836_v10 = vld [vmem:[#allocation6 + $0xe08] sm:$0xff]  ;;  %2876 = vmatpush.msrb.mxu2 %v1772_v9  ;;  %2857 = vmatmul.f32.vlgmr.msrb.gmra.mxu1 %v4300_v7 }
 0x268   :  { %2896 = vmatpush.msrb.mxu3 %v1836_v10  ;;  %v1960_v14 = vld [vmem:[#allocation6 + $0x11e8] sm:$0xff]  ;;  %2877 = vmatmul.f32.vlgmr.msrb.gmra.mxu2 %v4304_v11 }
 0x269   :  { %v2024_v16 = vld [vmem:[#allocation6 + $0x13e8] sm:$0xff]  ;;  %2897 = vmatmul.f32.vlgmr.msrb.gmra.mxu3 %v4306_v12  ;;  %2901 = vmatpush.msra.mxu0 %v1960_v14 }
 0x26a   :  { %v2088_v17 = vld [vmem:[#allocation6 + $0x15e8] sm:$0xff]  ;;  %2921 = vmatpush.msra.mxu1 %v2024_v16 }
 0x26b   :  { %v2152_v18 = vld [vmem:[#allocation6 + $0x17e8] sm:$0xff]  ;;  %2941 = vmatpush.msra.mxu2 %v2088_v17 }
 0x26c   :  { %v1956_v60 = vld [vmem:[#allocation6 + $0x11c8] sm:$0xff]  ;;  %2961 = vmatpush.msra.mxu3 %v2152_v18 }
 0x26d   :  { %v2020_v19 = vld [vmem:[#allocation6 + $0x13c8] sm:$0xff]  ;;  %2902 = vmatpush.msra.mxu0 %v1956_v60 }
 0x26e   :  { %v2084_v20 = vld [vmem:[#allocation6 + $0x15c8] sm:$0xff]  ;;  %2922 = vmatpush.msra.mxu1 %v2020_v19 }
 0x26f   :  { %v2148_v21 = vld [vmem:[#allocation6 + $0x17c8] sm:$0xff]  ;;  %2942 = vmatpush.msra.mxu2 %v2084_v20 }
 0x270   :  { %v1952_v22 = vld [vmem:[#allocation6 + $0x11a8] sm:$0xff]  ;;  %2962 = vmatpush.msra.mxu3 %v2148_v21 }
 0x271   :  { %v2016_v23 = vld [vmem:[#allocation6 + $0x13a8] sm:$0xff]  ;;  %2903 = vmatpush.msra.mxu0 %v1952_v22 }
 0x272   :  { %v2080_v8 = vld [vmem:[#allocation6 + $0x15a8] sm:$0xff]  ;;  %2923 = vmatpush.msra.mxu1 %v2016_v23 }
 0x273   :  { %v2144_v24 = vld [vmem:[#allocation6 + $0x17a8] sm:$0xff]  ;;  %2943 = vmatpush.msra.mxu2 %v2080_v8 }
 0x274   :  { %v1948_v26 = vld [vmem:[#allocation6 + $0x1188] sm:$0xff]  ;;  %2963 = vmatpush.msra.mxu3 %v2144_v24 }
 0x275   :  { %v2012_v27 = vld [vmem:[#allocation6 + $0x1388] sm:$0xff]  ;;  %2904 = vmatpush.msra.mxu0 %v1948_v26 }
 0x276   :  { %v2076_v28 = vld [vmem:[#allocation6 + $0x1588] sm:$0xff]  ;;  %2924 = vmatpush.msra.mxu1 %v2012_v27 }
 0x277   :  { %v2140_v13 = vld [vmem:[#allocation6 + $0x1788] sm:$0xff]  ;;  %2944 = vmatpush.msra.mxu2 %v2076_v28 }
 0x278   :  { %v1944_v29 = vld [vmem:[#allocation6 + $0x1168] sm:$0xff]  ;;  %2964 = vmatpush.msra.mxu3 %v2140_v13 }
 0x279   :  { %v2008_v30 = vld [vmem:[#allocation6 + $0x1368] sm:$0xff]  ;;  %2905 = vmatpush.msra.mxu0 %v1944_v29 }
 0x27a   :  { %v2072_v31 = vld [vmem:[#allocation6 + $0x1568] sm:$0xff]  ;;  %2925 = vmatpush.msra.mxu1 %v2008_v30 }
 0x27b   :  { %v2136_v32 = vld [vmem:[#allocation6 + $0x1768] sm:$0xff]  ;;  %2945 = vmatpush.msra.mxu2 %v2072_v31 }
 0x27c   :  { %v1940_v40 = vld [vmem:[#allocation6 + $0x1148] sm:$0xff]  ;;  %2965 = vmatpush.msra.mxu3 %v2136_v32 }
 0x27d   :  { %v2004_v33 = vld [vmem:[#allocation6 + $0x1348] sm:$0xff]  ;;  %2906 = vmatpush.msra.mxu0 %v1940_v40 }
 0x27e   :  { %v2068_v42 = vld [vmem:[#allocation6 + $0x1548] sm:$0xff]  ;;  %2926 = vmatpush.msra.mxu1 %v2004_v33 }
 0x27f   :  { %v2132_v34 = vld [vmem:[#allocation6 + $0x1748] sm:$0xff]  ;;  %2946 = vmatpush.msra.mxu2 %v2068_v42 }
 0x280   :  { %v1936_v37 = vld [vmem:[#allocation6 + $0x1128] sm:$0xff]  ;;  %2966 = vmatpush.msra.mxu3 %v2132_v34 }
 0x281   :  { %v2000_v38 = vld [vmem:[#allocation6 + $0x1328] sm:$0xff]  ;;  %2907 = vmatpush.msra.mxu0 %v1936_v37 }
 0x282   :  { %v2064_v43 = vld [vmem:[#allocation6 + $0x1528] sm:$0xff]  ;;  %2927 = vmatpush.msra.mxu1 %v2000_v38 }
 0x283   :  { %v2128_v44 = vld [vmem:[#allocation6 + $0x1728] sm:$0xff]  ;;  %2947 = vmatpush.msra.mxu2 %v2064_v43 }
 0x284   :  { %v1932_v45 = vld [vmem:[#allocation6 + $0x1108] sm:$0xff]  ;;  %2967 = vmatpush.msra.mxu3 %v2128_v44 }
 0x285   :  { %v1996_v47 = vld [vmem:[#allocation6 + $0x1308] sm:$0xff]  ;;  %2908 = vmatpush.msra.mxu0 %v1932_v45 }
 0x286   :  { %v2060_v50 = vld [vmem:[#allocation6 + $0x1508] sm:$0xff]  ;;  %2928 = vmatpush.msra.mxu1 %v1996_v47 }
 0x287   :  { %v2124_v51 = vld [vmem:[#allocation6 + $0x1708] sm:$0xff]  ;;  %2948 = vmatpush.msra.mxu2 %v2060_v50 }
 0x288   :  { %v1928_v52 = vld [vmem:[#allocation6 + $0x10e8] sm:$0xff]  ;;  %2968 = vmatpush.msra.mxu3 %v2124_v51 }
 0x289   :  { %v1992_v53 = vld [vmem:[#allocation6 + $0x12e8] sm:$0xff]  ;;  %2909 = vmatpush.msra.mxu0 %v1928_v52 }
 0x28a   :  { %v2056_v55 = vld [vmem:[#allocation6 + $0x14e8] sm:$0xff]  ;;  %2929 = vmatpush.msra.mxu1 %v1992_v53 }
 0x28b   :  { %v2120_v57 = vld [vmem:[#allocation6 + $0x16e8] sm:$0xff]  ;;  %2949 = vmatpush.msra.mxu2 %v2056_v55 }
 0x28c   :  { %v1924_v58 = vld [vmem:[#allocation6 + $0x10c8] sm:$0xff]  ;;  %2969 = vmatpush.msra.mxu3 %v2120_v57 }
 0x28d   :  { %v1988_v59 = vld [vmem:[#allocation6 + $0x12c8] sm:$0xff]  ;;  %2910 = vmatpush.msra.mxu0 %v1924_v58 }
 0x28e   :  { %v2052_v61 = vld [vmem:[#allocation6 + $0x14c8] sm:$0xff]  ;;  %2930 = vmatpush.msra.mxu1 %v1988_v59 }
 0x28f   :  { %v2116_v62 = vld [vmem:[#allocation6 + $0x16c8] sm:$0xff]  ;;  %2950 = vmatpush.msra.mxu2 %v2052_v61 }
 0x290   :  { %v1920_v63 = vld [vmem:[#allocation6 + $0x10a8] sm:$0xff]  ;;  %2970 = vmatpush.msra.mxu3 %v2116_v62 }
 0x291   :  { %v1984_v0 = vld [vmem:[#allocation6 + $0x12a8] sm:$0xff]  ;;  %2911 = vmatpush.msra.mxu0 %v1920_v63 }
 0x292   :  { %v2048_v2 = vld [vmem:[#allocation6 + $0x14a8] sm:$0xff]  ;;  %2931 = vmatpush.msra.mxu1 %v1984_v0 }
 0x293   :  { %v2112_v3 = vld [vmem:[#allocation6 + $0x16a8] sm:$0xff]  ;;  %2951 = vmatpush.msra.mxu2 %v2048_v2 }
 0x294   :  { %v1916_v4 = vld [vmem:[#allocation6 + $0x1088] sm:$0xff]  ;;  %2971 = vmatpush.msra.mxu3 %v2112_v3 }
 0x295   :  { %v1980_v5 = vld [vmem:[#allocation6 + $0x1288] sm:$0xff]  ;;  %2912 = vmatpush.msra.mxu0 %v1916_v4 }
 0x296   :  { %v2044_v9 = vld [vmem:[#allocation6 + $0x1488] sm:$0xff]  ;;  %2932 = vmatpush.msra.mxu1 %v1980_v5 }
 0x297   :  { %v2108_v10 = vld [vmem:[#allocation6 + $0x1688] sm:$0xff]  ;;  %2952 = vmatpush.msra.mxu2 %v2044_v9 }
 0x298   :  { %v1912_v14 = vld [vmem:[#allocation6 + $0x1068] sm:$0xff]  ;;  %2972 = vmatpush.msra.mxu3 %v2108_v10 }
 0x299   :  { %v1976_v16 = vld [vmem:[#allocation6 + $0x1268] sm:$0xff]  ;;  %2913 = vmatpush.msra.mxu0 %v1912_v14 }
 0x29a   :  { %v2040_v17 = vld [vmem:[#allocation6 + $0x1468] sm:$0xff]  ;;  %2933 = vmatpush.msra.mxu1 %v1976_v16 }
 0x29b   :  { %v2104_v18 = vld [vmem:[#allocation6 + $0x1668] sm:$0xff]  ;;  %2953 = vmatpush.msra.mxu2 %v2040_v17 }
 0x29c   :  { %v1908_v60 = vld [vmem:[#allocation6 + $0x1048] sm:$0xff]  ;;  %2973 = vmatpush.msra.mxu3 %v2104_v18 }
 0x29d   :  { %v1972_v19 = vld [vmem:[#allocation6 + $0x1248] sm:$0xff]  ;;  %2914 = vmatpush.msra.mxu0 %v1908_v60 }
 0x29e   :  { %v2036_v20 = vld [vmem:[#allocation6 + $0x1448] sm:$0xff]  ;;  %2934 = vmatpush.msra.mxu1 %v1972_v19 }
 0x29f   :  { %v2100_v21 = vld [vmem:[#allocation6 + $0x1648] sm:$0xff]  ;;  %2954 = vmatpush.msra.mxu2 %v2036_v20 }
 0x2a0   :  { %v1904_v22 = vld [vmem:[#allocation6 + $0x1028] sm:$0xff]  ;;  %2974 = vmatpush.msra.mxu3 %v2100_v21 }
 0x2a1   :  { %v1968_v23 = vld [vmem:[#allocation6 + $0x1228] sm:$0xff]  ;;  %2915 = vmatpush.msra.mxu0 %v1904_v22 }
 0x2a2   :  { %v2032_v8 = vld [vmem:[#allocation6 + $0x1428] sm:$0xff]  ;;  %2935 = vmatpush.msra.mxu1 %v1968_v23 }
 0x2a3   :  { %v2096_v24 = vld [vmem:[#allocation6 + $0x1628] sm:$0xff]  ;;  %2955 = vmatpush.msra.mxu2 %v2032_v8 }
 0x2a4   :  { %v1900_v26 = vld [vmem:[#allocation6 + $0x1008] sm:$0xff]  ;;  %2975 = vmatpush.msra.mxu3 %v2096_v24 }
 0x2a5   :  { %v1964_v27 = vld [vmem:[#allocation6 + $0x1208] sm:$0xff]  ;;  %2916 = vmatpush.msra.mxu0 %v1900_v26 }
 0x2a6   :  { %v2028_v28 = vld [vmem:[#allocation6 + $0x1408] sm:$0xff]  ;;  %2936 = vmatpush.msra.mxu1 %v1964_v27  ;;  %2917 = vmatmul.f32.vlgmr.msra.gmra.mxu0 %v4320_v48 }
 0x2a7   :  { %v2092_v13 = vld [vmem:[#allocation6 + $0x1608] sm:$0xff]  ;;  %2956 = vmatpush.msra.mxu2 %v2028_v28  ;;  %2937 = vmatmul.f32.vlgmr.msra.gmra.mxu1 %v4323_v49 }
 0x2a8   :  { %2976 = vmatpush.msra.mxu3 %v2092_v13  ;;  %v2216_v29 = vld [vmem:[#allocation6 + $0x19e8] sm:$0xff]  ;;  %2957 = vmatmul.f32.vlgmr.msra.gmra.mxu2 %v4317_v46 }
 0x2a9   :  { %v2280_v30 = vld [vmem:[#allocation6 + $0x1be8] sm:$0xff]  ;;  %2977 = vmatmul.f32.vlgmr.msra.gmra.mxu3 %v4329_v54  ;;  %2981 = vmatpush.msrb.mxu0 %v2216_v29 }
 0x2aa   :  { %v2344_v31 = vld [vmem:[#allocation6 + $0x1de8] sm:$0xff]  ;;  %3001 = vmatpush.msrb.mxu1 %v2280_v30 }
 0x2ab   :  { %v2408_v32 = vld [vmem:[#allocation6 + $0x1fe8] sm:$0xff]  ;;  %3021 = vmatpush.msrb.mxu2 %v2344_v31 }
 0x2ac   :  { %v2212_v40 = vld [vmem:[#allocation6 + $0x19c8] sm:$0xff]  ;;  %3041 = vmatpush.msrb.mxu3 %v2408_v32 }
 0x2ad   :  { %v2276_v33 = vld [vmem:[#allocation6 + $0x1bc8] sm:$0xff]  ;;  %2982 = vmatpush.msrb.mxu0 %v2212_v40 }
 0x2ae   :  { %v2340_v42 = vld [vmem:[#allocation6 + $0x1dc8] sm:$0xff]  ;;  %3002 = vmatpush.msrb.mxu1 %v2276_v33 }
 0x2af   :  { %v2404_v34 = vld [vmem:[#allocation6 + $0x1fc8] sm:$0xff]  ;;  %3022 = vmatpush.msrb.mxu2 %v2340_v42 }
 0x2b0   :  { %v2208_v37 = vld [vmem:[#allocation6 + $0x19a8] sm:$0xff]  ;;  %3042 = vmatpush.msrb.mxu3 %v2404_v34 }
 0x2b1   :  { %v2272_v38 = vld [vmem:[#allocation6 + $0x1ba8] sm:$0xff]  ;;  %2983 = vmatpush.msrb.mxu0 %v2208_v37 }
 0x2b2   :  { %v2336_v43 = vld [vmem:[#allocation6 + $0x1da8] sm:$0xff]  ;;  %3003 = vmatpush.msrb.mxu1 %v2272_v38 }
 0x2b3   :  { %v2400_v44 = vld [vmem:[#allocation6 + $0x1fa8] sm:$0xff]  ;;  %3023 = vmatpush.msrb.mxu2 %v2336_v43 }
 0x2b4   :  { %v2204_v45 = vld [vmem:[#allocation6 + $0x1988] sm:$0xff]  ;;  %3043 = vmatpush.msrb.mxu3 %v2400_v44 }
 0x2b5   :  { %v2268_v47 = vld [vmem:[#allocation6 + $0x1b88] sm:$0xff]  ;;  %2984 = vmatpush.msrb.mxu0 %v2204_v45 }
 0x2b6   :  { %v2332_v50 = vld [vmem:[#allocation6 + $0x1d88] sm:$0xff]  ;;  %3004 = vmatpush.msrb.mxu1 %v2268_v47 }
 0x2b7   :  { %v2396_v51 = vld [vmem:[#allocation6 + $0x1f88] sm:$0xff]  ;;  %3024 = vmatpush.msrb.mxu2 %v2332_v50 }
 0x2b8   :  { %v2200_v52 = vld [vmem:[#allocation6 + $0x1968] sm:$0xff]  ;;  %3044 = vmatpush.msrb.mxu3 %v2396_v51 }
 0x2b9   :  { %v2264_v53 = vld [vmem:[#allocation6 + $0x1b68] sm:$0xff]  ;;  %2985 = vmatpush.msrb.mxu0 %v2200_v52  ;;  %v1449_v52 = vld [vmem:[#allocation6 + $0x1f0] sm:$0xff] }
 0x2ba   :  { %v2328_v55 = vld [vmem:[#allocation6 + $0x1d68] sm:$0xff]  ;;  %3005 = vmatpush.msrb.mxu1 %v2264_v53  ;;  %v1513_v53 = vld [vmem:[#allocation6 + $0x3f0] sm:$0xff] }
 0x2bb   :  { %v2392_v57 = vld [vmem:[#allocation6 + $0x1f68] sm:$0xff]  ;;  %3025 = vmatpush.msrb.mxu2 %v2328_v55  ;;  %v1577_v55 = vld [vmem:[#allocation6 + $0x5f0] sm:$0xff] }
 0x2bc   :  { %v2196_v58 = vld [vmem:[#allocation6 + $0x1948] sm:$0xff]  ;;  %3045 = vmatpush.msrb.mxu3 %v2392_v57  ;;  %v1641_v57 = vld [vmem:[#allocation6 + $0x7f0] sm:$0xff] }
 0x2bd   :  { %v2260_v59 = vld [vmem:[#allocation6 + $0x1b48] sm:$0xff]  ;;  %2986 = vmatpush.msrb.mxu0 %v2196_v58  ;;  %v1445_v58 = vld [vmem:[#allocation6 + $0x1d0] sm:$0xff] }
 0x2be   :  { %v2324_v61 = vld [vmem:[#allocation6 + $0x1d48] sm:$0xff]  ;;  %3006 = vmatpush.msrb.mxu1 %v2260_v59  ;;  %v1509_v59 = vld [vmem:[#allocation6 + $0x3d0] sm:$0xff] }
 0x2bf   :  { %v2388_v62 = vld [vmem:[#allocation6 + $0x1f48] sm:$0xff]  ;;  %3026 = vmatpush.msrb.mxu2 %v2324_v61  ;;  %v1573_v61 = vld [vmem:[#allocation6 + $0x5d0] sm:$0xff] }
 0x2c0   :  { %v2192_v63 = vld [vmem:[#allocation6 + $0x1928] sm:$0xff]  ;;  %3046 = vmatpush.msrb.mxu3 %v2388_v62  ;;  %v1637_v62 = vld [vmem:[#allocation6 + $0x7d0] sm:$0xff] }
 0x2c1   :  { %v2256_v0 = vld [vmem:[#allocation6 + $0x1b28] sm:$0xff]  ;;  %2987 = vmatpush.msrb.mxu0 %v2192_v63  ;;  %v1441_v63 = vld [vmem:[#allocation6 + $0x1b0] sm:$0xff] }
 0x2c2   :  { %v2320_v2 = vld [vmem:[#allocation6 + $0x1d28] sm:$0xff]  ;;  %3007 = vmatpush.msrb.mxu1 %v2256_v0  ;;  %v1505_v0 = vld [vmem:[#allocation6 + $0x3b0] sm:$0xff] }
 0x2c3   :  { %v2384_v3 = vld [vmem:[#allocation6 + $0x1f28] sm:$0xff]  ;;  %3027 = vmatpush.msrb.mxu2 %v2320_v2  ;;  %v1569_v2 = vld [vmem:[#allocation6 + $0x5b0] sm:$0xff] }
 0x2c4   :  { %v2188_v4 = vld [vmem:[#allocation6 + $0x1908] sm:$0xff]  ;;  %3047 = vmatpush.msrb.mxu3 %v2384_v3  ;;  %v1633_v3 = vld [vmem:[#allocation6 + $0x7b0] sm:$0xff] }
 0x2c5   :  { %v2252_v5 = vld [vmem:[#allocation6 + $0x1b08] sm:$0xff]  ;;  %2988 = vmatpush.msrb.mxu0 %v2188_v4  ;;  %v1437_v4 = vld [vmem:[#allocation6 + $0x190] sm:$0xff] }
 0x2c6   :  { %v2316_v9 = vld [vmem:[#allocation6 + $0x1d08] sm:$0xff]  ;;  %3008 = vmatpush.msrb.mxu1 %v2252_v5  ;;  %v1501_v5 = vld [vmem:[#allocation6 + $0x390] sm:$0xff] }
 0x2c7   :  { %v2380_v10 = vld [vmem:[#allocation6 + $0x1f08] sm:$0xff]  ;;  %3028 = vmatpush.msrb.mxu2 %v2316_v9  ;;  %v1565_v9 = vld [vmem:[#allocation6 + $0x590] sm:$0xff] }
 0x2c8   :  { %v2184_v14 = vld [vmem:[#allocation6 + $0x18e8] sm:$0xff]  ;;  %3048 = vmatpush.msrb.mxu3 %v2380_v10  ;;  %v1629_v10 = vld [vmem:[#allocation6 + $0x790] sm:$0xff] }
 0x2c9   :  { %v2248_v16 = vld [vmem:[#allocation6 + $0x1ae8] sm:$0xff]  ;;  %2989 = vmatpush.msrb.mxu0 %v2184_v14  ;;  %v1433_v14 = vld [vmem:[#allocation6 + $0x170] sm:$0xff] }
 0x2ca   :  { %v2312_v17 = vld [vmem:[#allocation6 + $0x1ce8] sm:$0xff]  ;;  %3009 = vmatpush.msrb.mxu1 %v2248_v16  ;;  %v1497_v16 = vld [vmem:[#allocation6 + $0x370] sm:$0xff] }
 0x2cb   :  { %v2376_v18 = vld [vmem:[#allocation6 + $0x1ee8] sm:$0xff]  ;;  %3029 = vmatpush.msrb.mxu2 %v2312_v17  ;;  %v1561_v17 = vld [vmem:[#allocation6 + $0x570] sm:$0xff] }
 0x2cc   :  { %v2180_v60 = vld [vmem:[#allocation6 + $0x18c8] sm:$0xff]  ;;  %3049 = vmatpush.msrb.mxu3 %v2376_v18  ;;  %v1625_v18 = vld [vmem:[#allocation6 + $0x770] sm:$0xff] }
 0x2cd   :  { %v2244_v19 = vld [vmem:[#allocation6 + $0x1ac8] sm:$0xff]  ;;  %2990 = vmatpush.msrb.mxu0 %v2180_v60  ;;  %v1429_v60 = vld [vmem:[#allocation6 + $0x150] sm:$0xff] }
 0x2ce   :  { %v2308_v20 = vld [vmem:[#allocation6 + $0x1cc8] sm:$0xff]  ;;  %3010 = vmatpush.msrb.mxu1 %v2244_v19  ;;  %v1493_v19 = vld [vmem:[#allocation6 + $0x350] sm:$0xff] }
 0x2cf   :  { %v2372_v21 = vld [vmem:[#allocation6 + $0x1ec8] sm:$0xff]  ;;  %3030 = vmatpush.msrb.mxu2 %v2308_v20  ;;  %v1557_v20 = vld [vmem:[#allocation6 + $0x550] sm:$0xff] }
 0x2d0   :  { %v2176_v22 = vld [vmem:[#allocation6 + $0x18a8] sm:$0xff]  ;;  %3050 = vmatpush.msrb.mxu3 %v2372_v21  ;;  %v1621_v21 = vld [vmem:[#allocation6 + $0x750] sm:$0xff] }
 0x2d1   :  { %v2240_v23 = vld [vmem:[#allocation6 + $0x1aa8] sm:$0xff]  ;;  %2991 = vmatpush.msrb.mxu0 %v2176_v22  ;;  %v1425_v22 = vld [vmem:[#allocation6 + $0x130] sm:$0xff] }
 0x2d2   :  { %v2304_v8 = vld [vmem:[#allocation6 + $0x1ca8] sm:$0xff]  ;;  %3011 = vmatpush.msrb.mxu1 %v2240_v23  ;;  %v1489_v23 = vld [vmem:[#allocation6 + $0x330] sm:$0xff] }
 0x2d3   :  { %v2368_v24 = vld [vmem:[#allocation6 + $0x1ea8] sm:$0xff]  ;;  %3031 = vmatpush.msrb.mxu2 %v2304_v8  ;;  %v1553_v8 = vld [vmem:[#allocation6 + $0x530] sm:$0xff] }
 0x2d4   :  { %v2172_v26 = vld [vmem:[#allocation6 + $0x1888] sm:$0xff]  ;;  %3051 = vmatpush.msrb.mxu3 %v2368_v24  ;;  %v1617_v24 = vld [vmem:[#allocation6 + $0x730] sm:$0xff] }
 0x2d5   :  { %v2236_v27 = vld [vmem:[#allocation6 + $0x1a88] sm:$0xff]  ;;  %2992 = vmatpush.msrb.mxu0 %v2172_v26  ;;  %v1421_v26 = vld [vmem:[#allocation6 + $0x110] sm:$0xff] }
 0x2d6   :  { %v2300_v28 = vld [vmem:[#allocation6 + $0x1c88] sm:$0xff]  ;;  %3012 = vmatpush.msrb.mxu1 %v2236_v27  ;;  %v1485_v27 = vld [vmem:[#allocation6 + $0x310] sm:$0xff] }
 0x2d7   :  { %v2364_v13 = vld [vmem:[#allocation6 + $0x1e88] sm:$0xff]  ;;  %3032 = vmatpush.msrb.mxu2 %v2300_v28  ;;  %v1549_v28 = vld [vmem:[#allocation6 + $0x510] sm:$0xff] }
 0x2d8   :  { %v2168_v29 = vld [vmem:[#allocation6 + $0x1868] sm:$0xff]  ;;  %3052 = vmatpush.msrb.mxu3 %v2364_v13  ;;  %v1613_v13 = vld [vmem:[#allocation6 + $0x710] sm:$0xff] }
 0x2d9   :  { %v2232_v30 = vld [vmem:[#allocation6 + $0x1a68] sm:$0xff]  ;;  %2993 = vmatpush.msrb.mxu0 %v2168_v29  ;;  %v1417_v29 = vld [vmem:[#allocation6 + $0xf0] sm:$0xff] }
 0x2da   :  { %v2296_v31 = vld [vmem:[#allocation6 + $0x1c68] sm:$0xff]  ;;  %3013 = vmatpush.msrb.mxu1 %v2232_v30  ;;  %v1481_v30 = vld [vmem:[#allocation6 + $0x2f0] sm:$0xff] }
 0x2db   :  { %v2360_v32 = vld [vmem:[#allocation6 + $0x1e68] sm:$0xff]  ;;  %3033 = vmatpush.msrb.mxu2 %v2296_v31  ;;  %v1545_v31 = vld [vmem:[#allocation6 + $0x4f0] sm:$0xff] }
 0x2dc   :  { %v2164_v40 = vld [vmem:[#allocation6 + $0x1848] sm:$0xff]  ;;  %3053 = vmatpush.msrb.mxu3 %v2360_v32  ;;  %v1609_v32 = vld [vmem:[#allocation6 + $0x6f0] sm:$0xff] }
 0x2dd   :  { %v2228_v33 = vld [vmem:[#allocation6 + $0x1a48] sm:$0xff]  ;;  %2994 = vmatpush.msrb.mxu0 %v2164_v40  ;;  %v1413_v40 = vld [vmem:[#allocation6 + $0xd0] sm:$0xff] }
 0x2de   :  { %v2292_v42 = vld [vmem:[#allocation6 + $0x1c48] sm:$0xff]  ;;  %3014 = vmatpush.msrb.mxu1 %v2228_v33  ;;  %v1477_v33 = vld [vmem:[#allocation6 + $0x2d0] sm:$0xff] }
 0x2df   :  { %v2356_v34 = vld [vmem:[#allocation6 + $0x1e48] sm:$0xff]  ;;  %3034 = vmatpush.msrb.mxu2 %v2292_v42  ;;  %v1541_v42 = vld [vmem:[#allocation6 + $0x4d0] sm:$0xff] }
 0x2e0   :  { %v2160_v37 = vld [vmem:[#allocation6 + $0x1828] sm:$0xff]  ;;  %3054 = vmatpush.msrb.mxu3 %v2356_v34  ;;  %v1605_v34 = vld [vmem:[#allocation6 + $0x6d0] sm:$0xff] }
 0x2e1   :  { %v2224_v38 = vld [vmem:[#allocation6 + $0x1a28] sm:$0xff]  ;;  %2995 = vmatpush.msrb.mxu0 %v2160_v37  ;;  %v1409_v37 = vld [vmem:[#allocation6 + $0xb0] sm:$0xff] }
 0x2e2   :  { %v2288_v43 = vld [vmem:[#allocation6 + $0x1c28] sm:$0xff]  ;;  %3015 = vmatpush.msrb.mxu1 %v2224_v38  ;;  %v1473_v38 = vld [vmem:[#allocation6 + $0x2b0] sm:$0xff] }
 0x2e3   :  { %v2352_v44 = vld [vmem:[#allocation6 + $0x1e28] sm:$0xff]  ;;  %3035 = vmatpush.msrb.mxu2 %v2288_v43  ;;  %v1537_v43 = vld [vmem:[#allocation6 + $0x4b0] sm:$0xff] }
 0x2e4   :  { %v2156_v45 = vld [vmem:[#allocation6 + $0x1808] sm:$0xff]  ;;  %3055 = vmatpush.msrb.mxu3 %v2352_v44  ;;  %v1601_v44 = vld [vmem:[#allocation6 + $0x6b0] sm:$0xff] }
 0x2e5   :  { %v2220_v47 = vld [vmem:[#allocation6 + $0x1a08] sm:$0xff]  ;;  %2996 = vmatpush.msrb.mxu0 %v2156_v45  ;;  %v1405_v45 = vld [vmem:[#allocation6 + $0x90] sm:$0xff] }
 0x2e6   :  { %v2284_v50 = vld [vmem:[#allocation6 + $0x1c08] sm:$0xff]  ;;  %3016 = vmatpush.msrb.mxu1 %v2220_v47  ;;  %2997 = vmatmul.f32.vlgmr.msrb.gmra.mxu0 %v4336_v1  ;;  %v1469_v47 = vld [vmem:[#allocation6 + $0x290] sm:$0xff] }
 0x2e7   :  { %v2348_v51 = vld [vmem:[#allocation6 + $0x1e08] sm:$0xff]  ;;  %3036 = vmatpush.msrb.mxu2 %v2284_v50  ;;  %3017 = vmatmul.f32.vlgmr.msrb.gmra.mxu1 %v4339_v25  ;;  %v1533_v50 = vld [vmem:[#allocation6 + $0x490] sm:$0xff] }
 0x2e8   :  { %3056 = vmatpush.msrb.mxu3 %v2348_v51  ;;  %3037 = vmatmul.f32.vlgmr.msrb.gmra.mxu2 %v4345_v56  ;;  %v1597_v51 = vld [vmem:[#allocation6 + $0x690] sm:$0xff] }
 0x2e9   :  { %3057 = vmatmul.f32.vlgmr.msrb.gmra.mxu3 %v4348_v15  ;;  %3061 = vmatpush.msra.mxu0 %v1449_v52  ;;  %v1401_v52 = vld [vmem:[#allocation6 + $0x70] sm:$0xff] }
 0x2ea   :  { %3081 = vmatpush.msra.mxu1 %v1513_v53  ;;  %3101 = vmatpush.msra.mxu2 %v1577_v55  ;;  %v1465_v53 = vld [vmem:[#allocation6 + $0x270] sm:$0xff] }
 0x2eb   :  { %3121 = vmatpush.msra.mxu3 %v1641_v57  ;;  %3062 = vmatpush.msra.mxu0 %v1445_v58  ;;  %v1529_v55 = vld [vmem:[#allocation6 + $0x470] sm:$0xff] }
 0x2ec   :  { %3082 = vmatpush.msra.mxu1 %v1509_v59  ;;  %3102 = vmatpush.msra.mxu2 %v1573_v61  ;;  %v1593_v57 = vld [vmem:[#allocation6 + $0x670] sm:$0xff] }
 0x2ed   :  { %3122 = vmatpush.msra.mxu3 %v1637_v62  ;;  %3063 = vmatpush.msra.mxu0 %v1441_v63  ;;  %v1397_v58 = vld [vmem:[#allocation6 + $0x50] sm:$0xff] }
 0x2ee   :  { %3083 = vmatpush.msra.mxu1 %v1505_v0  ;;  %3103 = vmatpush.msra.mxu2 %v1569_v2  ;;  %v1461_v59 = vld [vmem:[#allocation6 + $0x250] sm:$0xff] }
 0x2ef   :  { %3123 = vmatpush.msra.mxu3 %v1633_v3  ;;  %3064 = vmatpush.msra.mxu0 %v1437_v4  ;;  %v1525_v61 = vld [vmem:[#allocation6 + $0x450] sm:$0xff] }
 0x2f0   :  { %3084 = vmatpush.msra.mxu1 %v1501_v5  ;;  %3104 = vmatpush.msra.mxu2 %v1565_v9  ;;  %v1589_v62 = vld [vmem:[#allocation6 + $0x650] sm:$0xff] }
 0x2f1   :  { %3124 = vmatpush.msra.mxu3 %v1629_v10  ;;  %3065 = vmatpush.msra.mxu0 %v1433_v14  ;;  %v1393_v63 = vld [vmem:[#allocation6 + $0x30] sm:$0xff] }
 0x2f2   :  { %3085 = vmatpush.msra.mxu1 %v1497_v16  ;;  %3105 = vmatpush.msra.mxu2 %v1561_v17  ;;  %v1457_v0 = vld [vmem:[#allocation6 + $0x230] sm:$0xff] }
 0x2f3   :  { %3125 = vmatpush.msra.mxu3 %v1625_v18  ;;  %3066 = vmatpush.msra.mxu0 %v1429_v60  ;;  %v1521_v2 = vld [vmem:[#allocation6 + $0x430] sm:$0xff] }
 0x2f4   :  { %3086 = vmatpush.msra.mxu1 %v1493_v19  ;;  %3106 = vmatpush.msra.mxu2 %v1557_v20  ;;  %v1585_v3 = vld [vmem:[#allocation6 + $0x630] sm:$0xff] }
 0x2f5   :  { %3126 = vmatpush.msra.mxu3 %v1621_v21  ;;  %3067 = vmatpush.msra.mxu0 %v1425_v22  ;;  %v1389_v4 = vld [vmem:[#allocation6 + $0x10] sm:$0xff] }
 0x2f6   :  { %3087 = vmatpush.msra.mxu1 %v1489_v23  ;;  %3107 = vmatpush.msra.mxu2 %v1553_v8  ;;  %v1453_v5 = vld [vmem:[#allocation6 + $0x210] sm:$0xff] }
 0x2f7   :  { %3127 = vmatpush.msra.mxu3 %v1617_v24  ;;  %3068 = vmatpush.msra.mxu0 %v1421_v26  ;;  %v1517_v9 = vld [vmem:[#allocation6 + $0x410] sm:$0xff] }
 0x2f8   :  { %3088 = vmatpush.msra.mxu1 %v1485_v27  ;;  %3108 = vmatpush.msra.mxu2 %v1549_v28  ;;  %v1581_v10 = vld [vmem:[#allocation6 + $0x610] sm:$0xff] }
 0x2f9   :  { %3128 = vmatpush.msra.mxu3 %v1613_v13  ;;  %3069 = vmatpush.msra.mxu0 %v1417_v29  ;;  %v1705_v14 = vld [vmem:[#allocation6 + $0x9f0] sm:$0xff] }
 0x2fa   :  { %3089 = vmatpush.msra.mxu1 %v1481_v30  ;;  %3109 = vmatpush.msra.mxu2 %v1545_v31  ;;  %v1769_v16 = vld [vmem:[#allocation6 + $0xbf0] sm:$0xff] }
 0x2fb   :  { %3129 = vmatpush.msra.mxu3 %v1609_v32  ;;  %3070 = vmatpush.msra.mxu0 %v1413_v40  ;;  %v1833_v17 = vld [vmem:[#allocation6 + $0xdf0] sm:$0xff] }
 0x2fc   :  { %3090 = vmatpush.msra.mxu1 %v1477_v33  ;;  %3110 = vmatpush.msra.mxu2 %v1541_v42  ;;  %v1897_v18 = vld [vmem:[#allocation6 + $0xff0] sm:$0xff] }
 0x2fd   :  { %3130 = vmatpush.msra.mxu3 %v1605_v34  ;;  %3071 = vmatpush.msra.mxu0 %v1409_v37  ;;  %v1701_v60 = vld [vmem:[#allocation6 + $0x9d0] sm:$0xff] }
 0x2fe   :  { %3091 = vmatpush.msra.mxu1 %v1473_v38  ;;  %3111 = vmatpush.msra.mxu2 %v1537_v43  ;;  %v1765_v19 = vld [vmem:[#allocation6 + $0xbd0] sm:$0xff] }
 0x2ff   :  { %3131 = vmatpush.msra.mxu3 %v1601_v44  ;;  %3072 = vmatpush.msra.mxu0 %v1405_v45  ;;  %v1829_v20 = vld [vmem:[#allocation6 + $0xdd0] sm:$0xff] }
 0x300   :  { %3092 = vmatpush.msra.mxu1 %v1469_v47  ;;  %3112 = vmatpush.msra.mxu2 %v1533_v50  ;;  %v1893_v21 = vld [vmem:[#allocation6 + $0xfd0] sm:$0xff] }
 0x301   :  { %3132 = vmatpush.msra.mxu3 %v1597_v51  ;;  %3073 = vmatpush.msra.mxu0 %v1401_v52  ;;  %v1697_v22 = vld [vmem:[#allocation6 + $0x9b0] sm:$0xff] }
 0x302   :  { %3093 = vmatpush.msra.mxu1 %v1465_v53  ;;  %3113 = vmatpush.msra.mxu2 %v1529_v55  ;;  %v1761_v23 = vld [vmem:[#allocation6 + $0xbb0] sm:$0xff] }
 0x303   :  { %3133 = vmatpush.msra.mxu3 %v1593_v57  ;;  %3074 = vmatpush.msra.mxu0 %v1397_v58  ;;  %v1825_v8 = vld [vmem:[#allocation6 + $0xdb0] sm:$0xff] }
 0x304   :  { %3094 = vmatpush.msra.mxu1 %v1461_v59  ;;  %3114 = vmatpush.msra.mxu2 %v1525_v61  ;;  %v1889_v24 = vld [vmem:[#allocation6 + $0xfb0] sm:$0xff] }
 0x305   :  { %3134 = vmatpush.msra.mxu3 %v1589_v62  ;;  %3075 = vmatpush.msra.mxu0 %v1393_v63  ;;  %v1693_v26 = vld [vmem:[#allocation6 + $0x990] sm:$0xff] }
 0x306   :  { %3095 = vmatpush.msra.mxu1 %v1457_v0  ;;  %3115 = vmatpush.msra.mxu2 %v1521_v2  ;;  %v1757_v27 = vld [vmem:[#allocation6 + $0xb90] sm:$0xff] }
 0x307   :  { %3135 = vmatpush.msra.mxu3 %v1585_v3  ;;  %3076 = vmatpush.msra.mxu0 %v1389_v4  ;;  %v1821_v28 = vld [vmem:[#allocation6 + $0xd90] sm:$0xff] }
 0x308   :  { %3096 = vmatpush.msra.mxu1 %v1453_v5  ;;  %3116 = vmatpush.msra.mxu2 %v1517_v9  ;;  %v1885_v13 = vld [vmem:[#allocation6 + $0xf90] sm:$0xff] }
 0x309   :  { %3136 = vmatpush.msra.mxu3 %v1581_v10  ;;  %3077 = vmatmul.f32.vlgmr.msra.gmra.mxu0 %v4279_v35  ;;  %v1689_v29 = vld [vmem:[#allocation6 + $0x970] sm:$0xff] }
 0x30a   :  { %3097 = vmatmul.f32.vlgmr.msra.gmra.mxu1 %v4282_v36  ;;  %3117 = vmatmul.f32.vlgmr.msra.gmra.mxu2 %v4286_v39  ;;  %v1753_v30 = vld [vmem:[#allocation6 + $0xb70] sm:$0xff] }
 0x30b   :  { %3137 = vmatmul.f32.vlgmr.msra.gmra.mxu3 %v4288_v41  ;;  %3141 = vmatpush.msrb.mxu0 %v1705_v14  ;;  %v1817_v31 = vld [vmem:[#allocation6 + $0xd70] sm:$0xff] }
 0x30c   :  { %3161 = vmatpush.msrb.mxu1 %v1769_v16  ;;  %3181 = vmatpush.msrb.mxu2 %v1833_v17  ;;  %v1881_v32 = vld [vmem:[#allocation6 + $0xf70] sm:$0xff] }
 0x30d   :  { %3201 = vmatpush.msrb.mxu3 %v1897_v18  ;;  %3142 = vmatpush.msrb.mxu0 %v1701_v60  ;;  %v1685_v40 = vld [vmem:[#allocation6 + $0x950] sm:$0xff] }
 0x30e   :  { %3162 = vmatpush.msrb.mxu1 %v1765_v19  ;;  %3182 = vmatpush.msrb.mxu2 %v1829_v20  ;;  %v1749_v33 = vld [vmem:[#allocation6 + $0xb50] sm:$0xff] }
 0x30f   :  { %3202 = vmatpush.msrb.mxu3 %v1893_v21  ;;  %3143 = vmatpush.msrb.mxu0 %v1697_v22  ;;  %v1813_v42 = vld [vmem:[#allocation6 + $0xd50] sm:$0xff] }
 0x310   :  { %3163 = vmatpush.msrb.mxu1 %v1761_v23  ;;  %3183 = vmatpush.msrb.mxu2 %v1825_v8  ;;  %v1877_v34 = vld [vmem:[#allocation6 + $0xf50] sm:$0xff] }
 0x311   :  { %3203 = vmatpush.msrb.mxu3 %v1889_v24  ;;  %3144 = vmatpush.msrb.mxu0 %v1693_v26  ;;  %v1681_v37 = vld [vmem:[#allocation6 + $0x930] sm:$0xff] }
 0x312   :  { %3164 = vmatpush.msrb.mxu1 %v1757_v27  ;;  %3184 = vmatpush.msrb.mxu2 %v1821_v28  ;;  %v1745_v38 = vld [vmem:[#allocation6 + $0xb30] sm:$0xff] }
 0x313   :  { %3204 = vmatpush.msrb.mxu3 %v1885_v13  ;;  %3145 = vmatpush.msrb.mxu0 %v1689_v29  ;;  %v1809_v43 = vld [vmem:[#allocation6 + $0xd30] sm:$0xff] }
 0x314   :  { %3165 = vmatpush.msrb.mxu1 %v1753_v30  ;;  %3185 = vmatpush.msrb.mxu2 %v1817_v31  ;;  %v1873_v44 = vld [vmem:[#allocation6 + $0xf30] sm:$0xff] }
 0x315   :  { %3205 = vmatpush.msrb.mxu3 %v1881_v32  ;;  %3146 = vmatpush.msrb.mxu0 %v1685_v40  ;;  %v1677_v45 = vld [vmem:[#allocation6 + $0x910] sm:$0xff] }
 0x316   :  { %3166 = vmatpush.msrb.mxu1 %v1749_v33  ;;  %3186 = vmatpush.msrb.mxu2 %v1813_v42  ;;  %v1741_v47 = vld [vmem:[#allocation6 + $0xb10] sm:$0xff] }
 0x317   :  { %3206 = vmatpush.msrb.mxu3 %v1877_v34  ;;  %3147 = vmatpush.msrb.mxu0 %v1681_v37  ;;  %v1805_v50 = vld [vmem:[#allocation6 + $0xd10] sm:$0xff] }
 0x318   :  { %3167 = vmatpush.msrb.mxu1 %v1745_v38  ;;  %v1869_v51 = vld [vmem:[#allocation6 + $0xf10] sm:$0xff]  ;;  %3187 = vmatpush.msrb.mxu2 %v1809_v43 }
 0x319   :  { %3207 = vmatpush.msrb.mxu3 %v1873_v44  ;;  %v1673_v52 = vld [vmem:[#allocation6 + $0x8f0] sm:$0xff]  ;;  %3148 = vmatpush.msrb.mxu0 %v1677_v45 }
 0x31a   :  { %v1737_v53 = vld [vmem:[#allocation6 + $0xaf0] sm:$0xff]  ;;  %3168 = vmatpush.msrb.mxu1 %v1741_v47  ;;  %3188 = vmatpush.msrb.mxu2 %v1805_v50 }
 0x31b   :  { %v1801_v55 = vld [vmem:[#allocation6 + $0xcf0] sm:$0xff]  ;;  %3208 = vmatpush.msrb.mxu3 %v1869_v51  ;;  %3149 = vmatpush.msrb.mxu0 %v1673_v52 }
 0x31c   :  { %v1865_v57 = vld [vmem:[#allocation6 + $0xef0] sm:$0xff]  ;;  %3169 = vmatpush.msrb.mxu1 %v1737_v53  ;;  %3189 = vmatpush.msrb.mxu2 %v1801_v55 }
 0x31d   :  { %v1669_v58 = vld [vmem:[#allocation6 + $0x8d0] sm:$0xff]  ;;  %3209 = vmatpush.msrb.mxu3 %v1865_v57 }
 0x31e   :  { %v1733_v59 = vld [vmem:[#allocation6 + $0xad0] sm:$0xff]  ;;  %3150 = vmatpush.msrb.mxu0 %v1669_v58 }
 0x31f   :  { %v1797_v61 = vld [vmem:[#allocation6 + $0xcd0] sm:$0xff]  ;;  %3170 = vmatpush.msrb.mxu1 %v1733_v59 }
 0x320   :  { %v1861_v62 = vld [vmem:[#allocation6 + $0xed0] sm:$0xff]  ;;  %3190 = vmatpush.msrb.mxu2 %v1797_v61 }
 0x321   :  { %v1665_v63 = vld [vmem:[#allocation6 + $0x8b0] sm:$0xff]  ;;  %3210 = vmatpush.msrb.mxu3 %v1861_v62 }
 0x322   :  { %v1729_v0 = vld [vmem:[#allocation6 + $0xab0] sm:$0xff]  ;;  %3151 = vmatpush.msrb.mxu0 %v1665_v63 }
 0x323   :  { %v1793_v2 = vld [vmem:[#allocation6 + $0xcb0] sm:$0xff]  ;;  %3171 = vmatpush.msrb.mxu1 %v1729_v0 }
 0x324   :  { %v1857_v3 = vld [vmem:[#allocation6 + $0xeb0] sm:$0xff]  ;;  %3191 = vmatpush.msrb.mxu2 %v1793_v2 }
 0x325   :  { %v1661_v4 = vld [vmem:[#allocation6 + $0x890] sm:$0xff]  ;;  %3211 = vmatpush.msrb.mxu3 %v1857_v3 }
 0x326   :  { %v1725_v5 = vld [vmem:[#allocation6 + $0xa90] sm:$0xff]  ;;  %3152 = vmatpush.msrb.mxu0 %v1661_v4 }
 0x327   :  { %v1789_v9 = vld [vmem:[#allocation6 + $0xc90] sm:$0xff]  ;;  %3172 = vmatpush.msrb.mxu1 %v1725_v5 }
 0x328   :  { %v1853_v10 = vld [vmem:[#allocation6 + $0xe90] sm:$0xff]  ;;  %3192 = vmatpush.msrb.mxu2 %v1789_v9 }
 0x329   :  { %v1657_v14 = vld [vmem:[#allocation6 + $0x870] sm:$0xff]  ;;  %3212 = vmatpush.msrb.mxu3 %v1853_v10 }
 0x32a   :  { %v1721_v16 = vld [vmem:[#allocation6 + $0xa70] sm:$0xff]  ;;  %3153 = vmatpush.msrb.mxu0 %v1657_v14 }
 0x32b   :  { %v1785_v17 = vld [vmem:[#allocation6 + $0xc70] sm:$0xff]  ;;  %3173 = vmatpush.msrb.mxu1 %v1721_v16 }
 0x32c   :  { %v1849_v18 = vld [vmem:[#allocation6 + $0xe70] sm:$0xff]  ;;  %3193 = vmatpush.msrb.mxu2 %v1785_v17 }
 0x32d   :  { %v1653_v60 = vld [vmem:[#allocation6 + $0x850] sm:$0xff]  ;;  %3213 = vmatpush.msrb.mxu3 %v1849_v18 }
 0x32e   :  { %v1717_v19 = vld [vmem:[#allocation6 + $0xa50] sm:$0xff]  ;;  %3154 = vmatpush.msrb.mxu0 %v1653_v60 }
 0x32f   :  { %v1781_v20 = vld [vmem:[#allocation6 + $0xc50] sm:$0xff]  ;;  %3174 = vmatpush.msrb.mxu1 %v1717_v19 }
 0x330   :  { %v1845_v21 = vld [vmem:[#allocation6 + $0xe50] sm:$0xff]  ;;  %3194 = vmatpush.msrb.mxu2 %v1781_v20 }
 0x331   :  { %v1649_v22 = vld [vmem:[#allocation6 + $0x830] sm:$0xff]  ;;  %3214 = vmatpush.msrb.mxu3 %v1845_v21 }
 0x332   :  { %v1713_v23 = vld [vmem:[#allocation6 + $0xa30] sm:$0xff]  ;;  %3155 = vmatpush.msrb.mxu0 %v1649_v22 }
 0x333   :  { %v1777_v8 = vld [vmem:[#allocation6 + $0xc30] sm:$0xff]  ;;  %3175 = vmatpush.msrb.mxu1 %v1713_v23 }
 0x334   :  { %v1841_v24 = vld [vmem:[#allocation6 + $0xe30] sm:$0xff]  ;;  %3195 = vmatpush.msrb.mxu2 %v1777_v8 }
 0x335   :  { %v1645_v26 = vld [vmem:[#allocation6 + $0x810] sm:$0xff]  ;;  %3215 = vmatpush.msrb.mxu3 %v1841_v24 }
 0x336   :  { %v1709_v27 = vld [vmem:[#allocation6 + $0xa10] sm:$0xff]  ;;  %3156 = vmatpush.msrb.mxu0 %v1645_v26 }
 0x337   :  { %v1773_v28 = vld [vmem:[#allocation6 + $0xc10] sm:$0xff]  ;;  %3176 = vmatpush.msrb.mxu1 %v1709_v27  ;;  %3157 = vmatmul.f32.vlgmr.msrb.gmra.mxu0 %v4297_v6 }
 0x338   :  { %v1837_v13 = vld [vmem:[#allocation6 + $0xe10] sm:$0xff]  ;;  %3196 = vmatpush.msrb.mxu2 %v1773_v28  ;;  %3177 = vmatmul.f32.vlgmr.msrb.gmra.mxu1 %v4300_v7 }
 0x339   :  { %3216 = vmatpush.msrb.mxu3 %v1837_v13  ;;  %v1961_v29 = vld [vmem:[#allocation6 + $0x11f0] sm:$0xff]  ;;  %3197 = vmatmul.f32.vlgmr.msrb.gmra.mxu2 %v4304_v11 }
 0x33a   :  { %v2025_v30 = vld [vmem:[#allocation6 + $0x13f0] sm:$0xff]  ;;  %3217 = vmatmul.f32.vlgmr.msrb.gmra.mxu3 %v4306_v12  ;;  %3221 = vmatpush.msra.mxu0 %v1961_v29 }
 0x33b   :  { %v2089_v31 = vld [vmem:[#allocation6 + $0x15f0] sm:$0xff]  ;;  %3241 = vmatpush.msra.mxu1 %v2025_v30 }
 0x33c   :  { %v2153_v32 = vld [vmem:[#allocation6 + $0x17f0] sm:$0xff]  ;;  %3261 = vmatpush.msra.mxu2 %v2089_v31 }
 0x33d   :  { %v1957_v40 = vld [vmem:[#allocation6 + $0x11d0] sm:$0xff]  ;;  %3281 = vmatpush.msra.mxu3 %v2153_v32 }
 0x33e   :  { %v2021_v33 = vld [vmem:[#allocation6 + $0x13d0] sm:$0xff]  ;;  %3222 = vmatpush.msra.mxu0 %v1957_v40 }
 0x33f   :  { %v2085_v42 = vld [vmem:[#allocation6 + $0x15d0] sm:$0xff]  ;;  %3242 = vmatpush.msra.mxu1 %v2021_v33 }
 0x340   :  { %v2149_v34 = vld [vmem:[#allocation6 + $0x17d0] sm:$0xff]  ;;  %3262 = vmatpush.msra.mxu2 %v2085_v42 }
 0x341   :  { %v1953_v37 = vld [vmem:[#allocation6 + $0x11b0] sm:$0xff]  ;;  %3282 = vmatpush.msra.mxu3 %v2149_v34 }
 0x342   :  { %v2017_v38 = vld [vmem:[#allocation6 + $0x13b0] sm:$0xff]  ;;  %3223 = vmatpush.msra.mxu0 %v1953_v37 }
 0x343   :  { %v2081_v43 = vld [vmem:[#allocation6 + $0x15b0] sm:$0xff]  ;;  %3243 = vmatpush.msra.mxu1 %v2017_v38 }
 0x344   :  { %v2145_v44 = vld [vmem:[#allocation6 + $0x17b0] sm:$0xff]  ;;  %3263 = vmatpush.msra.mxu2 %v2081_v43 }
 0x345   :  { %v1949_v45 = vld [vmem:[#allocation6 + $0x1190] sm:$0xff]  ;;  %3283 = vmatpush.msra.mxu3 %v2145_v44 }
 0x346   :  { %v2013_v47 = vld [vmem:[#allocation6 + $0x1390] sm:$0xff]  ;;  %3224 = vmatpush.msra.mxu0 %v1949_v45 }
 0x347   :  { %v2077_v50 = vld [vmem:[#allocation6 + $0x1590] sm:$0xff]  ;;  %3244 = vmatpush.msra.mxu1 %v2013_v47 }
 0x348   :  { %v2141_v51 = vld [vmem:[#allocation6 + $0x1790] sm:$0xff]  ;;  %3264 = vmatpush.msra.mxu2 %v2077_v50 }
 0x349   :  { %v1945_v52 = vld [vmem:[#allocation6 + $0x1170] sm:$0xff]  ;;  %3284 = vmatpush.msra.mxu3 %v2141_v51 }
 0x34a   :  { %v2009_v53 = vld [vmem:[#allocation6 + $0x1370] sm:$0xff]  ;;  %3225 = vmatpush.msra.mxu0 %v1945_v52 }
 0x34b   :  { %v2073_v55 = vld [vmem:[#allocation6 + $0x1570] sm:$0xff]  ;;  %3245 = vmatpush.msra.mxu1 %v2009_v53 }
 0x34c   :  { %v2137_v57 = vld [vmem:[#allocation6 + $0x1770] sm:$0xff]  ;;  %3265 = vmatpush.msra.mxu2 %v2073_v55 }
 0x34d   :  { %v1941_v58 = vld [vmem:[#allocation6 + $0x1150] sm:$0xff]  ;;  %3285 = vmatpush.msra.mxu3 %v2137_v57 }
 0x34e   :  { %v2005_v59 = vld [vmem:[#allocation6 + $0x1350] sm:$0xff]  ;;  %3226 = vmatpush.msra.mxu0 %v1941_v58 }
 0x34f   :  { %v2069_v61 = vld [vmem:[#allocation6 + $0x1550] sm:$0xff]  ;;  %3246 = vmatpush.msra.mxu1 %v2005_v59 }
 0x350   :  { %v2133_v62 = vld [vmem:[#allocation6 + $0x1750] sm:$0xff]  ;;  %3266 = vmatpush.msra.mxu2 %v2069_v61 }
 0x351   :  { %v1937_v63 = vld [vmem:[#allocation6 + $0x1130] sm:$0xff]  ;;  %3286 = vmatpush.msra.mxu3 %v2133_v62 }
 0x352   :  { %v2001_v0 = vld [vmem:[#allocation6 + $0x1330] sm:$0xff]  ;;  %3227 = vmatpush.msra.mxu0 %v1937_v63 }
 0x353   :  { %v2065_v2 = vld [vmem:[#allocation6 + $0x1530] sm:$0xff]  ;;  %3247 = vmatpush.msra.mxu1 %v2001_v0 }
 0x354   :  { %v2129_v3 = vld [vmem:[#allocation6 + $0x1730] sm:$0xff]  ;;  %3267 = vmatpush.msra.mxu2 %v2065_v2 }
 0x355   :  { %v1933_v4 = vld [vmem:[#allocation6 + $0x1110] sm:$0xff]  ;;  %3287 = vmatpush.msra.mxu3 %v2129_v3 }
 0x356   :  { %v1997_v5 = vld [vmem:[#allocation6 + $0x1310] sm:$0xff]  ;;  %3228 = vmatpush.msra.mxu0 %v1933_v4 }
 0x357   :  { %v2061_v9 = vld [vmem:[#allocation6 + $0x1510] sm:$0xff]  ;;  %3248 = vmatpush.msra.mxu1 %v1997_v5 }
 0x358   :  { %v2125_v10 = vld [vmem:[#allocation6 + $0x1710] sm:$0xff]  ;;  %3268 = vmatpush.msra.mxu2 %v2061_v9 }
 0x359   :  { %v1929_v14 = vld [vmem:[#allocation6 + $0x10f0] sm:$0xff]  ;;  %3288 = vmatpush.msra.mxu3 %v2125_v10 }
 0x35a   :  { %v1993_v16 = vld [vmem:[#allocation6 + $0x12f0] sm:$0xff]  ;;  %3229 = vmatpush.msra.mxu0 %v1929_v14 }
 0x35b   :  { %v2057_v17 = vld [vmem:[#allocation6 + $0x14f0] sm:$0xff]  ;;  %3249 = vmatpush.msra.mxu1 %v1993_v16 }
 0x35c   :  { %v2121_v18 = vld [vmem:[#allocation6 + $0x16f0] sm:$0xff]  ;;  %3269 = vmatpush.msra.mxu2 %v2057_v17 }
 0x35d   :  { %v1925_v60 = vld [vmem:[#allocation6 + $0x10d0] sm:$0xff]  ;;  %3289 = vmatpush.msra.mxu3 %v2121_v18 }
 0x35e   :  { %v1989_v19 = vld [vmem:[#allocation6 + $0x12d0] sm:$0xff]  ;;  %3230 = vmatpush.msra.mxu0 %v1925_v60 }
 0x35f   :  { %v2053_v20 = vld [vmem:[#allocation6 + $0x14d0] sm:$0xff]  ;;  %3250 = vmatpush.msra.mxu1 %v1989_v19 }
 0x360   :  { %v2117_v21 = vld [vmem:[#allocation6 + $0x16d0] sm:$0xff]  ;;  %3270 = vmatpush.msra.mxu2 %v2053_v20 }
 0x361   :  { %v1921_v22 = vld [vmem:[#allocation6 + $0x10b0] sm:$0xff]  ;;  %3290 = vmatpush.msra.mxu3 %v2117_v21 }
 0x362   :  { %v1985_v23 = vld [vmem:[#allocation6 + $0x12b0] sm:$0xff]  ;;  %3231 = vmatpush.msra.mxu0 %v1921_v22 }
 0x363   :  { %v2049_v8 = vld [vmem:[#allocation6 + $0x14b0] sm:$0xff]  ;;  %3251 = vmatpush.msra.mxu1 %v1985_v23 }
 0x364   :  { %v2113_v24 = vld [vmem:[#allocation6 + $0x16b0] sm:$0xff]  ;;  %3271 = vmatpush.msra.mxu2 %v2049_v8 }
 0x365   :  { %v1917_v26 = vld [vmem:[#allocation6 + $0x1090] sm:$0xff]  ;;  %3291 = vmatpush.msra.mxu3 %v2113_v24 }
 0x366   :  { %v1981_v27 = vld [vmem:[#allocation6 + $0x1290] sm:$0xff]  ;;  %3232 = vmatpush.msra.mxu0 %v1917_v26 }
 0x367   :  { %v2045_v28 = vld [vmem:[#allocation6 + $0x1490] sm:$0xff]  ;;  %3252 = vmatpush.msra.mxu1 %v1981_v27 }
 0x368   :  { %v2109_v13 = vld [vmem:[#allocation6 + $0x1690] sm:$0xff]  ;;  %3272 = vmatpush.msra.mxu2 %v2045_v28 }
 0x369   :  { %v1913_v29 = vld [vmem:[#allocation6 + $0x1070] sm:$0xff]  ;;  %3292 = vmatpush.msra.mxu3 %v2109_v13 }
 0x36a   :  { %v1977_v30 = vld [vmem:[#allocation6 + $0x1270] sm:$0xff]  ;;  %3233 = vmatpush.msra.mxu0 %v1913_v29 }
 0x36b   :  { %v2041_v31 = vld [vmem:[#allocation6 + $0x1470] sm:$0xff]  ;;  %3253 = vmatpush.msra.mxu1 %v1977_v30 }
 0x36c   :  { %v2105_v32 = vld [vmem:[#allocation6 + $0x1670] sm:$0xff]  ;;  %3273 = vmatpush.msra.mxu2 %v2041_v31 }
 0x36d   :  { %v1909_v40 = vld [vmem:[#allocation6 + $0x1050] sm:$0xff]  ;;  %3293 = vmatpush.msra.mxu3 %v2105_v32 }
 0x36e   :  { %v1973_v33 = vld [vmem:[#allocation6 + $0x1250] sm:$0xff]  ;;  %3234 = vmatpush.msra.mxu0 %v1909_v40 }
 0x36f   :  { %v2037_v42 = vld [vmem:[#allocation6 + $0x1450] sm:$0xff]  ;;  %3254 = vmatpush.msra.mxu1 %v1973_v33 }
 0x370   :  { %v2101_v34 = vld [vmem:[#allocation6 + $0x1650] sm:$0xff]  ;;  %3274 = vmatpush.msra.mxu2 %v2037_v42 }
 0x371   :  { %v1905_v37 = vld [vmem:[#allocation6 + $0x1030] sm:$0xff]  ;;  %3294 = vmatpush.msra.mxu3 %v2101_v34 }
 0x372   :  { %v1969_v38 = vld [vmem:[#allocation6 + $0x1230] sm:$0xff]  ;;  %3235 = vmatpush.msra.mxu0 %v1905_v37 }
 0x373   :  { %v2033_v43 = vld [vmem:[#allocation6 + $0x1430] sm:$0xff]  ;;  %3255 = vmatpush.msra.mxu1 %v1969_v38 }
 0x374   :  { %v2097_v44 = vld [vmem:[#allocation6 + $0x1630] sm:$0xff]  ;;  %3275 = vmatpush.msra.mxu2 %v2033_v43 }
 0x375   :  { %v1901_v45 = vld [vmem:[#allocation6 + $0x1010] sm:$0xff]  ;;  %3295 = vmatpush.msra.mxu3 %v2097_v44 }
 0x376   :  { %v1965_v47 = vld [vmem:[#allocation6 + $0x1210] sm:$0xff]  ;;  %3236 = vmatpush.msra.mxu0 %v1901_v45 }
 0x377   :  { %v2029_v50 = vld [vmem:[#allocation6 + $0x1410] sm:$0xff]  ;;  %3256 = vmatpush.msra.mxu1 %v1965_v47  ;;  %3237 = vmatmul.f32.vlgmr.msra.gmra.mxu0 %v4320_v48 }
 0x378   :  { %v2093_v51 = vld [vmem:[#allocation6 + $0x1610] sm:$0xff]  ;;  %3276 = vmatpush.msra.mxu2 %v2029_v50  ;;  %3257 = vmatmul.f32.vlgmr.msra.gmra.mxu1 %v4323_v49 }
 0x379   :  { %3296 = vmatpush.msra.mxu3 %v2093_v51  ;;  %v2217_v52 = vld [vmem:[#allocation6 + $0x19f0] sm:$0xff]  ;;  %3277 = vmatmul.f32.vlgmr.msra.gmra.mxu2 %v4317_v46 }
 0x37a   :  { %v2281_v53 = vld [vmem:[#allocation6 + $0x1bf0] sm:$0xff]  ;;  %3297 = vmatmul.f32.vlgmr.msra.gmra.mxu3 %v4329_v54  ;;  %3301 = vmatpush.msrb.mxu0 %v2217_v52 }
 0x37b   :  { %v2345_v55 = vld [vmem:[#allocation6 + $0x1df0] sm:$0xff]  ;;  %3321 = vmatpush.msrb.mxu1 %v2281_v53 }
 0x37c   :  { %v2409_v57 = vld [vmem:[#allocation6 + $0x1ff0] sm:$0xff]  ;;  %3341 = vmatpush.msrb.mxu2 %v2345_v55 }
 0x37d   :  { %v2213_v58 = vld [vmem:[#allocation6 + $0x19d0] sm:$0xff]  ;;  %3361 = vmatpush.msrb.mxu3 %v2409_v57 }
 0x37e   :  { %v2277_v59 = vld [vmem:[#allocation6 + $0x1bd0] sm:$0xff]  ;;  %3302 = vmatpush.msrb.mxu0 %v2213_v58 }
 0x37f   :  { %v2341_v61 = vld [vmem:[#allocation6 + $0x1dd0] sm:$0xff]  ;;  %3322 = vmatpush.msrb.mxu1 %v2277_v59 }
 0x380   :  { %v2405_v62 = vld [vmem:[#allocation6 + $0x1fd0] sm:$0xff]  ;;  %3342 = vmatpush.msrb.mxu2 %v2341_v61 }
 0x381   :  { %v2209_v63 = vld [vmem:[#allocation6 + $0x19b0] sm:$0xff]  ;;  %3362 = vmatpush.msrb.mxu3 %v2405_v62 }
 0x382   :  { %v2273_v0 = vld [vmem:[#allocation6 + $0x1bb0] sm:$0xff]  ;;  %3303 = vmatpush.msrb.mxu0 %v2209_v63 }
 0x383   :  { %v2337_v2 = vld [vmem:[#allocation6 + $0x1db0] sm:$0xff]  ;;  %3323 = vmatpush.msrb.mxu1 %v2273_v0 }
 0x384   :  { %v2401_v3 = vld [vmem:[#allocation6 + $0x1fb0] sm:$0xff]  ;;  %3343 = vmatpush.msrb.mxu2 %v2337_v2 }
 0x385   :  { %v2205_v4 = vld [vmem:[#allocation6 + $0x1990] sm:$0xff]  ;;  %3363 = vmatpush.msrb.mxu3 %v2401_v3 }
 0x386   :  { %v2269_v5 = vld [vmem:[#allocation6 + $0x1b90] sm:$0xff]  ;;  %3304 = vmatpush.msrb.mxu0 %v2205_v4 }
 0x387   :  { %v2333_v9 = vld [vmem:[#allocation6 + $0x1d90] sm:$0xff]  ;;  %3324 = vmatpush.msrb.mxu1 %v2269_v5 }
 0x388   :  { %v2397_v10 = vld [vmem:[#allocation6 + $0x1f90] sm:$0xff]  ;;  %3344 = vmatpush.msrb.mxu2 %v2333_v9 }
 0x389   :  { %v2201_v14 = vld [vmem:[#allocation6 + $0x1970] sm:$0xff]  ;;  %3364 = vmatpush.msrb.mxu3 %v2397_v10 }
 0x38a   :  { %v2265_v16 = vld [vmem:[#allocation6 + $0x1b70] sm:$0xff]  ;;  %3305 = vmatpush.msrb.mxu0 %v2201_v14  ;;  %v1450_v14 = vld [vmem:[#allocation6 + $0x1f8] sm:$0xff] }
 0x38b   :  { %v2329_v17 = vld [vmem:[#allocation6 + $0x1d70] sm:$0xff]  ;;  %3325 = vmatpush.msrb.mxu1 %v2265_v16  ;;  %v1514_v16 = vld [vmem:[#allocation6 + $0x3f8] sm:$0xff] }
 0x38c   :  { %v2393_v18 = vld [vmem:[#allocation6 + $0x1f70] sm:$0xff]  ;;  %3345 = vmatpush.msrb.mxu2 %v2329_v17  ;;  %v1578_v17 = vld [vmem:[#allocation6 + $0x5f8] sm:$0xff] }
 0x38d   :  { %v2197_v60 = vld [vmem:[#allocation6 + $0x1950] sm:$0xff]  ;;  %3365 = vmatpush.msrb.mxu3 %v2393_v18  ;;  %v1642_v18 = vld [vmem:[#allocation6 + $0x7f8] sm:$0xff] }
 0x38e   :  { %v2261_v19 = vld [vmem:[#allocation6 + $0x1b50] sm:$0xff]  ;;  %3306 = vmatpush.msrb.mxu0 %v2197_v60  ;;  %v1446_v60 = vld [vmem:[#allocation6 + $0x1d8] sm:$0xff] }
 0x38f   :  { %v2325_v20 = vld [vmem:[#allocation6 + $0x1d50] sm:$0xff]  ;;  %3326 = vmatpush.msrb.mxu1 %v2261_v19  ;;  %v1510_v19 = vld [vmem:[#allocation6 + $0x3d8] sm:$0xff] }
 0x390   :  { %v2389_v21 = vld [vmem:[#allocation6 + $0x1f50] sm:$0xff]  ;;  %3346 = vmatpush.msrb.mxu2 %v2325_v20  ;;  %v1574_v20 = vld [vmem:[#allocation6 + $0x5d8] sm:$0xff] }
 0x391   :  { %v2193_v22 = vld [vmem:[#allocation6 + $0x1930] sm:$0xff]  ;;  %3366 = vmatpush.msrb.mxu3 %v2389_v21  ;;  %v1638_v21 = vld [vmem:[#allocation6 + $0x7d8] sm:$0xff] }
 0x392   :  { %v2257_v23 = vld [vmem:[#allocation6 + $0x1b30] sm:$0xff]  ;;  %3307 = vmatpush.msrb.mxu0 %v2193_v22  ;;  %v1442_v22 = vld [vmem:[#allocation6 + $0x1b8] sm:$0xff] }
 0x393   :  { %v2321_v8 = vld [vmem:[#allocation6 + $0x1d30] sm:$0xff]  ;;  %3327 = vmatpush.msrb.mxu1 %v2257_v23  ;;  %v1506_v23 = vld [vmem:[#allocation6 + $0x3b8] sm:$0xff] }
 0x394   :  { %v2385_v24 = vld [vmem:[#allocation6 + $0x1f30] sm:$0xff]  ;;  %3347 = vmatpush.msrb.mxu2 %v2321_v8  ;;  %v1570_v8 = vld [vmem:[#allocation6 + $0x5b8] sm:$0xff] }
 0x395   :  { %v2189_v26 = vld [vmem:[#allocation6 + $0x1910] sm:$0xff]  ;;  %3367 = vmatpush.msrb.mxu3 %v2385_v24  ;;  %v1634_v24 = vld [vmem:[#allocation6 + $0x7b8] sm:$0xff] }
 0x396   :  { %v2253_v27 = vld [vmem:[#allocation6 + $0x1b10] sm:$0xff]  ;;  %3308 = vmatpush.msrb.mxu0 %v2189_v26  ;;  %v1438_v26 = vld [vmem:[#allocation6 + $0x198] sm:$0xff] }
 0x397   :  { %v2317_v28 = vld [vmem:[#allocation6 + $0x1d10] sm:$0xff]  ;;  %3328 = vmatpush.msrb.mxu1 %v2253_v27  ;;  %v1502_v27 = vld [vmem:[#allocation6 + $0x398] sm:$0xff] }
 0x398   :  { %v2381_v13 = vld [vmem:[#allocation6 + $0x1f10] sm:$0xff]  ;;  %3348 = vmatpush.msrb.mxu2 %v2317_v28  ;;  %v1566_v28 = vld [vmem:[#allocation6 + $0x598] sm:$0xff] }
 0x399   :  { %v2185_v29 = vld [vmem:[#allocation6 + $0x18f0] sm:$0xff]  ;;  %3368 = vmatpush.msrb.mxu3 %v2381_v13  ;;  %v1630_v13 = vld [vmem:[#allocation6 + $0x798] sm:$0xff] }
 0x39a   :  { %v2249_v30 = vld [vmem:[#allocation6 + $0x1af0] sm:$0xff]  ;;  %3309 = vmatpush.msrb.mxu0 %v2185_v29  ;;  %v1434_v29 = vld [vmem:[#allocation6 + $0x178] sm:$0xff] }
 0x39b   :  { %v2313_v31 = vld [vmem:[#allocation6 + $0x1cf0] sm:$0xff]  ;;  %3329 = vmatpush.msrb.mxu1 %v2249_v30  ;;  %v1498_v30 = vld [vmem:[#allocation6 + $0x378] sm:$0xff] }
 0x39c   :  { %v2377_v32 = vld [vmem:[#allocation6 + $0x1ef0] sm:$0xff]  ;;  %3349 = vmatpush.msrb.mxu2 %v2313_v31  ;;  %v1562_v31 = vld [vmem:[#allocation6 + $0x578] sm:$0xff] }
 0x39d   :  { %v2181_v40 = vld [vmem:[#allocation6 + $0x18d0] sm:$0xff]  ;;  %3369 = vmatpush.msrb.mxu3 %v2377_v32  ;;  %v1626_v32 = vld [vmem:[#allocation6 + $0x778] sm:$0xff] }
 0x39e   :  { %v2245_v33 = vld [vmem:[#allocation6 + $0x1ad0] sm:$0xff]  ;;  %3310 = vmatpush.msrb.mxu0 %v2181_v40  ;;  %v1430_v40 = vld [vmem:[#allocation6 + $0x158] sm:$0xff] }
 0x39f   :  { %v2309_v42 = vld [vmem:[#allocation6 + $0x1cd0] sm:$0xff]  ;;  %3330 = vmatpush.msrb.mxu1 %v2245_v33  ;;  %v1494_v33 = vld [vmem:[#allocation6 + $0x358] sm:$0xff] }
 0x3a0   :  { %v2373_v34 = vld [vmem:[#allocation6 + $0x1ed0] sm:$0xff]  ;;  %3350 = vmatpush.msrb.mxu2 %v2309_v42  ;;  %v1558_v42 = vld [vmem:[#allocation6 + $0x558] sm:$0xff] }
 0x3a1   :  { %v2177_v37 = vld [vmem:[#allocation6 + $0x18b0] sm:$0xff]  ;;  %3370 = vmatpush.msrb.mxu3 %v2373_v34  ;;  %v1622_v34 = vld [vmem:[#allocation6 + $0x758] sm:$0xff] }
 0x3a2   :  { %v2241_v38 = vld [vmem:[#allocation6 + $0x1ab0] sm:$0xff]  ;;  %3311 = vmatpush.msrb.mxu0 %v2177_v37  ;;  %v1426_v37 = vld [vmem:[#allocation6 + $0x138] sm:$0xff] }
 0x3a3   :  { %v2305_v43 = vld [vmem:[#allocation6 + $0x1cb0] sm:$0xff]  ;;  %3331 = vmatpush.msrb.mxu1 %v2241_v38  ;;  %v1490_v38 = vld [vmem:[#allocation6 + $0x338] sm:$0xff] }
 0x3a4   :  { %v2369_v44 = vld [vmem:[#allocation6 + $0x1eb0] sm:$0xff]  ;;  %3351 = vmatpush.msrb.mxu2 %v2305_v43  ;;  %v1554_v43 = vld [vmem:[#allocation6 + $0x538] sm:$0xff] }
 0x3a5   :  { %v2173_v45 = vld [vmem:[#allocation6 + $0x1890] sm:$0xff]  ;;  %3371 = vmatpush.msrb.mxu3 %v2369_v44  ;;  %v1618_v44 = vld [vmem:[#allocation6 + $0x738] sm:$0xff] }
 0x3a6   :  { %v2237_v47 = vld [vmem:[#allocation6 + $0x1a90] sm:$0xff]  ;;  %3312 = vmatpush.msrb.mxu0 %v2173_v45  ;;  %v1422_v45 = vld [vmem:[#allocation6 + $0x118] sm:$0xff] }
 0x3a7   :  { %v2301_v50 = vld [vmem:[#allocation6 + $0x1c90] sm:$0xff]  ;;  %3332 = vmatpush.msrb.mxu1 %v2237_v47  ;;  %v1486_v47 = vld [vmem:[#allocation6 + $0x318] sm:$0xff] }
 0x3a8   :  { %v2365_v51 = vld [vmem:[#allocation6 + $0x1e90] sm:$0xff]  ;;  %3352 = vmatpush.msrb.mxu2 %v2301_v50  ;;  %v1550_v50 = vld [vmem:[#allocation6 + $0x518] sm:$0xff] }
 0x3a9   :  { %v2169_v52 = vld [vmem:[#allocation6 + $0x1870] sm:$0xff]  ;;  %3372 = vmatpush.msrb.mxu3 %v2365_v51  ;;  %v1614_v51 = vld [vmem:[#allocation6 + $0x718] sm:$0xff] }
 0x3aa   :  { %v2233_v53 = vld [vmem:[#allocation6 + $0x1a70] sm:$0xff]  ;;  %3313 = vmatpush.msrb.mxu0 %v2169_v52  ;;  %v1418_v52 = vld [vmem:[#allocation6 + $0xf8] sm:$0xff] }
 0x3ab   :  { %v2297_v55 = vld [vmem:[#allocation6 + $0x1c70] sm:$0xff]  ;;  %3333 = vmatpush.msrb.mxu1 %v2233_v53  ;;  %v1482_v53 = vld [vmem:[#allocation6 + $0x2f8] sm:$0xff] }
 0x3ac   :  { %v2361_v57 = vld [vmem:[#allocation6 + $0x1e70] sm:$0xff]  ;;  %3353 = vmatpush.msrb.mxu2 %v2297_v55  ;;  %v1546_v55 = vld [vmem:[#allocation6 + $0x4f8] sm:$0xff] }
 0x3ad   :  { %v2165_v58 = vld [vmem:[#allocation6 + $0x1850] sm:$0xff]  ;;  %3373 = vmatpush.msrb.mxu3 %v2361_v57  ;;  %v1610_v57 = vld [vmem:[#allocation6 + $0x6f8] sm:$0xff] }
 0x3ae   :  { %v2229_v59 = vld [vmem:[#allocation6 + $0x1a50] sm:$0xff]  ;;  %3314 = vmatpush.msrb.mxu0 %v2165_v58  ;;  %v1414_v58 = vld [vmem:[#allocation6 + $0xd8] sm:$0xff] }
 0x3af   :  { %v2293_v61 = vld [vmem:[#allocation6 + $0x1c50] sm:$0xff]  ;;  %3334 = vmatpush.msrb.mxu1 %v2229_v59  ;;  %v1478_v59 = vld [vmem:[#allocation6 + $0x2d8] sm:$0xff] }
 0x3b0   :  { %v2357_v62 = vld [vmem:[#allocation6 + $0x1e50] sm:$0xff]  ;;  %3354 = vmatpush.msrb.mxu2 %v2293_v61  ;;  %v1542_v61 = vld [vmem:[#allocation6 + $0x4d8] sm:$0xff] }
 0x3b1   :  { %v2161_v63 = vld [vmem:[#allocation6 + $0x1830] sm:$0xff]  ;;  %3374 = vmatpush.msrb.mxu3 %v2357_v62  ;;  %v1606_v62 = vld [vmem:[#allocation6 + $0x6d8] sm:$0xff] }
 0x3b2   :  { %v2225_v0 = vld [vmem:[#allocation6 + $0x1a30] sm:$0xff]  ;;  %3315 = vmatpush.msrb.mxu0 %v2161_v63  ;;  %v1410_v63 = vld [vmem:[#allocation6 + $0xb8] sm:$0xff] }
 0x3b3   :  { %v2289_v2 = vld [vmem:[#allocation6 + $0x1c30] sm:$0xff]  ;;  %3335 = vmatpush.msrb.mxu1 %v2225_v0  ;;  %v1474_v0 = vld [vmem:[#allocation6 + $0x2b8] sm:$0xff] }
 0x3b4   :  { %v2353_v3 = vld [vmem:[#allocation6 + $0x1e30] sm:$0xff]  ;;  %3355 = vmatpush.msrb.mxu2 %v2289_v2  ;;  %v1538_v2 = vld [vmem:[#allocation6 + $0x4b8] sm:$0xff] }
 0x3b5   :  { %v2157_v4 = vld [vmem:[#allocation6 + $0x1810] sm:$0xff]  ;;  %3375 = vmatpush.msrb.mxu3 %v2353_v3  ;;  %v1602_v3 = vld [vmem:[#allocation6 + $0x6b8] sm:$0xff] }
 0x3b6   :  { %v2221_v5 = vld [vmem:[#allocation6 + $0x1a10] sm:$0xff]  ;;  %3316 = vmatpush.msrb.mxu0 %v2157_v4  ;;  %v1406_v4 = vld [vmem:[#allocation6 + $0x98] sm:$0xff] }
 0x3b7   :  { %v2285_v9 = vld [vmem:[#allocation6 + $0x1c10] sm:$0xff]  ;;  %3336 = vmatpush.msrb.mxu1 %v2221_v5  ;;  %3317 = vmatmul.f32.vlgmr.msrb.gmra.mxu0 %v4336_v1  ;;  %v1470_v5 = vld [vmem:[#allocation6 + $0x298] sm:$0xff] }
 0x3b8   :  { %v2349_v10 = vld [vmem:[#allocation6 + $0x1e10] sm:$0xff]  ;;  %3356 = vmatpush.msrb.mxu2 %v2285_v9  ;;  %3337 = vmatmul.f32.vlgmr.msrb.gmra.mxu1 %v4339_v25  ;;  %v1534_v9 = vld [vmem:[#allocation6 + $0x498] sm:$0xff] }
 0x3b9   :  { %3376 = vmatpush.msrb.mxu3 %v2349_v10  ;;  %3357 = vmatmul.f32.vlgmr.msrb.gmra.mxu2 %v4345_v56  ;;  %v1598_v10 = vld [vmem:[#allocation6 + $0x698] sm:$0xff] }
 0x3ba   :  { %3377 = vmatmul.f32.vlgmr.msrb.gmra.mxu3 %v4348_v15  ;;  %3381 = vmatpush.msra.mxu0 %v1450_v14  ;;  %v1402_v14 = vld [vmem:[#allocation6 + $0x78] sm:$0xff] }
 0x3bb   :  { %3401 = vmatpush.msra.mxu1 %v1514_v16  ;;  %3421 = vmatpush.msra.mxu2 %v1578_v17  ;;  %v1466_v16 = vld [vmem:[#allocation6 + $0x278] sm:$0xff] }
 0x3bc   :  { %3441 = vmatpush.msra.mxu3 %v1642_v18  ;;  %3382 = vmatpush.msra.mxu0 %v1446_v60  ;;  %v1530_v17 = vld [vmem:[#allocation6 + $0x478] sm:$0xff] }
 0x3bd   :  { %3402 = vmatpush.msra.mxu1 %v1510_v19  ;;  %3422 = vmatpush.msra.mxu2 %v1574_v20  ;;  %v1594_v18 = vld [vmem:[#allocation6 + $0x678] sm:$0xff] }
 0x3be   :  { %3442 = vmatpush.msra.mxu3 %v1638_v21  ;;  %3383 = vmatpush.msra.mxu0 %v1442_v22  ;;  %v1398_v60 = vld [vmem:[#allocation6 + $0x58] sm:$0xff] }
 0x3bf   :  { %3403 = vmatpush.msra.mxu1 %v1506_v23  ;;  %3423 = vmatpush.msra.mxu2 %v1570_v8  ;;  %v1462_v19 = vld [vmem:[#allocation6 + $0x258] sm:$0xff] }
 0x3c0   :  { %3443 = vmatpush.msra.mxu3 %v1634_v24  ;;  %3384 = vmatpush.msra.mxu0 %v1438_v26  ;;  %v1526_v20 = vld [vmem:[#allocation6 + $0x458] sm:$0xff] }
 0x3c1   :  { %3404 = vmatpush.msra.mxu1 %v1502_v27  ;;  %3424 = vmatpush.msra.mxu2 %v1566_v28  ;;  %v1590_v21 = vld [vmem:[#allocation6 + $0x658] sm:$0xff] }
 0x3c2   :  { %3444 = vmatpush.msra.mxu3 %v1630_v13  ;;  %3385 = vmatpush.msra.mxu0 %v1434_v29  ;;  %v1394_v22 = vld [vmem:[#allocation6 + $0x38] sm:$0xff] }
 0x3c3   :  { %3405 = vmatpush.msra.mxu1 %v1498_v30  ;;  %3425 = vmatpush.msra.mxu2 %v1562_v31  ;;  %v1458_v23 = vld [vmem:[#allocation6 + $0x238] sm:$0xff] }
 0x3c4   :  { %3445 = vmatpush.msra.mxu3 %v1626_v32  ;;  %3386 = vmatpush.msra.mxu0 %v1430_v40  ;;  %v1522_v8 = vld [vmem:[#allocation6 + $0x438] sm:$0xff] }
 0x3c5   :  { %3406 = vmatpush.msra.mxu1 %v1494_v33  ;;  %3426 = vmatpush.msra.mxu2 %v1558_v42  ;;  %v1586_v24 = vld [vmem:[#allocation6 + $0x638] sm:$0xff] }
 0x3c6   :  { %3446 = vmatpush.msra.mxu3 %v1622_v34  ;;  %3387 = vmatpush.msra.mxu0 %v1426_v37  ;;  %v1390_v26 = vld [vmem:[#allocation6 + $0x18] sm:$0xff] }
 0x3c7   :  { %3407 = vmatpush.msra.mxu1 %v1490_v38  ;;  %3427 = vmatpush.msra.mxu2 %v1554_v43  ;;  %v1454_v27 = vld [vmem:[#allocation6 + $0x218] sm:$0xff] }
 0x3c8   :  { %3447 = vmatpush.msra.mxu3 %v1618_v44  ;;  %3388 = vmatpush.msra.mxu0 %v1422_v45  ;;  %v1518_v28 = vld [vmem:[#allocation6 + $0x418] sm:$0xff] }
 0x3c9   :  { %3408 = vmatpush.msra.mxu1 %v1486_v47  ;;  %3428 = vmatpush.msra.mxu2 %v1550_v50  ;;  %v1582_v13 = vld [vmem:[#allocation6 + $0x618] sm:$0xff] }
 0x3ca   :  { %3448 = vmatpush.msra.mxu3 %v1614_v51  ;;  %3389 = vmatpush.msra.mxu0 %v1418_v52  ;;  %v1706_v29 = vld [vmem:[#allocation6 + $0x9f8] sm:$0xff] }
 0x3cb   :  { %3409 = vmatpush.msra.mxu1 %v1482_v53  ;;  %3429 = vmatpush.msra.mxu2 %v1546_v55  ;;  %v1770_v30 = vld [vmem:[#allocation6 + $0xbf8] sm:$0xff] }
 0x3cc   :  { %3449 = vmatpush.msra.mxu3 %v1610_v57  ;;  %3390 = vmatpush.msra.mxu0 %v1414_v58  ;;  %v1834_v31 = vld [vmem:[#allocation6 + $0xdf8] sm:$0xff] }
 0x3cd   :  { %3410 = vmatpush.msra.mxu1 %v1478_v59  ;;  %3430 = vmatpush.msra.mxu2 %v1542_v61  ;;  %v1898_v32 = vld [vmem:[#allocation6 + $0xff8] sm:$0xff] }
 0x3ce   :  { %3450 = vmatpush.msra.mxu3 %v1606_v62  ;;  %3391 = vmatpush.msra.mxu0 %v1410_v63  ;;  %v1702_v40 = vld [vmem:[#allocation6 + $0x9d8] sm:$0xff] }
 0x3cf   :  { %3411 = vmatpush.msra.mxu1 %v1474_v0  ;;  %3431 = vmatpush.msra.mxu2 %v1538_v2  ;;  %v1766_v33 = vld [vmem:[#allocation6 + $0xbd8] sm:$0xff]  ;;  %v4387_v2 = vpop.f32.mrf.mxu0 }
 0x3d0   :  { %3451 = vmatpush.msra.mxu3 %v1602_v3  ;;  %3392 = vmatpush.msra.mxu0 %v1406_v4  ;;  %v1830_v42 = vld [vmem:[#allocation6 + $0xdd8] sm:$0xff] }
 0x3d1   :  { %3412 = vmatpush.msra.mxu1 %v1470_v5  ;;  %3432 = vmatpush.msra.mxu2 %v1534_v9  ;;  %v1894_v34 = vld [vmem:[#allocation6 + $0xfd8] sm:$0xff] }
 0x3d2   :  { %3452 = vmatpush.msra.mxu3 %v1598_v10  ;;  %3393 = vmatpush.msra.mxu0 %v1402_v14  ;;  %v1698_v37 = vld [vmem:[#allocation6 + $0x9b8] sm:$0xff] }
 0x3d3   :  { %3413 = vmatpush.msra.mxu1 %v1466_v16  ;;  %3433 = vmatpush.msra.mxu2 %v1530_v17  ;;  %v1762_v38 = vld [vmem:[#allocation6 + $0xbb8] sm:$0xff] }
 0x3d4   :  { %3453 = vmatpush.msra.mxu3 %v1594_v18  ;;  %3394 = vmatpush.msra.mxu0 %v1398_v60  ;;  %v1694_v43 = vld [vmem:[#allocation6 + $0x998] sm:$0xff] }
 0x3d5   :  { %3414 = vmatpush.msra.mxu1 %v1462_v19  ;;  %3434 = vmatpush.msra.mxu2 %v1526_v20  ;;  %v1886_v44 = vld [vmem:[#allocation6 + $0xf98] sm:$0xff] }
 0x3d6   :  { %3454 = vmatpush.msra.mxu3 %v1590_v21  ;;  %3395 = vmatpush.msra.mxu0 %v1394_v22  ;;  %v1690_v45 = vld [vmem:[#allocation6 + $0x978] sm:$0xff]  ;;  %v4389_v21 = vpop.f32.mrf.mxu1  ;;  %v4391_v22 = vpop.f32.mrf.mxu2 }
 0x3d7   :  { %3415 = vmatpush.msra.mxu1 %v1458_v23  ;;  %3435 = vmatpush.msra.mxu2 %v1522_v8  ;;  %v1754_v47 = vld [vmem:[#allocation6 + $0xb78] sm:$0xff] }
 0x3d8   :  { %3455 = vmatpush.msra.mxu3 %v1586_v24  ;;  %3396 = vmatpush.msra.mxu0 %v1390_v26  ;;  %v1818_v50 = vld [vmem:[#allocation6 + $0xd78] sm:$0xff] }
 0x3d9   :  { %3416 = vmatpush.msra.mxu1 %v1454_v27  ;;  %3436 = vmatpush.msra.mxu2 %v1518_v28  ;;  %v1882_v51 = vld [vmem:[#allocation6 + $0xf78] sm:$0xff]  ;;  %v4393_v27 = vpop.f32.mrf.mxu0 }
 0x3da   :  { %3456 = vmatpush.msra.mxu3 %v1582_v13  ;;  %3397 = vmatmul.f32.vlgmr.msra.gmra.mxu0 %v4279_v35  ;;  %v1826_v35 = vld [vmem:[#allocation6 + $0xdb8] sm:$0xff] }
 0x3db   :  { %3417 = vmatmul.f32.vlgmr.msra.gmra.mxu1 %v4282_v36  ;;  %3437 = vmatmul.f32.vlgmr.msra.gmra.mxu2 %v4286_v39  ;;  %v1890_v36 = vld [vmem:[#allocation6 + $0xfb8] sm:$0xff] }
 0x3dc   :  { %3457 = vmatmul.f32.vlgmr.msra.gmra.mxu3 %v4288_v41  ;;  %3461 = vmatpush.msrb.mxu0 %v1706_v29  ;;  %v1758_v39 = vld [vmem:[#allocation6 + $0xb98] sm:$0xff] }
 0x3dd   :  { %3481 = vmatpush.msrb.mxu1 %v1770_v30  ;;  %3501 = vmatpush.msrb.mxu2 %v1834_v31  ;;  %v1822_v41 = vld [vmem:[#allocation6 + $0xd98] sm:$0xff] }
 0x3de   :  { %3521 = vmatpush.msrb.mxu3 %v1898_v32  ;;  %3462 = vmatpush.msrb.mxu0 %v1702_v40  ;;  %v1686_v52 = vld [vmem:[#allocation6 + $0x958] sm:$0xff] }
 0x3df   :  { %3482 = vmatpush.msrb.mxu1 %v1766_v33  ;;  %3502 = vmatpush.msrb.mxu2 %v1830_v42  ;;  %v1750_v53 = vld [vmem:[#allocation6 + $0xb58] sm:$0xff]  ;;  %v4395_v42 = vpop.f32.mrf.mxu3 }
 0x3e0   :  { %3522 = vmatpush.msrb.mxu3 %v1894_v34  ;;  %3463 = vmatpush.msrb.mxu0 %v1698_v37  ;;  %v1814_v55 = vld [vmem:[#allocation6 + $0xd58] sm:$0xff] }
 0x3e1   :  { %3483 = vmatpush.msrb.mxu1 %v1762_v38  ;;  %3503 = vmatpush.msrb.mxu2 %v1826_v35  ;;  %v1878_v57 = vld [vmem:[#allocation6 + $0xf58] sm:$0xff] }
 0x3e2   :  { %3523 = vmatpush.msrb.mxu3 %v1890_v36  ;;  %3464 = vmatpush.msrb.mxu0 %v1694_v43  ;;  %v1682_v58 = vld [vmem:[#allocation6 + $0x938] sm:$0xff]  ;;  %v4397_v36 = vpop.f32.mrf.mxu1  ;;  %v4399_v43 = vpop.f32.mrf.mxu2 }
 0x3e3   :  { %3484 = vmatpush.msrb.mxu1 %v1758_v39  ;;  %3504 = vmatpush.msrb.mxu2 %v1822_v41  ;;  %v1746_v59 = vld [vmem:[#allocation6 + $0xb38] sm:$0xff] }
 0x3e4   :  { %3524 = vmatpush.msrb.mxu3 %v1886_v44  ;;  %3465 = vmatpush.msrb.mxu0 %v1690_v45  ;;  %v1810_v61 = vld [vmem:[#allocation6 + $0xd38] sm:$0xff] }
 0x3e5   :  { %3485 = vmatpush.msrb.mxu1 %v1754_v47  ;;  %3505 = vmatpush.msrb.mxu2 %v1818_v50  ;;  %v1874_v62 = vld [vmem:[#allocation6 + $0xf38] sm:$0xff]  ;;  %v4401_v47 = vpop.f32.mrf.mxu0 }
 0x3e6   :  { %3525 = vmatpush.msrb.mxu3 %v1882_v51  ;;  %3466 = vmatpush.msrb.mxu0 %v1686_v52  ;;  %v1678_v63 = vld [vmem:[#allocation6 + $0x918] sm:$0xff] }
 0x3e7   :  { %3486 = vmatpush.msrb.mxu1 %v1750_v53  ;;  %3506 = vmatpush.msrb.mxu2 %v1814_v55  ;;  %v1742_v0 = vld [vmem:[#allocation6 + $0xb18] sm:$0xff]  ;;  %v4403_v55 = vpop.f32.mrf.mxu3 }
 0x3e8   :  { %3526 = vmatpush.msrb.mxu3 %v1878_v57  ;;  %3467 = vmatpush.msrb.mxu0 %v1682_v58  ;;  %v1806_v3 = vld [vmem:[#allocation6 + $0xd18] sm:$0xff] }
 0x3e9   :  { %3487 = vmatpush.msrb.mxu1 %v1746_v59  ;;  %v1870_v4 = vld [vmem:[#allocation6 + $0xf18] sm:$0xff]  ;;  %3507 = vmatpush.msrb.mxu2 %v1810_v61 }
 0x3ea   :  { %3527 = vmatpush.msrb.mxu3 %v1874_v62  ;;  %v1674_v5 = vld [vmem:[#allocation6 + $0x8f8] sm:$0xff]  ;;  %3468 = vmatpush.msrb.mxu0 %v1678_v63  ;;  %v4409_v62 = vpop.f32.mrf.mxu1  ;;  %v4411_v63 = vpop.f32.mrf.mxu2 }
 0x3eb   :  { %v1738_v9 = vld [vmem:[#allocation6 + $0xaf8] sm:$0xff]  ;;  %3488 = vmatpush.msrb.mxu1 %v1742_v0  ;;  %3508 = vmatpush.msrb.mxu2 %v1806_v3 }
 0x3ec   :  { %v1802_v10 = vld [vmem:[#allocation6 + $0xcf8] sm:$0xff]  ;;  %3528 = vmatpush.msrb.mxu3 %v1870_v4  ;;  %3469 = vmatpush.msrb.mxu0 %v1674_v5 }
 0x3ed   :  { %v1866_v14 = vld [vmem:[#allocation6 + $0xef8] sm:$0xff]  ;;  %3489 = vmatpush.msrb.mxu1 %v1738_v9  ;;  %3509 = vmatpush.msrb.mxu2 %v1802_v10  ;;  %v4413_v4 = vpop.f32.mrf.mxu0 }
 0x3ee   :  { %v1670_v16 = vld [vmem:[#allocation6 + $0x8d8] sm:$0xff]  ;;  %3529 = vmatpush.msrb.mxu3 %v1866_v14 }
 0x3ef   :  { %v1734_v17 = vld [vmem:[#allocation6 + $0xad8] sm:$0xff]  ;;  %3470 = vmatpush.msrb.mxu0 %v1670_v16 }
 0x3f0   :  { %v1798_v18 = vld [vmem:[#allocation6 + $0xcd8] sm:$0xff]  ;;  %3490 = vmatpush.msrb.mxu1 %v1734_v17 }
 0x3f1   :  { %v1862_v60 = vld [vmem:[#allocation6 + $0xed8] sm:$0xff]  ;;  %3510 = vmatpush.msrb.mxu2 %v1798_v18  ;;  %v4415_v18 = vpop.f32.mrf.mxu3 }
 0x3f2   :  { %v1666_v19 = vld [vmem:[#allocation6 + $0x8b8] sm:$0xff]  ;;  %3530 = vmatpush.msrb.mxu3 %v1862_v60 }
 0x3f3   :  { %v1730_v20 = vld [vmem:[#allocation6 + $0xab8] sm:$0xff]  ;;  %3471 = vmatpush.msrb.mxu0 %v1666_v19 }
 0x3f4   :  { %v1794_v23 = vld [vmem:[#allocation6 + $0xcb8] sm:$0xff]  ;;  %3491 = vmatpush.msrb.mxu1 %v1730_v20 }
 0x3f5   :  { %v1858_v8 = vld [vmem:[#allocation6 + $0xeb8] sm:$0xff]  ;;  %3511 = vmatpush.msrb.mxu2 %v1794_v23 }
 0x3f6   :  { %v1662_v24 = vld [vmem:[#allocation6 + $0x898] sm:$0xff]  ;;  %3531 = vmatpush.msrb.mxu3 %v1858_v8  ;;  %v4417_v8 = vpop.f32.mrf.mxu1 }
 0x3f7   :  { %v1726_v26 = vld [vmem:[#allocation6 + $0xa98] sm:$0xff]  ;;  %3472 = vmatpush.msrb.mxu0 %v1662_v24  ;;  %v4419_v24 = vpop.f32.mrf.mxu2 }
 0x3f8   :  { %v1790_v28 = vld [vmem:[#allocation6 + $0xc98] sm:$0xff]  ;;  %3492 = vmatpush.msrb.mxu1 %v1726_v26 }
 0x3f9   :  { %v1854_v13 = vld [vmem:[#allocation6 + $0xe98] sm:$0xff]  ;;  %3512 = vmatpush.msrb.mxu2 %v1790_v28 }
 0x3fa   :  { %v1658_v29 = vld [vmem:[#allocation6 + $0x878] sm:$0xff]  ;;  %3532 = vmatpush.msrb.mxu3 %v1854_v13 }
 0x3fb   :  { %v1722_v30 = vld [vmem:[#allocation6 + $0xa78] sm:$0xff]  ;;  %3473 = vmatpush.msrb.mxu0 %v1658_v29 }
 0x3fc   :  { %v1786_v31 = vld [vmem:[#allocation6 + $0xc78] sm:$0xff]  ;;  %3493 = vmatpush.msrb.mxu1 %v1722_v30  ;;  %v4421_v30 = vpop.f32.mrf.mxu0 }
 0x3fd   :  { %v1850_v32 = vld [vmem:[#allocation6 + $0xe78] sm:$0xff]  ;;  %3513 = vmatpush.msrb.mxu2 %v1786_v31 }
 0x3fe   :  { %v1654_v40 = vld [vmem:[#allocation6 + $0x858] sm:$0xff]  ;;  %3533 = vmatpush.msrb.mxu3 %v1850_v32 }
 0x3ff   :  { %v1718_v33 = vld [vmem:[#allocation6 + $0xa58] sm:$0xff]  ;;  %3474 = vmatpush.msrb.mxu0 %v1654_v40 }
 0x400   :  { %v1782_v34 = vld [vmem:[#allocation6 + $0xc58] sm:$0xff]  ;;  %3494 = vmatpush.msrb.mxu1 %v1718_v33 }
 0x401   :  { %v1846_v37 = vld [vmem:[#allocation6 + $0xe58] sm:$0xff]  ;;  %3514 = vmatpush.msrb.mxu2 %v1782_v34 }
 0x402   :  { %v1650_v38 = vld [vmem:[#allocation6 + $0x838] sm:$0xff]  ;;  %3534 = vmatpush.msrb.mxu3 %v1846_v37 }
 0x403   :  { %v1714_v35 = vld [vmem:[#allocation6 + $0xa38] sm:$0xff]  ;;  %3475 = vmatpush.msrb.mxu0 %v1650_v38 }
 0x404   :  { %v1778_v39 = vld [vmem:[#allocation6 + $0xc38] sm:$0xff]  ;;  %3495 = vmatpush.msrb.mxu1 %v1714_v35 }
 0x405   :  { %v1842_v41 = vld [vmem:[#allocation6 + $0xe38] sm:$0xff]  ;;  %3515 = vmatpush.msrb.mxu2 %v1778_v39  ;;  %v4423_v39 = vpop.f32.mrf.mxu3 }
 0x406   :  { %v1646_v44 = vld [vmem:[#allocation6 + $0x818] sm:$0xff]  ;;  %3535 = vmatpush.msrb.mxu3 %v1842_v41 }
 0x407   :  { %v1710_v45 = vld [vmem:[#allocation6 + $0xa18] sm:$0xff]  ;;  %3476 = vmatpush.msrb.mxu0 %v1646_v44 }
 0x408   :  { %v1774_v50 = vld [vmem:[#allocation6 + $0xc18] sm:$0xff]  ;;  %3496 = vmatpush.msrb.mxu1 %v1710_v45  ;;  %3477 = vmatmul.f32.vlgmr.msrb.gmra.mxu0 %v4297_v6 }
 0x409   :  { %v1838_v51 = vld [vmem:[#allocation6 + $0xe18] sm:$0xff]  ;;  %3516 = vmatpush.msrb.mxu2 %v1774_v50  ;;  %3497 = vmatmul.f32.vlgmr.msrb.gmra.mxu1 %v4300_v7 }
 0x40a   :  { %3536 = vmatpush.msrb.mxu3 %v1838_v51  ;;  %v1962_v52 = vld [vmem:[#allocation6 + $0x11f8] sm:$0xff]  ;;  %3517 = vmatmul.f32.vlgmr.msrb.gmra.mxu2 %v4304_v11  ;;  %v4425_v51 = vpop.f32.mrf.mxu1 }
 0x40b   :  { %v2026_v53 = vld [vmem:[#allocation6 + $0x13f8] sm:$0xff]  ;;  %3537 = vmatmul.f32.vlgmr.msrb.gmra.mxu3 %v4306_v12  ;;  %3541 = vmatpush.msra.mxu0 %v1962_v52  ;;  %v4427_v52 = vpop.f32.mrf.mxu2 }
 0x40c   :  { %v2090_v57 = vld [vmem:[#allocation6 + $0x15f8] sm:$0xff]  ;;  %3561 = vmatpush.msra.mxu1 %v2026_v53 }
 0x40d   :  { %v2154_v58 = vld [vmem:[#allocation6 + $0x17f8] sm:$0xff]  ;;  %3581 = vmatpush.msra.mxu2 %v2090_v57 }
 0x40e   :  { %v1958_v59 = vld [vmem:[#allocation6 + $0x11d8] sm:$0xff]  ;;  %3601 = vmatpush.msra.mxu3 %v2154_v58 }
 0x40f   :  { %v2022_v61 = vld [vmem:[#allocation6 + $0x13d8] sm:$0xff]  ;;  %3542 = vmatpush.msra.mxu0 %v1958_v59 }
 0x410   :  { %v2086_v0 = vld [vmem:[#allocation6 + $0x15d8] sm:$0xff]  ;;  %3562 = vmatpush.msra.mxu1 %v2022_v61  ;;  %v4429_v61 = vpop.f32.mrf.mxu0 }
 0x411   :  { %v2150_v3 = vld [vmem:[#allocation6 + $0x17d8] sm:$0xff]  ;;  %3582 = vmatpush.msra.mxu2 %v2086_v0 }
 0x412   :  { %v1954_v6 = vld [vmem:[#allocation6 + $0x11b8] sm:$0xff]  ;;  %3602 = vmatpush.msra.mxu3 %v2150_v3 }
 0x413   :  { %v2018_v7 = vld [vmem:[#allocation6 + $0x13b8] sm:$0xff]  ;;  %3543 = vmatpush.msra.mxu0 %v1954_v6 }
 0x414   :  { %v2082_v11 = vld [vmem:[#allocation6 + $0x15b8] sm:$0xff]  ;;  %3563 = vmatpush.msra.mxu1 %v2018_v7 }
 0x415   :  { %v2146_v12 = vld [vmem:[#allocation6 + $0x17b8] sm:$0xff]  ;;  %3583 = vmatpush.msra.mxu2 %v2082_v11 }
 0x416   :  { %v1950_v5 = vld [vmem:[#allocation6 + $0x1198] sm:$0xff]  ;;  %3603 = vmatpush.msra.mxu3 %v2146_v12 }
 0x417   :  { %v2014_v9 = vld [vmem:[#allocation6 + $0x1398] sm:$0xff]  ;;  %3544 = vmatpush.msra.mxu0 %v1950_v5 }
 0x418   :  { %v2078_v10 = vld [vmem:[#allocation6 + $0x1598] sm:$0xff]  ;;  %3564 = vmatpush.msra.mxu1 %v2014_v9 }
 0x419   :  { %v2142_v14 = vld [vmem:[#allocation6 + $0x1798] sm:$0xff]  ;;  %3584 = vmatpush.msra.mxu2 %v2078_v10  ;;  %v4431_v10 = vpop.f32.mrf.mxu3 }
 0x41a   :  { %v1946_v16 = vld [vmem:[#allocation6 + $0x1178] sm:$0xff]  ;;  %3604 = vmatpush.msra.mxu3 %v2142_v14 }
 0x41b   :  { %v2010_v17 = vld [vmem:[#allocation6 + $0x1378] sm:$0xff]  ;;  %3545 = vmatpush.msra.mxu0 %v1946_v16 }
 0x41c   :  { %v2074_v60 = vld [vmem:[#allocation6 + $0x1578] sm:$0xff]  ;;  %3565 = vmatpush.msra.mxu1 %v2010_v17 }
 0x41d   :  { %v2138_v19 = vld [vmem:[#allocation6 + $0x1778] sm:$0xff]  ;;  %3585 = vmatpush.msra.mxu2 %v2074_v60 }
 0x41e   :  { %v1942_v20 = vld [vmem:[#allocation6 + $0x1158] sm:$0xff]  ;;  %3605 = vmatpush.msra.mxu3 %v2138_v19  ;;  %v4433_v19 = vpop.f32.mrf.mxu1 }
 0x41f   :  { %v2006_v23 = vld [vmem:[#allocation6 + $0x1358] sm:$0xff]  ;;  %3546 = vmatpush.msra.mxu0 %v1942_v20  ;;  %v4435_v20 = vpop.f32.mrf.mxu2 }
 0x420   :  { %v2070_v26 = vld [vmem:[#allocation6 + $0x1558] sm:$0xff]  ;;  %3566 = vmatpush.msra.mxu1 %v2006_v23 }
 0x421   :  { %v2134_v28 = vld [vmem:[#allocation6 + $0x1758] sm:$0xff]  ;;  %3586 = vmatpush.msra.mxu2 %v2070_v26 }
 0x422   :  { %v1938_v13 = vld [vmem:[#allocation6 + $0x1138] sm:$0xff]  ;;  %3606 = vmatpush.msra.mxu3 %v2134_v28 }
 0x423   :  { %v2002_v29 = vld [vmem:[#allocation6 + $0x1338] sm:$0xff]  ;;  %3547 = vmatpush.msra.mxu0 %v1938_v13 }
 0x424   :  { %v2066_v31 = vld [vmem:[#allocation6 + $0x1538] sm:$0xff]  ;;  %3567 = vmatpush.msra.mxu1 %v2002_v29  ;;  %v4437_v29 = vpop.f32.mrf.mxu0 }
 0x425   :  { %v2130_v32 = vld [vmem:[#allocation6 + $0x1738] sm:$0xff]  ;;  %3587 = vmatpush.msra.mxu2 %v2066_v31 }
 0x426   :  { %v1934_v40 = vld [vmem:[#allocation6 + $0x1118] sm:$0xff]  ;;  %3607 = vmatpush.msra.mxu3 %v2130_v32 }
 0x427   :  { %v1998_v33 = vld [vmem:[#allocation6 + $0x1318] sm:$0xff]  ;;  %3548 = vmatpush.msra.mxu0 %v1934_v40 }
 0x428   :  { %v2062_v34 = vld [vmem:[#allocation6 + $0x1518] sm:$0xff]  ;;  %3568 = vmatpush.msra.mxu1 %v1998_v33 }
 0x429   :  { %v2126_v37 = vld [vmem:[#allocation6 + $0x1718] sm:$0xff]  ;;  %3588 = vmatpush.msra.mxu2 %v2062_v34 }
 0x42a   :  { %v1930_v38 = vld [vmem:[#allocation6 + $0x10f8] sm:$0xff]  ;;  %3608 = vmatpush.msra.mxu3 %v2126_v37 }
 0x42b   :  { %v1994_v35 = vld [vmem:[#allocation6 + $0x12f8] sm:$0xff]  ;;  %3549 = vmatpush.msra.mxu0 %v1930_v38  ;;  %v4439_v38 = vpop.f32.mrf.mxu3 }
 0x42c   :  { %v2058_v41 = vld [vmem:[#allocation6 + $0x14f8] sm:$0xff]  ;;  %3569 = vmatpush.msra.mxu1 %v1994_v35 }
 0x42d   :  { %v2122_v44 = vld [vmem:[#allocation6 + $0x16f8] sm:$0xff]  ;;  %3589 = vmatpush.msra.mxu2 %v2058_v41 }
 0x42e   :  { %v1926_v45 = vld [vmem:[#allocation6 + $0x10d8] sm:$0xff]  ;;  %3609 = vmatpush.msra.mxu3 %v2122_v44  ;;  %v4441_v44 = vpop.f32.mrf.mxu1 }
 0x42f   :  { %v1990_v50 = vld [vmem:[#allocation6 + $0x12d8] sm:$0xff]  ;;  %3550 = vmatpush.msra.mxu0 %v1926_v45  ;;  %v4443_v45 = vpop.f32.mrf.mxu2 }
 0x430   :  { %v2054_v53 = vld [vmem:[#allocation6 + $0x14d8] sm:$0xff]  ;;  %3570 = vmatpush.msra.mxu1 %v1990_v50 }
 0x431   :  { %v2118_v57 = vld [vmem:[#allocation6 + $0x16d8] sm:$0xff]  ;;  %3590 = vmatpush.msra.mxu2 %v2054_v53 }
 0x432   :  { %v1922_v58 = vld [vmem:[#allocation6 + $0x10b8] sm:$0xff]  ;;  %3610 = vmatpush.msra.mxu3 %v2118_v57 }
 0x433   :  { %v1986_v59 = vld [vmem:[#allocation6 + $0x12b8] sm:$0xff]  ;;  %3551 = vmatpush.msra.mxu0 %v1922_v58 }
 0x434   :  { %v2050_v0 = vld [vmem:[#allocation6 + $0x14b8] sm:$0xff]  ;;  %3571 = vmatpush.msra.mxu1 %v1986_v59  ;;  %v4449_v59 = vpop.f32.mrf.mxu0 }
 0x435   :  { %v2114_v3 = vld [vmem:[#allocation6 + $0x16b8] sm:$0xff]  ;;  %3591 = vmatpush.msra.mxu2 %v2050_v0 }
 0x436   :  { %v1918_v6 = vld [vmem:[#allocation6 + $0x1098] sm:$0xff]  ;;  %3611 = vmatpush.msra.mxu3 %v2114_v3 }
 0x437   :  { %v1982_v7 = vld [vmem:[#allocation6 + $0x1298] sm:$0xff]  ;;  %3552 = vmatpush.msra.mxu0 %v1918_v6 }
 0x438   :  { %v2046_v11 = vld [vmem:[#allocation6 + $0x1498] sm:$0xff]  ;;  %3572 = vmatpush.msra.mxu1 %v1982_v7 }
 0x439   :  { %v2110_v12 = vld [vmem:[#allocation6 + $0x1698] sm:$0xff]  ;;  %3592 = vmatpush.msra.mxu2 %v2046_v11  ;;  %v4451_v11 = vpop.f32.mrf.mxu3 }
 0x43a   :  { %v1914_v5 = vld [vmem:[#allocation6 + $0x1078] sm:$0xff]  ;;  %3612 = vmatpush.msra.mxu3 %v2110_v12 }
 0x43b   :  { %v1978_v9 = vld [vmem:[#allocation6 + $0x1278] sm:$0xff]  ;;  %3553 = vmatpush.msra.mxu0 %v1914_v5 }
 0x43c   :  { %v2042_v14 = vld [vmem:[#allocation6 + $0x1478] sm:$0xff]  ;;  %3573 = vmatpush.msra.mxu1 %v1978_v9  ;;  %v4453_v9 = vld [vmem:[#allocation7] sm:$0xf] }
 0x43d   :  { %v2106_v16 = vld [vmem:[#allocation6 + $0x1678] sm:$0xff]  ;;  %3593 = vmatpush.msra.mxu2 %v2042_v14 }
 0x43e   :  { %v1910_v17 = vld [vmem:[#allocation6 + $0x1058] sm:$0xff]  ;;  %3613 = vmatpush.msra.mxu3 %v2106_v16 }
 0x43f   :  { %v1974_v60 = vld [vmem:[#allocation6 + $0x1258] sm:$0xff]  ;;  %3554 = vmatpush.msra.mxu0 %v1910_v17  ;;  %v4455_v17 = vpop.f32.mrf.mxu1 }
 0x440   :  { %v2038_v23 = vld [vmem:[#allocation6 + $0x1458] sm:$0xff]  ;;  %3574 = vmatpush.msra.mxu1 %v1974_v60  ;;  %v4457_v60 = vpop.f32.mrf.mxu2 }
 0x441   :  { %v2102_v26 = vld [vmem:[#allocation6 + $0x1658] sm:$0xff]  ;;  %3594 = vmatpush.msra.mxu2 %v2038_v23 }
 0x442   :  { %v1906_v28 = vld [vmem:[#allocation6 + $0x1038] sm:$0xff]  ;;  %3614 = vmatpush.msra.mxu3 %v2102_v26 }
 0x443   :  { %v1970_v13 = vld [vmem:[#allocation6 + $0x1238] sm:$0xff]  ;;  %3555 = vmatpush.msra.mxu0 %v1906_v28  ;;  %v2414_v28 = vperm.slane %v4453_v9, 1 }
 0x444   :  { %v2034_v31 = vld [vmem:[#allocation6 + $0x1438] sm:$0xff]  ;;  %3575 = vmatpush.msra.mxu1 %v1970_v13  ;;  %v2415_v13 = vperm.slane %v4453_v9, 2 }
 0x445   :  { %v2098_v32 = vld [vmem:[#allocation6 + $0x1638] sm:$0xff]  ;;  %3595 = vmatpush.msra.mxu2 %v2034_v31 }
 0x446   :  { %v1902_v40 = vld [vmem:[#allocation6 + $0x1018] sm:$0xff]  ;;  %3615 = vmatpush.msra.mxu3 %v2098_v32 }
 0x447   :  { %v1966_v33 = vld [vmem:[#allocation6 + $0x1218] sm:$0xff]  ;;  %3556 = vmatpush.msra.mxu0 %v1902_v40  ;;  %v2413_v40 = vperm.slane %v4453_v9, 0 }
 0x448   :  { %v2030_v34 = vld [vmem:[#allocation6 + $0x1418] sm:$0xff]  ;;  %3576 = vmatpush.msra.mxu1 %v1966_v33  ;;  %3557 = vmatmul.f32.vlgmr.msra.gmra.mxu0 %v4320_v48  ;;  %v3078_v33 = vpop.f32.mrf.mxu0 }
 0x449   :  { %v2094_v37 = vld [vmem:[#allocation6 + $0x1618] sm:$0xff]  ;;  %3596 = vmatpush.msra.mxu2 %v2030_v34  ;;  %3577 = vmatmul.f32.vlgmr.msra.gmra.mxu1 %v4323_v49 }
 0x44a   :  { %3616 = vmatpush.msra.mxu3 %v2094_v37  ;;  %v2218_v35 = vld [vmem:[#allocation6 + $0x19f8] sm:$0xff]  ;;  %3597 = vmatmul.f32.vlgmr.msra.gmra.mxu2 %v4317_v46 }
 0x44b   :  { %v2282_v41 = vld [vmem:[#allocation6 + $0x1bf8] sm:$0xff]  ;;  %3617 = vmatmul.f32.vlgmr.msra.gmra.mxu3 %v4329_v54  ;;  %3621 = vmatpush.msrb.mxu0 %v2218_v35 }
 0x44c   :  { %v2346_v50 = vld [vmem:[#allocation6 + $0x1df8] sm:$0xff]  ;;  %3641 = vmatpush.msrb.mxu1 %v2282_v41 }
 0x44d   :  { %v2410_v53 = vld [vmem:[#allocation6 + $0x1ff8] sm:$0xff]  ;;  %3661 = vmatpush.msrb.mxu2 %v2346_v50 }
 0x44e   :  { %v2214_v57 = vld [vmem:[#allocation6 + $0x19d8] sm:$0xff]  ;;  %3681 = vmatpush.msrb.mxu3 %v2410_v53 }
 0x44f   :  { %v2278_v58 = vld [vmem:[#allocation6 + $0x1bd8] sm:$0xff]  ;;  %3622 = vmatpush.msrb.mxu0 %v2214_v57  ;;  %v2759_v57 = vadd.f32 %v4421_v30, %v2414_v28 }
 0x450   :  { %v2342_v0 = vld [vmem:[#allocation6 + $0x1dd8] sm:$0xff]  ;;  %3642 = vmatpush.msrb.mxu1 %v2278_v58  ;;  %v3079_v58 = vadd.f32 %v3078_v33, %v2415_v13 }
 0x451   :  { %v2406_v3 = vld [vmem:[#allocation6 + $0x1fd8] sm:$0xff]  ;;  %3662 = vmatpush.msrb.mxu2 %v2342_v0 }
 0x452   :  { %v2210_v6 = vld [vmem:[#allocation6 + $0x19b8] sm:$0xff]  ;;  %3682 = vmatpush.msrb.mxu3 %v2406_v3 }
 0x453   :  { %v2274_v48 = vld [vmem:[#allocation6 + $0x1bb8] sm:$0xff]  ;;  %3623 = vmatpush.msrb.mxu0 %v2210_v6  ;;  %v2439_v6 = vadd.f32 %v4387_v2, %v2413_v40 }
 0x454   :  { %v2338_v49 = vld [vmem:[#allocation6 + $0x1db8] sm:$0xff]  ;;  %3643 = vmatpush.msrb.mxu1 %v2274_v48  ;;  %v4464_v48 = vpop.f32.mrf.mxu3 }
 0x455   :  { %v2402_v7 = vld [vmem:[#allocation6 + $0x1fb8] sm:$0xff]  ;;  %3663 = vmatpush.msrb.mxu2 %v2338_v49  ;;  %v2459_v28 = vadd.f32 %v4389_v21, %v2439_v6 }
 0x456   :  { %v2206_v46 = vld [vmem:[#allocation6 + $0x1998] sm:$0xff]  ;;  %3683 = vmatpush.msrb.mxu3 %v2402_v7 }
 0x457   :  { %v2270_v54 = vld [vmem:[#allocation6 + $0x1b98] sm:$0xff]  ;;  %3624 = vmatpush.msrb.mxu0 %v2206_v46 }
 0x458   :  { %v2334_v12 = vld [vmem:[#allocation6 + $0x1d98] sm:$0xff]  ;;  %3644 = vmatpush.msrb.mxu1 %v2270_v54 }
 0x459   :  { %v2398_v5 = vld [vmem:[#allocation6 + $0x1f98] sm:$0xff]  ;;  %3664 = vmatpush.msrb.mxu2 %v2334_v12  ;;  %v3098_v12 = vpop.f32.mrf.mxu1 }
 0x45a   :  { %v2202_v14 = vld [vmem:[#allocation6 + $0x1978] sm:$0xff]  ;;  %3684 = vmatpush.msrb.mxu3 %v2398_v5  ;;  %v3118_v5 = vpop.f32.mrf.mxu2 }
 0x45b   :  { %v2266_v16 = vld [vmem:[#allocation6 + $0x1b78] sm:$0xff]  ;;  %3625 = vmatpush.msrb.mxu0 %v2202_v14 }
 0x45c   :  { %v2330_v23 = vld [vmem:[#allocation6 + $0x1d78] sm:$0xff]  ;;  %3645 = vmatpush.msrb.mxu1 %v2266_v16  ;;  %v2779_v16 = vadd.f32 %v4425_v51, %v2759_v57  ;;  %v2479_v51 = vadd.f32 %v4391_v22, %v2459_v28 }
 0x45d   :  { %v2394_v26 = vld [vmem:[#allocation6 + $0x1f78] sm:$0xff]  ;;  %3665 = vmatpush.msrb.mxu2 %v2330_v23  ;;  %v3099_v23 = vadd.f32 %v3098_v12, %v3079_v58 }
 0x45e   :  { %v2198_v31 = vld [vmem:[#allocation6 + $0x1958] sm:$0xff]  ;;  %3685 = vmatpush.msrb.mxu3 %v2394_v26  ;;  %v2499_v6 = vadd.f32 %v4395_v42, %v2479_v51 }
 0x45f   :  { %v2262_v32 = vld [vmem:[#allocation6 + $0x1b58] sm:$0xff]  ;;  %3626 = vmatpush.msrb.mxu0 %v2198_v31  ;;  %v3119_v40 = vadd.f32 %v3118_v5, %v3099_v23 }
 0x460   :  { %v2326_v34 = vld [vmem:[#allocation6 + $0x1d58] sm:$0xff]  ;;  %3646 = vmatpush.msrb.mxu1 %v2262_v32  ;;  %v2799_v32 = vadd.f32 %v4427_v52, %v2779_v16 }
 0x461   :  { %v2390_v37 = vld [vmem:[#allocation6 + $0x1f58] sm:$0xff]  ;;  %3666 = vmatpush.msrb.mxu2 %v2326_v34  ;;  %v3178_v23 = vpop.f32.mrf.mxu1 }
 0x462   :  { %v2194_v35 = vld [vmem:[#allocation6 + $0x1938] sm:$0xff]  ;;  %3686 = vmatpush.msrb.mxu3 %v2390_v37  ;;  %v2819_v58 = vadd.f32 %v4431_v10, %v2799_v32  ;;  %v2519_v10 = vadd.f32 %v4393_v27, %v2499_v6 }
 0x463   :  { %v2258_v41 = vld [vmem:[#allocation6 + $0x1b38] sm:$0xff]  ;;  %3627 = vmatpush.msrb.mxu0 %v2194_v35 }
 0x464   :  { %v2322_v50 = vld [vmem:[#allocation6 + $0x1d38] sm:$0xff]  ;;  %3647 = vmatpush.msrb.mxu1 %v2258_v41  ;;  %v2539_v32 = vadd.f32 %v4397_v36, %v2519_v10 }
 0x465   :  { %v2386_v53 = vld [vmem:[#allocation6 + $0x1f38] sm:$0xff]  ;;  %3667 = vmatpush.msrb.mxu2 %v2322_v50  ;;  %v3138_v50 = vpop.f32.mrf.mxu3 }
 0x466   :  { %v2190_v0 = vld [vmem:[#allocation6 + $0x1918] sm:$0xff]  ;;  %3687 = vmatpush.msrb.mxu3 %v2386_v53  ;;  %v3158_v53 = vpop.f32.mrf.mxu0 }
 0x467   :  { %v2254_v3 = vld [vmem:[#allocation6 + $0x1b18] sm:$0xff]  ;;  %3628 = vmatpush.msrb.mxu0 %v2190_v0  ;;  %v3139_v0 = vadd.f32 %v3138_v50, %v3119_v40 }
 0x468   :  { %v2318_v49 = vld [vmem:[#allocation6 + $0x1d18] sm:$0xff]  ;;  %3648 = vmatpush.msrb.mxu1 %v2254_v3 }
 0x469   :  { %v2382_v7 = vld [vmem:[#allocation6 + $0x1f18] sm:$0xff]  ;;  %3668 = vmatpush.msrb.mxu2 %v2318_v49 }
 0x46a   :  { %v2186_v46 = vld [vmem:[#allocation6 + $0x18f8] sm:$0xff]  ;;  %3688 = vmatpush.msrb.mxu3 %v2382_v7 }
 0x46b   :  { %v2250_v54 = vld [vmem:[#allocation6 + $0x1af8] sm:$0xff]  ;;  %3629 = vmatpush.msrb.mxu0 %v2186_v46  ;;  %v2839_v46 = vadd.f32 %v4429_v61, %v2819_v58 }
 0x46c   :  { %v2314_v30 = vld [vmem:[#allocation6 + $0x1cf8] sm:$0xff]  ;;  %3649 = vmatpush.msrb.mxu1 %v2250_v54  ;;  %v3159_v54 = vadd.f32 %v3158_v53, %v3139_v0  ;;  %v3742_v0 = vld [vmem:[#allocation9 + $0xe8] sm:$0xff] }
 0x46d   :  { %v2378_v14 = vld [vmem:[#allocation6 + $0x1ef8] sm:$0xff]  ;;  %3669 = vmatpush.msrb.mxu2 %v2314_v30  ;;  %v2859_v28 = vadd.f32 %v4433_v19, %v2839_v46 }
 0x46e   :  { %v2182_v2 = vld [vmem:[#allocation6 + $0x18d8] sm:$0xff]  ;;  %3689 = vmatpush.msrb.mxu3 %v2378_v14 }
 0x46f   :  { %v2246_v26 = vld [vmem:[#allocation6 + $0x1ad8] sm:$0xff]  ;;  %3630 = vmatpush.msrb.mxu0 %v2182_v2  ;;  %v3198_v2 = vpop.f32.mrf.mxu2 }
 0x470   :  { %v2310_v13 = vld [vmem:[#allocation6 + $0x1cd8] sm:$0xff]  ;;  %3650 = vmatpush.msrb.mxu1 %v2246_v26 }
 0x471   :  { %v2374_v31 = vld [vmem:[#allocation6 + $0x1ed8] sm:$0xff]  ;;  %3670 = vmatpush.msrb.mxu2 %v2310_v13  ;;  %v3179_v13 = vadd.f32 %v3178_v23, %v3159_v54 }
 0x472   :  { %v2178_v33 = vld [vmem:[#allocation6 + $0x18b8] sm:$0xff]  ;;  %3690 = vmatpush.msrb.mxu3 %v2374_v31 }
 0x473   :  { %v2242_v34 = vld [vmem:[#allocation6 + $0x1ab8] sm:$0xff]  ;;  %3631 = vmatpush.msrb.mxu0 %v2178_v33  ;;  %v3199_v51 = vadd.f32 %v3198_v2, %v3179_v13 }
 0x474   :  { %v2306_v37 = vld [vmem:[#allocation6 + $0x1cb8] sm:$0xff]  ;;  %3651 = vmatpush.msrb.mxu1 %v2242_v34  ;;  %v2879_v34 = vadd.f32 %v4435_v20, %v2859_v28  ;;  %v3737_v28 = vld [vmem:[#allocation9 + $0xc0] sm:$0xff] }
 0x475   :  { %v2370_v35 = vld [vmem:[#allocation6 + $0x1eb8] sm:$0xff]  ;;  %3671 = vmatpush.msrb.mxu2 %v2306_v37  ;;  %v2559_v37 = vadd.f32 %v4399_v43, %v2539_v32 }
 0x476   :  { %v2174_v21 = vld [vmem:[#allocation6 + $0x1898] sm:$0xff]  ;;  %3691 = vmatpush.msrb.mxu3 %v2370_v35  ;;  %v2899_v20 = vadd.f32 %v4439_v38, %v2879_v34 }
 0x477   :  { %v2238_v41 = vld [vmem:[#allocation6 + $0x1a98] sm:$0xff]  ;;  %3632 = vmatpush.msrb.mxu0 %v2174_v21  ;;  %v3218_v21 = vpop.f32.mrf.mxu3  ;;  %v3278_v6 = vpop.f32.mrf.mxu2 }
 0x478   :  { %v2302_v52 = vld [vmem:[#allocation6 + $0x1c98] sm:$0xff]  ;;  %3652 = vmatpush.msrb.mxu1 %v2238_v41  ;;  %v3238_v41 = vpop.f32.mrf.mxu0  ;;  %v3219_v50 = vadd.f32 %v3218_v21, %v3199_v51  ;;  %v2919_v58 = vadd.f32 %v4437_v29, %v2899_v20  ;;  %v3718_v21 = vld [vmem:[#allocation9 + $0x28] sm:$0xff] }
 0x479   :  { %v2366_v57 = vld [vmem:[#allocation6 + $0x1e98] sm:$0xff]  ;;  %3672 = vmatpush.msrb.mxu2 %v2302_v52  ;;  %v2579_v52 = vadd.f32 %v4403_v55, %v2559_v37  ;;  %v3757_v55 = vld [vmem:[#allocation9 + $0x160] sm:$0xff] }
 0x47a   :  { %v2170_v22 = vld [vmem:[#allocation6 + $0x1878] sm:$0xff]  ;;  %3692 = vmatpush.msrb.mxu3 %v2366_v57 }
 0x47b   :  { %v2234_v3 = vld [vmem:[#allocation6 + $0x1a78] sm:$0xff]  ;;  %3633 = vmatpush.msrb.mxu0 %v2170_v22  ;;  %v2599_v38 = vadd.f32 %v4401_v47, %v2579_v52  ;;  %v3741_v22 = vld [vmem:[#allocation9 + $0xe0] sm:$0xff] }
 0x47c   :  { %v2298_v49 = vld [vmem:[#allocation6 + $0x1c78] sm:$0xff]  ;;  %3653 = vmatpush.msrb.mxu1 %v2234_v3  ;;  %v3258_v3 = vpop.f32.mrf.mxu1 }
 0x47d   :  { %v2362_v7 = vld [vmem:[#allocation6 + $0x1e78] sm:$0xff]  ;;  %3673 = vmatpush.msrb.mxu2 %v2298_v49  ;;  %v2939_v49 = vadd.f32 %v4441_v44, %v2919_v58  ;;  %v2619_v54 = vadd.f32 %v4409_v62, %v2599_v38  ;;  %v3754_v62 = vld [vmem:[#allocation9 + $0x148] sm:$0xff] }
 0x47e   :  { %v2166_v12 = vld [vmem:[#allocation6 + $0x1858] sm:$0xff]  ;;  %3693 = vmatpush.msrb.mxu3 %v2362_v7 }
 0x47f   :  { %v2230_v5 = vld [vmem:[#allocation6 + $0x1a58] sm:$0xff]  ;;  %3634 = vmatpush.msrb.mxu0 %v2166_v12  ;;  %v2959_v12 = vadd.f32 %v4443_v45, %v2939_v49  ;;  %v3298_v23 = vpop.f32.mrf.mxu3  ;;  %v3713_v49 = vld [vmem:[#allocation9] sm:$0xff] }
 0x480   :  { %v2294_v30 = vld [vmem:[#allocation6 + $0x1c58] sm:$0xff]  ;;  %3654 = vmatpush.msrb.mxu1 %v2230_v5  ;;  %v3318_v2 = vpop.f32.mrf.mxu0 }
 0x481   :  { %v2358_v14 = vld [vmem:[#allocation6 + $0x1e58] sm:$0xff]  ;;  %3674 = vmatpush.msrb.mxu2 %v2294_v30 }
 0x482   :  { %v2162_v42 = vld [vmem:[#allocation6 + $0x1838] sm:$0xff]  ;;  %3694 = vmatpush.msrb.mxu3 %v2358_v14  ;;  %v2639_v14 = vadd.f32 %v4411_v63, %v2619_v54  ;;  %v3753_v63 = vld [vmem:[#allocation9 + $0x140] sm:$0xff] }
 0x483   :  { %v2226_v16 = vld [vmem:[#allocation6 + $0x1a38] sm:$0xff]  ;;  %3635 = vmatpush.msrb.mxu0 %v2162_v42  ;;  %v3722_v42 = vld [vmem:[#allocation9 + $0x48] sm:$0xff] }
 0x484   :  { %v2290_v61 = vld [vmem:[#allocation6 + $0x1c38] sm:$0xff]  ;;  %3655 = vmatpush.msrb.mxu1 %v2226_v16  ;;  %v3738_v16 = vld [vmem:[#allocation9 + $0xc8] sm:$0xff]  ;;  %v2659_v13 = vadd.f32 %v4415_v18, %v2639_v14  ;;  %v3338_v37 = vpop.f32.mrf.mxu1 }
 0x485   :  { %v2354_v26 = vld [vmem:[#allocation6 + $0x1e38] sm:$0xff]  ;;  %3675 = vmatpush.msrb.mxu2 %v2290_v61  ;;  %v2979_v61 = vadd.f32 %v4451_v11, %v2959_v12 }
 0x486   :  { %v2158_v27 = vld [vmem:[#allocation6 + $0x1818] sm:$0xff]  ;;  %3695 = vmatpush.msrb.mxu3 %v2354_v26  ;;  %v3721_v26 = vld [vmem:[#allocation9 + $0x40] sm:$0xff] }
 0x487   :  { %v2222_v31 = vld [vmem:[#allocation6 + $0x1a18] sm:$0xff]  ;;  %3636 = vmatpush.msrb.mxu0 %v2158_v27  ;;  %v2999_v27 = vadd.f32 %v4449_v59, %v2979_v61 }
 0x488   :  { %v2286_v40 = vld [vmem:[#allocation6 + $0x1c18] sm:$0xff]  ;;  %3656 = vmatpush.msrb.mxu1 %v2222_v31  ;;  %3637 = vmatmul.f32.vlgmr.msrb.gmra.mxu0 %v4336_v1  ;;  %v3239_v1 = vadd.f32 %v3238_v41, %v3219_v50  ;;  %v3734_v41 = vld [vmem:[#allocation9 + $0xa8] sm:$0xff] }
 0x489   :  { %v2350_v33 = vld [vmem:[#allocation6 + $0x1e18] sm:$0xff]  ;;  %3676 = vmatpush.msrb.mxu2 %v2286_v40  ;;  %3657 = vmatmul.f32.vlgmr.msrb.gmra.mxu1 %v4339_v25  ;;  %v3726_v25 = vld [vmem:[#allocation9 + $0x68] sm:$0xff] }
 0x48a   :  { %3696 = vmatpush.msrb.mxu3 %v2350_v33  ;;  %v3728_v19 = vld [vmem:[#allocation9 + $0x78] sm:$0xff]  ;;  %3677 = vmatmul.f32.vlgmr.msrb.gmra.mxu2 %v4345_v56  ;;  %v3727_v43 = vld [vmem:[#allocation9 + $0x70] sm:$0xff]  ;;  %v3758_v56 = vld [vmem:[#allocation9 + $0x168] sm:$0xff]  ;;  %v3259_v29 = vadd.f32 %v3258_v3, %v3239_v1  ;;  %v2679_v33 = vadd.f32 %v4413_v4, %v2659_v13 }
 0x48b   :  { %v3744_v35 = vld [vmem:[#allocation9 + $0xf8] sm:$0xff]  ;;  %3697 = vmatmul.f32.vlgmr.msrb.gmra.mxu3 %v4348_v15  ;;  %v3743_v53 = vld [vmem:[#allocation9 + $0xf0] sm:$0xff]  ;;  %3781 = vmatpush.msra.mxu0 %v3728_v19  ;;  %v3725_v15 = vld [vmem:[#allocation9 + $0x60] sm:$0xff]  ;;  %v3358_v19 = vpop.f32.mrf.mxu2 }
 0x48c   :  { %v3760_v36 = vld [vmem:[#allocation9 + $0x178] sm:$0xff]  ;;  %3801 = vmatpush.msra.mxu1 %v3744_v35  ;;  %v3759_v57 = vld [vmem:[#allocation9 + $0x170] sm:$0xff]  ;;  %v3279_v5 = vadd.f32 %v3278_v6, %v3259_v29  ;;  %v3019_v35 = vadd.f32 %v4455_v17, %v2999_v27  ;;  %v3750_v4 = vld [vmem:[#allocation9 + $0x128] sm:$0xff]  ;;  %v3418_v61 = vpop.f32.mrf.mxu1 }
 0x48d   :  { %3821 = vmatpush.msra.mxu2 %v3760_v36  ;;  %3782 = vmatpush.msra.mxu0 %v3727_v43  ;;  %v3724_v7 = vld [vmem:[#allocation9 + $0x58] sm:$0xff]  ;;  %v3723_v10 = vld [vmem:[#allocation9 + $0x50] sm:$0xff]  ;;  %v2699_v36 = vadd.f32 %v4417_v8, %v2679_v33  ;;  %v3717_v43 = vld [vmem:[#allocation9 + $0x20] sm:$0xff]  ;;  %v3378_v8 = vpop.f32.mrf.mxu3 }
 0x48e   :  { %3802 = vmatpush.msra.mxu1 %v3743_v53  ;;  %v3740_v46 = vld [vmem:[#allocation9 + $0xd8] sm:$0xff]  ;;  %v3739_v30 = vld [vmem:[#allocation9 + $0xd0] sm:$0xff]  ;;  %v3299_v45 = vadd.f32 %v3298_v23, %v3279_v5  ;;  %v3039_v20 = vadd.f32 %v4457_v60, %v3019_v35  ;;  %v3733_v53 = vld [vmem:[#allocation9 + $0xa0] sm:$0xff]  ;;  %v2416_v23 = vperm.slane %v4453_v9, 3 }
 0x48f   :  { %3822 = vmatpush.msra.mxu2 %v3759_v57  ;;  %3783 = vmatpush.msra.mxu0 %v3726_v25  ;;  %v3756_v47 = vld [vmem:[#allocation9 + $0x158] sm:$0xff]  ;;  %v3755_v44 = vld [vmem:[#allocation9 + $0x150] sm:$0xff]  ;;  %v2719_v52 = vadd.f32 %v4419_v24, %v2699_v36  ;;  %v3749_v17 = vld [vmem:[#allocation9 + $0x120] sm:$0xff] }
 0x490   :  { %3803 = vmatpush.msra.mxu1 %v3742_v0  ;;  %v3319_v31 = vadd.f32 %v3318_v2, %v3299_v45  ;;  %v3720_v32 = vld [vmem:[#allocation9 + $0x38] sm:$0xff]  ;;  %v3719_v34 = vld [vmem:[#allocation9 + $0x30] sm:$0xff]  ;;  %v3059_v60 = vadd.f32 %v4464_v48, %v3039_v20  ;;  %v3729_v48 = vld [vmem:[#allocation9 + $0x80] sm:$0xff]  ;;  %v3398_v2 = vpop.f32.mrf.mxu0 }
 0x491   :  { %3823 = vmatpush.msra.mxu2 %v3758_v56  ;;  %3784 = vmatpush.msra.mxu0 %v3725_v15  ;;  %v3736_v40 = vld [vmem:[#allocation9 + $0xb8] sm:$0xff]  ;;  %v3735_v51 = vld [vmem:[#allocation9 + $0xb0] sm:$0xff]  ;;  %v2739_v1 = vadd.f32 %v4423_v39, %v2719_v52  ;;  %v3714_v15 = vld [vmem:[#allocation9 + $0x8] sm:$0xff] }
 0x492   :  { %3804 = vmatpush.msra.mxu1 %v3741_v22  ;;  %v3752_v11 = vld [vmem:[#allocation9 + $0x138] sm:$0xff]  ;;  %v3751_v18 = vld [vmem:[#allocation9 + $0x130] sm:$0xff]  ;;  %v3339_v59 = vadd.f32 %v3338_v37, %v3319_v31  ;;  %v3730_v22 = vld [vmem:[#allocation9 + $0x88] sm:$0xff]  ;;  %v3706_v6 = vmul.f32 0.01, %v3059_v60  ;;  %vm3702_vm1 = vcmp.ge.f32.partialorder %v3059_v60, 0.0 }
 0x493   :  { %3824 = vmatpush.msra.mxu2 %v3757_v55  ;;  %3785 = vmatpush.msra.mxu0 %v3724_v7  ;;  %v3716_v57 = vld [vmem:[#allocation9 + $0x18] sm:$0xff]  ;;  %v3715_v38 = vld [vmem:[#allocation9 + $0x10] sm:$0xff]  ;;  %vm3701_vm0 = vcmp.ge.f32.partialorder %v2739_v1, 0.0  ;;  %v3705_v3 = vmul.f32 0.01, %v2739_v1  ;;  %v3746_v39 = vld [vmem:[#allocation9 + $0x108] sm:$0xff]  ;;  %v3438_v45 = vpop.f32.mrf.mxu2 }
 0x494   :  { %3805 = vmatpush.msra.mxu1 %v3740_v46  ;;  %v3359_v50 = vadd.f32 %v3358_v19, %v3339_v59  ;;  %v3732_v58 = vld [vmem:[#allocation9 + $0x98] sm:$0xff]  ;;  %v3731_v56 = vld [vmem:[#allocation9 + $0x90] sm:$0xff]  ;;  %v3745_v29 = vld [vmem:[#allocation9 + $0x100] sm:$0xff]  ;;  %v3710_v46 = vsel %vm3702_vm1, %v3059_v60, %v3706_v6  ;;  %v3498_v9 = vpop.f32.mrf.mxu1 }
 0x495   :  { %3825 = vmatpush.msra.mxu2 %v3756_v47  ;;  %3786 = vmatpush.msra.mxu0 %v3723_v10  ;;  %v3748_v25 = vld [vmem:[#allocation9 + $0x118] sm:$0xff]  ;;  %v3747_v24 = vld [vmem:[#allocation9 + $0x110] sm:$0xff]  ;;  %v3709_v7 = vsel %vm3701_vm0, %v2739_v1, %v3705_v3  ;;  %v3774_v5 = vld [vmem:[#allocation9 + $0x1e8] sm:$0xff]  ;;  %v3458_v31 = vpop.f32.mrf.mxu3 }
 0x496   :  { %3806 = vmatpush.msra.mxu1 %v3739_v30  ;;  %v3379_v0 = vadd.f32 %v3378_v8, %v3359_v50  ;;  %v3776_v47 = vld [vmem:[#allocation9 + $0x1f8] sm:$0xff]  ;;  %v3775_v12 = vld [vmem:[#allocation9 + $0x1f0] sm:$0xff]  ;;  %v3773_v10 = vld [vmem:[#allocation9 + $0x1e0] sm:$0xff] }
 0x497   :  { %3826 = vmatpush.msra.mxu2 %v3755_v44  ;;  %3787 = vmatpush.msra.mxu0 %v3722_v42  ;;  %v3772_v30 = vld [vmem:[#allocation9 + $0x1d8] sm:$0xff]  ;;  %v3771_v14 = vld [vmem:[#allocation9 + $0x1d0] sm:$0xff]  ;;  %v3770_v44 = vld [vmem:[#allocation9 + $0x1c8] sm:$0xff] }
 0x498   :  { %3807 = vmatpush.msra.mxu1 %v3738_v16  ;;  %v3707_v55 = vmul.f32 0.01, %v3379_v0  ;;  %vm3703_vm2 = vcmp.ge.f32.partialorder %v3379_v0, 0.0  ;;  %3841 = vmatpush.msra.mxu3 %v3776_v47  ;;  %v3769_v42 = vld [vmem:[#allocation9 + $0x1c0] sm:$0xff]  ;;  %v3768_v16 = vld [vmem:[#allocation9 + $0x1b8] sm:$0xff]  ;;  %v3766_v13 = vld [vmem:[#allocation9 + $0x1a8] sm:$0xff] }
 0x499   :  { %3827 = vmatpush.msra.mxu2 %v3754_v62  ;;  %3788 = vmatpush.msra.mxu0 %v3721_v26  ;;  %v3399_v62 = vadd.f32 %v3398_v2, %v2416_v23  ;;  %v3765_v27 = vld [vmem:[#allocation9 + $0x1a0] sm:$0xff]  ;;  %v3764_v33 = vld [vmem:[#allocation9 + $0x198] sm:$0xff]  ;;  %v3762_v37 = vld [vmem:[#allocation9 + $0x188] sm:$0xff] }
 0x49a   :  { %3808 = vmatpush.msra.mxu1 %v3737_v28  ;;  %v3711_v54 = vsel %vm3703_vm2, %v3379_v0, %v3707_v55  ;;  %3842 = vmatpush.msra.mxu3 %v3775_v12  ;;  %v3767_v28 = vld [vmem:[#allocation9 + $0x1b0] sm:$0xff]  ;;  %v3879_v0 = vld [vmem:[#allocation12 + $0x78] sm:$0xff] }
 0x49b   :  { %3828 = vmatpush.msra.mxu2 %v3753_v63  ;;  %3789 = vmatpush.msra.mxu0 %v3720_v32  ;;  %v3419_v26 = vadd.f32 %v3418_v61, %v3399_v62  ;;  %v3478_v32 = vpop.f32.mrf.mxu0  ;;  %v3874_v6 = vld [vmem:[#allocation12 + $0x50] sm:$0xff]  ;;  %v3873_v55 = vld [vmem:[#allocation12 + $0x48] sm:$0xff] }
 0x49c   :  { %3809 = vmatpush.msra.mxu1 %v3736_v40  ;;  %3843 = vmatpush.msra.mxu3 %v3774_v5  ;;  %v3866_v47 = vld [vmem:[#allocation12 + $0x10] sm:$0xff]  ;;  %v3865_v12 = vld [vmem:[#allocation12 + $0x8] sm:$0xff]  ;;  %v3864_v5 = vld [vmem:[#allocation12] sm:$0xff] }
 0x49d   :  { %3829 = vmatpush.msra.mxu2 %v3752_v11  ;;  %3790 = vmatpush.msra.mxu0 %v3719_v34  ;;  %v3439_v63 = vadd.f32 %v3438_v45, %v3419_v26  ;;  %v3763_v34 = vld [vmem:[#allocation9 + $0x190] sm:$0xff]  ;;  %v3538_v59 = vpop.f32.mrf.mxu3  ;;  %v3928_v26 = vld [vmem:[#allocation13] ss:$0 sm:$0xff] }
 0x49e   :  { %3810 = vmatpush.msra.mxu1 %v3735_v51  ;;  %3844 = vmatpush.msra.mxu3 %v3773_v10  ;;  %v3518_v51 = vpop.f32.mrf.mxu2  ;;  %v3927_v10 = vld [vmem:[#allocation10] ss:$0 sm:$0xff] }
 0x49f   :  { %3830 = vmatpush.msra.mxu2 %v3751_v18  ;;  %3791 = vmatpush.msra.mxu0 %v3718_v21  ;;  %v3459_v40 = vadd.f32 %v3458_v31, %v3439_v63  ;;  %v3761_v18 = vld [vmem:[#allocation9 + $0x180] sm:$0xff] }
 0x4a0   :  { %3811 = vmatpush.msra.mxu1 %v3734_v41  ;;  %3845 = vmatpush.msra.mxu3 %v3772_v30 }
 0x4a1   :  { %3831 = vmatpush.msra.mxu2 %v3750_v4  ;;  %3792 = vmatpush.msra.mxu0 %v3717_v43  ;;  %v3479_v11 = vadd.f32 %v3478_v32, %v3459_v40 }
 0x4a2   :  { %3812 = vmatpush.msra.mxu1 %v3733_v53  ;;  %3846 = vmatpush.msra.mxu3 %v3771_v14 }
 0x4a3   :  { %3832 = vmatpush.msra.mxu2 %v3749_v17  ;;  %3793 = vmatpush.msra.mxu0 %v3716_v57  ;;  %v3499_v19 = vadd.f32 %v3498_v9, %v3479_v11 }
 0x4a4   :  { %3813 = vmatpush.msra.mxu1 %v3732_v58  ;;  %3847 = vmatpush.msra.mxu3 %v3770_v44 }
 0x4a5   :  { %3833 = vmatpush.msra.mxu2 %v3748_v25  ;;  %3794 = vmatpush.msra.mxu0 %v3715_v38  ;;  %v3519_v35 = vadd.f32 %v3518_v51, %v3499_v19  ;;  %v3878_v38 = vld [vmem:[#allocation12 + $0x70] sm:$0xff] }
 0x4a6   :  { %3814 = vmatpush.msra.mxu1 %v3731_v56  ;;  %3848 = vmatpush.msra.mxu3 %v3769_v42 }
 0x4a7   :  { %3834 = vmatpush.msra.mxu2 %v3747_v24  ;;  %3795 = vmatpush.msra.mxu0 %v3714_v15  ;;  %v3539_v41 = vadd.f32 %v3538_v59, %v3519_v35  ;;  %v3877_v24 = vld [vmem:[#allocation12 + $0x68] sm:$0xff] }
 0x4a8   :  { %3815 = vmatpush.msra.mxu1 %v3730_v22  ;;  %3849 = vmatpush.msra.mxu3 %v3768_v16  ;;  %v3876_v22 = vld [vmem:[#allocation12 + $0x60] sm:$0xff] }
 0x4a9   :  { %3835 = vmatpush.msra.mxu2 %v3746_v39  ;;  %3796 = vmatpush.msra.mxu0 %v3713_v49  ;;  %v3875_v39 = vld [vmem:[#allocation12 + $0x58] sm:$0xff]  ;;  %v3872_v49 = vld [vmem:[#allocation12 + $0x40] sm:$0xff] }
 0x4aa   :  { %3816 = vmatpush.msra.mxu1 %v3729_v48  ;;  %3797 = vmatmul.f32.vlgmr.msra.gmra.mxu0 %v3709_v7  ;;  %v3871_v48 = vld [vmem:[#allocation12 + $0x38] sm:$0xff]  ;;  %v3869_v7 = vld [vmem:[#allocation12 + $0x28] sm:$0xff] }
 0x4ab   :  { %3836 = vmatpush.msra.mxu2 %v3745_v29  ;;  %3817 = vmatmul.f32.vlgmr.msra.gmra.mxu1 %v3710_v46  ;;  %v3870_v29 = vld [vmem:[#allocation12 + $0x30] sm:$0xff]  ;;  %v3868_v46 = vld [vmem:[#allocation12 + $0x20] sm:$0xff] }
 0x4ac   :  { %3837 = vmatmul.f32.vlgmr.msra.gmra.mxu2 %v3711_v54  ;;  %3850 = vmatpush.msra.mxu3 %v3767_v28  ;;  %v3867_v54 = vld [vmem:[#allocation12 + $0x18] sm:$0xff] }
 0x4ad   :  { %3884 = vmatpush.msrb.mxu0 %v3879_v0 }
 0x4ae   :  { %3851 = vmatpush.msra.mxu3 %v3766_v13 }
 0x4af   :  { %3885 = vmatpush.msrb.mxu0 %v3878_v38 }
 0x4b0   :  { %3852 = vmatpush.msra.mxu3 %v3765_v27 }
 0x4b1   :  { %3886 = vmatpush.msrb.mxu0 %v3877_v24 }
 0x4b2   :  { %3853 = vmatpush.msra.mxu3 %v3764_v33 }
 0x4b3   :  { %3887 = vmatpush.msrb.mxu0 %v3876_v22 }
 0x4b4   :  { %3854 = vmatpush.msra.mxu3 %v3763_v34 }
 0x4b5   :  { %3888 = vmatpush.msrb.mxu0 %v3875_v39 }
 0x4b6   :  { %3855 = vmatpush.msra.mxu3 %v3762_v37 }
 0x4b7   :  { %3889 = vmatpush.msrb.mxu0 %v3874_v6 }
 0x4b8   :  { %3856 = vmatpush.msra.mxu3 %v3761_v18 }
 0x4b9   :  { %3890 = vmatpush.msrb.mxu0 %v3873_v55 }
 0x4bb   :  { %3891 = vmatpush.msrb.mxu0 %v3872_v49 }
 0x4bd   :  { %3892 = vmatpush.msrb.mxu0 %v3871_v48 }
 0x4bf   :  { %3893 = vmatpush.msrb.mxu0 %v3870_v29 }
 0x4c1   :  { %3894 = vmatpush.msrb.mxu0 %v3869_v7 }
 0x4c3   :  { %3895 = vmatpush.msrb.mxu0 %v3868_v46 }
 0x4c5   :  { %v3558_v21 = vpop.f32.mrf.mxu0  ;;  %3896 = vmatpush.msrb.mxu0 %v3867_v54 }
 0x4c6   :  { %v3559_v36 = vadd.f32 %v3558_v21, %v3539_v41  ;;  %v3578_v4 = vpop.f32.mrf.mxu1 }
 0x4c7   :  { %3897 = vmatpush.msrb.mxu0 %v3866_v47 }
 0x4c8   :  { %v3579_v50 = vadd.f32 %v3578_v4, %v3559_v36 }
 0x4c9   :  { %3898 = vmatpush.msrb.mxu0 %v3865_v12 }
 0x4cb   :  { %3899 = vmatpush.msrb.mxu0 %v3864_v5 }
 0x4cd   :  { %v3598_v20 = vpop.f32.mrf.mxu2 }
 0x4ce   :  { %v3599_v43 = vadd.f32 %v3598_v20, %v3579_v50  ;;  %v3618_v53 = vpop.f32.mrf.mxu3 }
 0x4d0   :  { %v3619_v52 = vadd.f32 %v3618_v53, %v3599_v43 }
 0x505   :  { %v3638_v17 = vpop.f32.mrf.mxu0 }
 0x506   :  { %v3639_v57 = vadd.f32 %v3638_v17, %v3619_v52  ;;  %v3658_v58 = vpop.f32.mrf.mxu1 }
 0x508   :  { %v3659_v1 = vadd.f32 %v3658_v58, %v3639_v57 }
 0x50d   :  { %v3678_v8 = vpop.f32.mrf.mxu2 }
 0x50e   :  { %v3679_v25 = vadd.f32 %v3678_v8, %v3659_v1  ;;  %v3698_v60 = vpop.f32.mrf.mxu3 }
 0x510   :  { %v3699_v56 = vadd.f32 %v3698_v60, %v3679_v25 }
 0x512   :  { %vm3704_vm3 = vcmp.ge.f32.partialorder %v3699_v56, 0.0  ;;  %v3708_v15 = vmul.f32 0.01, %v3699_v56 }
 0x514   :  { %v3712_v3 = vsel %vm3704_vm3, %v3699_v56, %v3708_v15 }
 0x515   :  { %3857 = vmatmul.f32.vlgmr.msra.gmra.mxu3 %v3712_v3 }
 0x527   :  { %v3798_v30 = vpop.f32.mrf.mxu0 }
 0x528   :  { %v3799_v14 = vadd.f32 %v3927_v10, %v3798_v30  ;;  %v3818_v44 = vpop.f32.mrf.mxu1 }
 0x52a   :  { %v3819_v16 = vadd.f32 %v3818_v44, %v3799_v14 }
 0x52f   :  { %v3838_v42 = vpop.f32.mrf.mxu2 }
 0x530   :  { %v3839_v23 = vadd.f32 %v3838_v42, %v3819_v16 }
 0x598   :  { %v3858_v2 = vpop.f32.mrf.mxu3 }
 0x599   :  { %v3859_v62 = vadd.f32 %v3858_v2, %v3839_v23 }
 0x59b   :  { %vm3861_vm4 = vcmp.ge.f32.partialorder %v3859_v62, 0.0  ;;  %v3862_v61 = vmul.f32 0.01, %v3859_v62 }
 0x59d   :  { %v3863_v45 = vsel %vm3861_vm4, %v3859_v62, %v3862_v61 }
 0x59e   :  { %3900 = vmatmul.f32.vlgmr.msrb.gmra.mxu0 %v3863_v45 }
 0x61b   :  { %v3901_v28 = vpop.f32.mrf.mxu0 }
 0x61c   :  { %v3902_v13 = vadd.f32 %v3928_v26, %v3901_v28 }
 0x61e   :  { %3904 = vst [vmem:[%s4514_s9] sm:$0xff] %v3902_v13 }
 0x61f   :  { %3909 = vsyncpa [#allocation3], 1 }
 0x620   :  { %3910 = vsyncpa [#allocation5], 1 }
 0x621   :  { %3911 = vsyncpa [#allocation8], 1 }
 0x622   :  { %3912 = vsyncpa [#allocation11], 1 }
 0x623   :  { %3913 = vsyncpa [#allocation14], 1 }

</bundles_post_ra>
